<compile_context>
chip_gen: v5e
topology: v5e:2x2
jax: 0.10.0
libtpu: 0.0.40
codegen_flags: <defaults>
</compile_context>

<pallas_src>
import functools

import jax
import jax.numpy as jnp
import numpy as np
from jax.experimental import pallas as pl
from jax.experimental.pallas import tpu as pltpu

BN_EPS = 1e-5   # PyTorch BatchNorm2d default
LANE = 128      # TPU lane width; channel dims are padded to a multiple of this


def _round_up(v, m):
    return (v + m - 1) // m * m


def _pick_row_tile(ho, wo, cp_out, max_bytes=1 << 20):
    """Largest divisor of `ho` giving an output row-tile <= max_bytes and >= 2 grid steps."""
    cap = max(ho // 2, 1)
    best = 1
    for d in range(1, ho + 1):
        if ho % d == 0 and d <= cap and d * wo * cp_out * 4 <= max_bytes:
            best = d
    return best


# -----------------------------------------------------------------------------
# Pass 1: 3x3 conv (9 shifted matmuls) + per-channel sum / sumsq accumulation.
# -----------------------------------------------------------------------------
def _conv_stats_kernel(x_ref, w_ref, y_ref, stats_ref, *, stride, ksize):
    # x_ref:     (Hp, Wp, Cp_in)      whole spatially-padded image (resident per batch index)
    # w_ref:     (k*k, Cp_in, Cp_out) resident across the whole grid
    # y_ref:     (th, Wo, Cp_out)     conv output row-tile
    # stats_ref: (2, Cp_out)          resident accumulator: [sum, sum of squares]
    i = pl.program_id(1)
    th, wo, cp_out = y_ref.shape
    cp_in = x_ref.shape[-1]
    hwin = (th - 1) * stride + 1
    wwin = (wo - 1) * stride + 1
    row0 = i * (th * stride)

    acc = jnp.zeros((th * wo, cp_out), jnp.float32)
    for kh in range(ksize):          # static 3x3 tap loop -> 9 MXU matmuls
        for kw in range(ksize):
            win = x_ref[pl.ds(row0 + kh, hwin), pl.ds(kw, wwin), :]
            if stride > 1:           # strided conv: static subsample of the window
                win = win[::stride, ::stride, :]
            acc = acc + jnp.dot(win.reshape(th * wo, cp_in),
                                w_ref[kh * ksize + kw],
                                preferred_element_type=jnp.float32)

    y_ref[...] = acc.reshape(th, wo, cp_out)

    tile_stats = jnp.concatenate(
        [jnp.sum(acc, axis=0, keepdims=True),
         jnp.sum(acc * acc, axis=0, keepdims=True)], axis=0)    # (2, Cp_out)

    @pl.when(i == 0)
    def _init():
        stats_ref[...] = jnp.zeros_like(stats_ref)

    stats_ref[...] += tile_stats


# -----------------------------------------------------------------------------
# Pass 2: folded BatchNorm affine + ReLU (one fma + max per element).
# -----------------------------------------------------------------------------
def _bn_relu_kernel(y_ref, scale_ref, bias_ref, o_ref):
    o_ref[...] = jnp.maximum(y_ref[...] * scale_ref[...] + bias_ref[...], 0.0)


def conv_bn_relu_nhwc(x, weight, gamma, beta, *, stride, padding):
    """Fused conv3x3 (no bias) + training-mode BatchNorm + ReLU, NHWC channel-padded.

    x:      (N, H, W, Cp_in)  NHWC, channel dim already padded to a multiple of 128
                              (padded channels must be zero).
    weight: (C_out, C_in, k, k) OIHW (PyTorch layout), unpadded.
    gamma/beta: (C_out,)
    returns (N, Ho, Wo, Cp_out) NHWC with Cp_out = round_up(C_out, 128);
            padded output channels are exactly zero.
    """
    N, H, W, cp_in = x.shape
    c_out, c_in, k, _ = weight.shape
    assert cp_in >= c_in and cp_in % LANE == 0
    cp_out = _round_up(c_out, LANE)

    if padding:
        x = jnp.pad(x, ((0, 0), (padding, padding), (padding, padding), (0, 0)))
    hp, wp = x.shape[1], x.shape[2]
    ho = (hp - k) // stride + 1
    wo = (wp - k) // stride + 1

    # OIHW -> (k*k, Cp_in, Cp_out), zero-padded channels.
    wt = jnp.transpose(weight, (2, 3, 1, 0))                     # (k, k, C_in, C_out)
    wt = jnp.pad(wt, ((0, 0), (0, 0), (0, cp_in - c_in), (0, cp_out - c_out)))
    wt = wt.reshape(k * k, cp_in, cp_out)

    th = _pick_row_tile(ho, wo, cp_out)   # th divides ho => no padded rows to mask in the stats
    ht = ho // th

    conv_kernel = functools.partial(_conv_stats_kernel, stride=stride, ksize=k)
    conv_flops = 2 * N * ho * wo * (k * k * cp_in) * cp_out
    conv_bytes = 4 * (N * hp * wp * cp_in + wt.size + N * ho * wo * cp_out + N * 2 * cp_out)

    y, stats = pl.pallas_call(
        conv_kernel,
        grid=(N, ht),
        in_specs=[
            # Whole padded image: resident across the row-tile axis (re-DMA'd only when n changes).
            pl.BlockSpec((None, hp, wp, cp_in), lambda n, i: (n, 0, 0, 0)),
            # Weights: resident across the whole grid.
            pl.BlockSpec((k * k, cp_in, cp_out), lambda n, i: (0, 0, 0)),
        ],
        out_specs=[
            pl.BlockSpec((None, th, wo, cp_out), lambda n, i: (n, i, 0, 0)),
            # Per-image stats accumulator (revisited across the row-tile axis).
            pl.BlockSpec((None, 2, cp_out), lambda n, i: (n, 0, 0)),
        ],
        out_shape=[
            jax.ShapeDtypeStruct((N, ho, wo, cp_out), jnp.float32),
            jax.ShapeDtypeStruct((N, 2, cp_out), jnp.float32),
        ],
        compiler_params=pltpu.CompilerParams(
            dimension_semantics=("parallel", "arbitrary"),
            # Explicit scoped-VMEM budget (v5e default is only 16 MiB).  Blocks here are
            # ~2 MiB double-buffered, so 32 MiB is safe on v5e/v6e/v7x alike; re-derive the
            # row tile (and this budget) for much larger images.
            vmem_limit_bytes=32 * 1024 * 1024,
        ),
        cost_estimate=pl.CostEstimate(flops=conv_flops, transcendentals=0,
                                      bytes_accessed=conv_bytes),
    )(x, wt)

    # Fold exact batch statistics into a single per-channel scale / bias (tiny per-channel glue).
    m = N * ho * wo
    ch_sum = jnp.sum(stats[:, 0, :], axis=0)
    ch_sumsq = jnp.sum(stats[:, 1, :], axis=0)
    mean = ch_sum / m
    var = jnp.maximum(ch_sumsq / m - mean * mean, 0.0)
    gamma_p = jnp.pad(gamma.astype(jnp.float32), (0, cp_out - c_out))
    beta_p = jnp.pad(beta.astype(jnp.float32), (0, cp_out - c_out))
    scale = gamma_p * jax.lax.rsqrt(var + BN_EPS)
    bias = beta_p - mean * scale          # padded channels: scale = 0, bias = 0 -> output stays 0

    ew_bytes = 4 * (2 * N * ho * wo * cp_out + 2 * cp_out)
    out = pl.pallas_call(
        _bn_relu_kernel,
        grid=(N, ht),
        in_specs=[
            pl.BlockSpec((None, th, wo, cp_out), lambda n, i: (n, i, 0, 0)),
            pl.BlockSpec((1, cp_out), lambda n, i: (0, 0)),
            pl.BlockSpec((1, cp_out), lambda n, i: (0, 0)),
        ],
        out_specs=pl.BlockSpec((None, th, wo, cp_out), lambda n, i: (n, i, 0, 0)),
        out_shape=jax.ShapeDtypeStruct((N, ho, wo, cp_out), jnp.float32),
        compiler_params=pltpu.CompilerParams(
            dimension_semantics=("parallel", "parallel"),
            vmem_limit_bytes=32 * 1024 * 1024,
        ),
        cost_estimate=pl.CostEstimate(flops=2 * N * ho * wo * cp_out, transcendentals=0,
                                      bytes_accessed=ew_bytes),
    )(y, scale.reshape(1, cp_out), bias.reshape(1, cp_out))
    return out


def basic_block_forward(x_nchw, params, *, stride=1):
    """Matches _BasicBlock.forward: conv1(pad=0)->bn1->relu -> conv2(pad=1)->bn2->relu.

    Public API is NCHW f32 (PyTorch layout); internally everything runs
    channels-last with channels zero-padded to 128 (padding sliced off at the end).
    """
    # TODO(synk): self.se (SELayer) and self.short(c)ut are built in __init__ but never
    # used in forward, so they are intentionally not translated.
    N, c_in, H, W = x_nchw.shape
    cp_in = _round_up(c_in, LANE)
    x = jnp.transpose(x_nchw, (0, 2, 3, 1))
    x = jnp.pad(x, ((0, 0), (0, 0), (0, 0), (0, cp_in - c_in)))

    a1 = conv_bn_relu_nhwc(x, params["w1"], params["g1"], params["b1"],
                           stride=stride, padding=0)
    a2 = conv_bn_relu_nhwc(a1, params["w2"], params["g2"], params["b2"],
                           stride=1, padding=1)

    c_out = params["w2"].shape[0]
    return jnp.transpose(a2[..., :c_out], (0, 3, 1, 2))


# -----------------------------------------------------------------------------
# Pure-JAX reference for verification.
# -----------------------------------------------------------------------------
def _ref_conv_bn_relu(x, w, g, b, *, stride, padding):
    y = jax.lax.conv_general_dilated(
        x, w, (stride, stride), [(padding, padding), (padding, padding)],
        dimension_numbers=("NCHW", "OIHW", "NCHW"))
    mean = y.mean(axis=(0, 2, 3), keepdims=True)
    var = jnp.square(y - mean).mean(axis=(0, 2, 3), keepdims=True)
    y = (y - mean) * jax.lax.rsqrt(var + BN_EPS)
    y = y * g.reshape(1, -1, 1, 1) + b.reshape(1, -1, 1, 1)
    return jnp.maximum(y, 0.0)


def _ref_forward(x, params, *, stride=1):
    out = _ref_conv_bn_relu(x, params["w1"], params["g1"], params["b1"],
                            stride=stride, padding=0)
    out = _ref_conv_bn_relu(out, params["w2"], params["g2"], params["b2"],
                            stride=1, padding=1)
    return out


if __name__ == "__main__":
    key = jax.random.PRNGKey(0)
    inplanes, planes, stride = 4, 8, 1
    N, H, W = 2, 16, 16

    keys = jax.random.split(key, 7)
    x = jax.random.normal(keys[0], (N, inplanes, H, W), jnp.float32)

    params = {
        "w1": 0.1 * jax.random.normal(keys[1], (planes, inplanes, 3, 3), jnp.float32),
        "g1": 1.0 + 0.1 * jax.random.normal(keys[2], (planes,), jnp.float32),
        "b1": 0.1 * jax.random.normal(keys[3], (planes,), jnp.float32),
        "w2": 0.1 * jax.random.normal(keys[4], (planes, planes, 3, 3), jnp.float32),
        "g2": 1.0 + 0.1 * jax.random.normal(keys[5], (planes,), jnp.float32),
        "b2": 0.1 * jax.random.normal(keys[6], (planes,), jnp.float32),
    }

    fwd = jax.jit(functools.partial(basic_block_forward, stride=stride))
    out = jax.block_until_ready(fwd(x, params))

    # Shape check: conv1 (no padding) shrinks 16 -> 14, conv2 (pad=1) keeps 14.
    assert out.shape == (N, planes, H - 2, W - 2), out.shape

    # Numerical check against pure-JAX reference.
    ref = jax.block_until_ready(_ref_forward(x, params, stride=stride))
    np.testing.assert_allclose(np.asarray(out), np.asarray(ref), atol=2e-3, rtol=2e-3)

    print("KERNEL_OK")
</pallas_src>

<mosaic_0001>
module attributes {stable_mosaic.version = 11 : i64} {
  func.func @_conv_stats_kernel(%arg0: i32, %arg1: i32, %arg2: memref<1x16x16x128xf32, #tpu.memory_space<vmem>>, %arg3: memref<9x128x128xf32, #tpu.memory_space<vmem>>, %arg4: memref<1x7x14x128xf32, #tpu.memory_space<vmem>>, %arg5: memref<1x2x128xf32, #tpu.memory_space<vmem>>) attributes {dimension_semantics = [#tpu.dimension_semantics<parallel>, #tpu.dimension_semantics<arbitrary>], iteration_bounds = array<i64: 2, 2>, scalar_prefetch = 0 : i64, scratch_operands = 0 : i64, tpu.core_type = #tpu.core_type<tc>, window_params = [{transform_indices = @transform_0, window_bounds = array<i64: 1, 16, 16, 128>}, {pipeline_mode = #tpu.pipeline_mode<synchronous>, transform_indices = @transform_1, window_bounds = array<i64: 9, 128, 128>}, {transform_indices = @transform_2, window_bounds = array<i64: 1, 7, 14, 128>}, {transform_indices = @transform_3, window_bounds = array<i64: 1, 2, 128>}]} {
    %c7_i32 = arith.constant 7 : i32
    %0 = arith.muli %arg1, %c7_i32 : i32
    %cst = arith.constant 0.000000e+00 : f32
    %1 = vector.broadcast %cst : f32 to vector<98x128xf32>
    %c0_i32 = arith.constant 0 : i32
    %2 = arith.addi %0, %c0_i32 : i32
    %c0 = arith.constant 0 : index
    %3 = arith.index_cast %2 : i32 to index
    %c0_0 = arith.constant 0 : index
    %c0_1 = arith.constant 0 : index
    %4 = vector.load %arg2[%c0, %3, %c0_0, %c0_1] : memref<1x16x16x128xf32, #tpu.memory_space<vmem>>, vector<1x7x14x128xf32>
    %5 = vector.shape_cast %4 : vector<1x7x14x128xf32> to vector<7x14x128xf32>
    %6 = vector.shape_cast %5 : vector<7x14x128xf32> to vector<98x128xf32>
    %c0_2 = arith.constant 0 : index
    %c0_3 = arith.constant 0 : index
    %c0_4 = arith.constant 0 : index
    %7 = vector.load %arg3[%c0_2, %c0_3, %c0_4] : memref<9x128x128xf32, #tpu.memory_space<vmem>>, vector<1x128x128xf32>
    %8 = vector.shape_cast %7 : vector<1x128x128xf32> to vector<128x128xf32>
    %cst_5 = arith.constant dense<0.000000e+00> : vector<98x128xf32>
    %9 = tpu.matmul %6, %8, %cst_5 {dimension_numbers = #tpu.dot_dimension_numbers<[1], [0], [0], [1], [0, 0, 1, 1], [], []>} : vector<98x128xf32>, vector<128x128xf32>, vector<98x128xf32> -> vector<98x128xf32>
    %10 = arith.addf %1, %9 : vector<98x128xf32>
    %c0_i32_6 = arith.constant 0 : i32
    %11 = arith.addi %0, %c0_i32_6 : i32
    %c0_7 = arith.constant 0 : index
    %12 = arith.index_cast %11 : i32 to index
    %c1 = arith.constant 1 : index
    %c0_8 = arith.constant 0 : index
    %13 = vector.load %arg2[%c0_7, %12, %c1, %c0_8] : memref<1x16x16x128xf32, #tpu.memory_space<vmem>>, vector<1x7x14x128xf32>
    %14 = vector.shape_cast %13 : vector<1x7x14x128xf32> to vector<7x14x128xf32>
    %15 = vector.shape_cast %14 : vector<7x14x128xf32> to vector<98x128xf32>
    %c1_9 = arith.constant 1 : index
    %c0_10 = arith.constant 0 : index
    %c0_11 = arith.constant 0 : index
    %16 = vector.load %arg3[%c1_9, %c0_10, %c0_11] : memref<9x128x128xf32, #tpu.memory_space<vmem>>, vector<1x128x128xf32>
    %17 = vector.shape_cast %16 : vector<1x128x128xf32> to vector<128x128xf32>
    %cst_12 = arith.constant dense<0.000000e+00> : vector<98x128xf32>
    %18 = tpu.matmul %15, %17, %cst_12 {dimension_numbers = #tpu.dot_dimension_numbers<[1], [0], [0], [1], [0, 0, 1, 1], [], []>} : vector<98x128xf32>, vector<128x128xf32>, vector<98x128xf32> -> vector<98x128xf32>
    %19 = arith.addf %10, %18 : vector<98x128xf32>
    %c0_i32_13 = arith.constant 0 : i32
    %20 = arith.addi %0, %c0_i32_13 : i32
    %c0_14 = arith.constant 0 : index
    %21 = arith.index_cast %20 : i32 to index
    %c2 = arith.constant 2 : index
    %c0_15 = arith.constant 0 : index
    %22 = vector.load %arg2[%c0_14, %21, %c2, %c0_15] : memref<1x16x16x128xf32, #tpu.memory_space<vmem>>, vector<1x7x14x128xf32>
    %23 = vector.shape_cast %22 : vector<1x7x14x128xf32> to vector<7x14x128xf32>
    %24 = vector.shape_cast %23 : vector<7x14x128xf32> to vector<98x128xf32>
    %c2_16 = arith.constant 2 : index
    %c0_17 = arith.constant 0 : index
    %c0_18 = arith.constant 0 : index
    %25 = vector.load %arg3[%c2_16, %c0_17, %c0_18] : memref<9x128x128xf32, #tpu.memory_space<vmem>>, vector<1x128x128xf32>
    %26 = vector.shape_cast %25 : vector<1x128x128xf32> to vector<128x128xf32>
    %cst_19 = arith.constant dense<0.000000e+00> : vector<98x128xf32>
    %27 = tpu.matmul %24, %26, %cst_19 {dimension_numbers = #tpu.dot_dimension_numbers<[1], [0], [0], [1], [0, 0, 1, 1], [], []>} : vector<98x128xf32>, vector<128x128xf32>, vector<98x128xf32> -> vector<98x128xf32>
    %28 = arith.addf %19, %27 : vector<98x128xf32>
    %c1_i32 = arith.constant 1 : i32
    %29 = arith.addi %0, %c1_i32 : i32
    %c0_20 = arith.constant 0 : index
    %30 = arith.index_cast %29 : i32 to index
    %c0_21 = arith.constant 0 : index
    %c0_22 = arith.constant 0 : index
    %31 = vector.load %arg2[%c0_20, %30, %c0_21, %c0_22] : memref<1x16x16x128xf32, #tpu.memory_space<vmem>>, vector<1x7x14x128xf32>
    %32 = vector.shape_cast %31 : vector<1x7x14x128xf32> to vector<7x14x128xf32>
    %33 = vector.shape_cast %32 : vector<7x14x128xf32> to vector<98x128xf32>
    %c3 = arith.constant 3 : index
    %c0_23 = arith.constant 0 : index
    %c0_24 = arith.constant 0 : index
    %34 = vector.load %arg3[%c3, %c0_23, %c0_24] : memref<9x128x128xf32, #tpu.memory_space<vmem>>, vector<1x128x128xf32>
    %35 = vector.shape_cast %34 : vector<1x128x128xf32> to vector<128x128xf32>
    %cst_25 = arith.constant dense<0.000000e+00> : vector<98x128xf32>
    %36 = tpu.matmul %33, %35, %cst_25 {dimension_numbers = #tpu.dot_dimension_numbers<[1], [0], [0], [1], [0, 0, 1, 1], [], []>} : vector<98x128xf32>, vector<128x128xf32>, vector<98x128xf32> -> vector<98x128xf32>
    %37 = arith.addf %28, %36 : vector<98x128xf32>
    %c1_i32_26 = arith.constant 1 : i32
    %38 = arith.addi %0, %c1_i32_26 : i32
    %c0_27 = arith.constant 0 : index
    %39 = arith.index_cast %38 : i32 to index
    %c1_28 = arith.constant 1 : index
    %c0_29 = arith.constant 0 : index
    %40 = vector.load %arg2[%c0_27, %39, %c1_28, %c0_29] : memref<1x16x16x128xf32, #tpu.memory_space<vmem>>, vector<1x7x14x128xf32>
    %41 = vector.shape_cast %40 : vector<1x7x14x128xf32> to vector<7x14x128xf32>
    %42 = vector.shape_cast %41 : vector<7x14x128xf32> to vector<98x128xf32>
    %c4 = arith.constant 4 : index
    %c0_30 = arith.constant 0 : index
    %c0_31 = arith.constant 0 : index
    %43 = vector.load %arg3[%c4, %c0_30, %c0_31] : memref<9x128x128xf32, #tpu.memory_space<vmem>>, vector<1x128x128xf32>
    %44 = vector.shape_cast %43 : vector<1x128x128xf32> to vector<128x128xf32>
    %cst_32 = arith.constant dense<0.000000e+00> : vector<98x128xf32>
    %45 = tpu.matmul %42, %44, %cst_32 {dimension_numbers = #tpu.dot_dimension_numbers<[1], [0], [0], [1], [0, 0, 1, 1], [], []>} : vector<98x128xf32>, vector<128x128xf32>, vector<98x128xf32> -> vector<98x128xf32>
    %46 = arith.addf %37, %45 : vector<98x128xf32>
    %c1_i32_33 = arith.constant 1 : i32
    %47 = arith.addi %0, %c1_i32_33 : i32
    %c0_34 = arith.constant 0 : index
    %48 = arith.index_cast %47 : i32 to index
    %c2_35 = arith.constant 2 : index
    %c0_36 = arith.constant 0 : index
    %49 = vector.load %arg2[%c0_34, %48, %c2_35, %c0_36] : memref<1x16x16x128xf32, #tpu.memory_space<vmem>>, vector<1x7x14x128xf32>
    %50 = vector.shape_cast %49 : vector<1x7x14x128xf32> to vector<7x14x128xf32>
    %51 = vector.shape_cast %50 : vector<7x14x128xf32> to vector<98x128xf32>
    %c5 = arith.constant 5 : index
    %c0_37 = arith.constant 0 : index
    %c0_38 = arith.constant 0 : index
    %52 = vector.load %arg3[%c5, %c0_37, %c0_38] : memref<9x128x128xf32, #tpu.memory_space<vmem>>, vector<1x128x128xf32>
    %53 = vector.shape_cast %52 : vector<1x128x128xf32> to vector<128x128xf32>
    %cst_39 = arith.constant dense<0.000000e+00> : vector<98x128xf32>
    %54 = tpu.matmul %51, %53, %cst_39 {dimension_numbers = #tpu.dot_dimension_numbers<[1], [0], [0], [1], [0, 0, 1, 1], [], []>} : vector<98x128xf32>, vector<128x128xf32>, vector<98x128xf32> -> vector<98x128xf32>
    %55 = arith.addf %46, %54 : vector<98x128xf32>
    %c2_i32 = arith.constant 2 : i32
    %56 = arith.addi %0, %c2_i32 : i32
    %c0_40 = arith.constant 0 : index
    %57 = arith.index_cast %56 : i32 to index
    %c0_41 = arith.constant 0 : index
    %c0_42 = arith.constant 0 : index
    %58 = vector.load %arg2[%c0_40, %57, %c0_41, %c0_42] : memref<1x16x16x128xf32, #tpu.memory_space<vmem>>, vector<1x7x14x128xf32>
    %59 = vector.shape_cast %58 : vector<1x7x14x128xf32> to vector<7x14x128xf32>
    %60 = vector.shape_cast %59 : vector<7x14x128xf32> to vector<98x128xf32>
    %c6 = arith.constant 6 : index
    %c0_43 = arith.constant 0 : index
    %c0_44 = arith.constant 0 : index
    %61 = vector.load %arg3[%c6, %c0_43, %c0_44] : memref<9x128x128xf32, #tpu.memory_space<vmem>>, vector<1x128x128xf32>
    %62 = vector.shape_cast %61 : vector<1x128x128xf32> to vector<128x128xf32>
    %cst_45 = arith.constant dense<0.000000e+00> : vector<98x128xf32>
    %63 = tpu.matmul %60, %62, %cst_45 {dimension_numbers = #tpu.dot_dimension_numbers<[1], [0], [0], [1], [0, 0, 1, 1], [], []>} : vector<98x128xf32>, vector<128x128xf32>, vector<98x128xf32> -> vector<98x128xf32>
    %64 = arith.addf %55, %63 : vector<98x128xf32>
    %c2_i32_46 = arith.constant 2 : i32
    %65 = arith.addi %0, %c2_i32_46 : i32
    %c0_47 = arith.constant 0 : index
    %66 = arith.index_cast %65 : i32 to index
    %c1_48 = arith.constant 1 : index
    %c0_49 = arith.constant 0 : index
    %67 = vector.load %arg2[%c0_47, %66, %c1_48, %c0_49] : memref<1x16x16x128xf32, #tpu.memory_space<vmem>>, vector<1x7x14x128xf32>
    %68 = vector.shape_cast %67 : vector<1x7x14x128xf32> to vector<7x14x128xf32>
    %69 = vector.shape_cast %68 : vector<7x14x128xf32> to vector<98x128xf32>
    %c7 = arith.constant 7 : index
    %c0_50 = arith.constant 0 : index
    %c0_51 = arith.constant 0 : index
    %70 = vector.load %arg3[%c7, %c0_50, %c0_51] : memref<9x128x128xf32, #tpu.memory_space<vmem>>, vector<1x128x128xf32>
    %71 = vector.shape_cast %70 : vector<1x128x128xf32> to vector<128x128xf32>
    %cst_52 = arith.constant dense<0.000000e+00> : vector<98x128xf32>
    %72 = tpu.matmul %69, %71, %cst_52 {dimension_numbers = #tpu.dot_dimension_numbers<[1], [0], [0], [1], [0, 0, 1, 1], [], []>} : vector<98x128xf32>, vector<128x128xf32>, vector<98x128xf32> -> vector<98x128xf32>
    %73 = arith.addf %64, %72 : vector<98x128xf32>
    %c2_i32_53 = arith.constant 2 : i32
    %74 = arith.addi %0, %c2_i32_53 : i32
    %c0_54 = arith.constant 0 : index
    %75 = arith.index_cast %74 : i32 to index
    %c2_55 = arith.constant 2 : index
    %c0_56 = arith.constant 0 : index
    %76 = vector.load %arg2[%c0_54, %75, %c2_55, %c0_56] : memref<1x16x16x128xf32, #tpu.memory_space<vmem>>, vector<1x7x14x128xf32>
    %77 = vector.shape_cast %76 : vector<1x7x14x128xf32> to vector<7x14x128xf32>
    %78 = vector.shape_cast %77 : vector<7x14x128xf32> to vector<98x128xf32>
    %c8 = arith.constant 8 : index
    %c0_57 = arith.constant 0 : index
    %c0_58 = arith.constant 0 : index
    %79 = vector.load %arg3[%c8, %c0_57, %c0_58] : memref<9x128x128xf32, #tpu.memory_space<vmem>>, vector<1x128x128xf32>
    %80 = vector.shape_cast %79 : vector<1x128x128xf32> to vector<128x128xf32>
    %cst_59 = arith.constant dense<0.000000e+00> : vector<98x128xf32>
    %81 = tpu.matmul %78, %80, %cst_59 {dimension_numbers = #tpu.dot_dimension_numbers<[1], [0], [0], [1], [0, 0, 1, 1], [], []>} : vector<98x128xf32>, vector<128x128xf32>, vector<98x128xf32> -> vector<98x128xf32>
    %82 = arith.addf %73, %81 : vector<98x128xf32>
    %83 = vector.shape_cast %82 : vector<98x128xf32> to vector<7x14x128xf32>
    %c0_60 = arith.constant 0 : index
    %c0_61 = arith.constant 0 : index
    %c0_62 = arith.constant 0 : index
    %c0_63 = arith.constant 0 : index
    %84 = vector.load %arg4[%c0_60, %c0_61, %c0_62, %c0_63] : memref<1x7x14x128xf32, #tpu.memory_space<vmem>>, vector<1x7x14x128xf32>
    %85 = vector.shape_cast %84 : vector<1x7x14x128xf32> to vector<7x14x128xf32>
    %86 = vector.shape_cast %83 : vector<7x14x128xf32> to vector<1x7x14x128xf32>
    tpu.vector_store %arg4[%c0_60, %c0_61, %c0_62, %c0_63], %86 {strides = array<i32>} : memref<1x7x14x128xf32, #tpu.memory_space<vmem>>, vector<1x7x14x128xf32>,
    %cst_64 = arith.constant dense<0.000000e+00> : vector<128xf32>
    %87 = vector.multi_reduction <add>, %82, %cst_64 [0] : vector<98x128xf32> to vector<128xf32>
    %88 = vector.shape_cast %87 : vector<128xf32> to vector<1x128xf32>
    %89 = arith.mulf %82, %82 : vector<98x128xf32>
    %cst_65 = arith.constant dense<0.000000e+00> : vector<128xf32>
    %90 = vector.multi_reduction <add>, %89, %cst_65 [0] : vector<98x128xf32> to vector<128xf32>
    %91 = vector.shape_cast %90 : vector<128xf32> to vector<1x128xf32>
    %92 = tpu.concatenate %88, %91 in 0 : vector<1x128xf32>, vector<1x128xf32> -> vector<2x128xf32>
    %c0_i32_66 = arith.constant 0 : i32
    %93 = arith.cmpi eq, %arg1, %c0_i32_66 : i32
    %94 = arith.extui %93 : i1 to i32
    %c0_i32_67 = arith.constant 0 : i32
    %95 = arith.cmpi ne, %94, %c0_i32_67 : i32
    scf.if %95 {
      %cst_74 = arith.constant 0.000000e+00 : f32
      %102 = vector.broadcast %cst_74 : f32 to vector<2x128xf32>
      %c0_75 = arith.constant 0 : index
      %c0_76 = arith.constant 0 : index
      %c0_77 = arith.constant 0 : index
      %103 = vector.load %arg5[%c0_75, %c0_76, %c0_77] : memref<1x2x128xf32, #tpu.memory_space<vmem>>, vector<1x2x128xf32>
      %104 = vector.shape_cast %103 : vector<1x2x128xf32> to vector<2x128xf32>
      %105 = vector.shape_cast %102 : vector<2x128xf32> to vector<1x2x128xf32>
      tpu.vector_store %arg5[%c0_75, %c0_76, %c0_77], %105 {strides = array<i32>} : memref<1x2x128xf32, #tpu.memory_space<vmem>>, vector<1x2x128xf32>,
    } else {
    }
    %c0_68 = arith.constant 0 : index
    %c0_69 = arith.constant 0 : index
    %c0_70 = arith.constant 0 : index
    %96 = vector.load %arg5[%c0_68, %c0_69, %c0_70] : memref<1x2x128xf32, #tpu.memory_space<vmem>>, vector<1x2x128xf32>
    %97 = vector.shape_cast %96 : vector<1x2x128xf32> to vector<2x128xf32>
    %98 = arith.addf %97, %92 : vector<2x128xf32>
    %c0_71 = arith.constant 0 : index
    %c0_72 = arith.constant 0 : index
    %c0_73 = arith.constant 0 : index
    %99 = vector.load %arg5[%c0_71, %c0_72, %c0_73] : memref<1x2x128xf32, #tpu.memory_space<vmem>>, vector<1x2x128xf32>
    %100 = vector.shape_cast %99 : vector<1x2x128xf32> to vector<2x128xf32>
    %101 = vector.shape_cast %98 : vector<2x128xf32> to vector<1x2x128xf32>
    tpu.vector_store %arg5[%c0_71, %c0_72, %c0_73], %101 {strides = array<i32>} : memref<1x2x128xf32, #tpu.memory_space<vmem>>, vector<1x2x128xf32>,
    return
  }
  func.func @transform_0(%arg0: i32, %arg1: i32) -> (i32, i32, i32, i32) {
    %c0_i32 = arith.constant 0 : i32
    %c0_i32_0 = arith.constant 0 : i32
    %c0_i32_1 = arith.constant 0 : i32
    %c0_i32_2 = arith.constant 0 : i32
    return %arg0, %c0_i32, %c0_i32_0, %c0_i32_1 : i32, i32, i32, i32
  }
  func.func @transform_1(%arg0: i32, %arg1: i32) -> (i32, i32, i32) {
    %c0_i32 = arith.constant 0 : i32
    %c0_i32_0 = arith.constant 0 : i32
    %c0_i32_1 = arith.constant 0 : i32
    %c0_i32_2 = arith.constant 0 : i32
    return %c0_i32, %c0_i32_0, %c0_i32_1 : i32, i32, i32
  }
  func.func @transform_2(%arg0: i32, %arg1: i32) -> (i32, i32, i32, i32) {
    %c0_i32 = arith.constant 0 : i32
    %c0_i32_0 = arith.constant 0 : i32
    %c0_i32_1 = arith.constant 0 : i32
    return %arg0, %arg1, %c0_i32, %c0_i32_0 : i32, i32, i32, i32
  }
  func.func @transform_3(%arg0: i32, %arg1: i32) -> (i32, i32, i32) {
    %c0_i32 = arith.constant 0 : i32
    %c0_i32_0 = arith.constant 0 : i32
    %c0_i32_1 = arith.constant 0 : i32
    return %arg0, %c0_i32, %c0_i32_0 : i32, i32, i32
  }
}

module attributes {stable_mosaic.version = 11 : i64} {
  func.func @_bn_relu_kernel(%arg0: i32, %arg1: i32, %arg2: memref<1x7x14x128xf32, #tpu.memory_space<vmem>>, %arg3: memref<1x128xf32, #tpu.memory_space<vmem>>, %arg4: memref<1x128xf32, #tpu.memory_space<vmem>>, %arg5: memref<1x7x14x128xf32, #tpu.memory_space<vmem>>) attributes {dimension_semantics = [#tpu.dimension_semantics<parallel>, #tpu.dimension_semantics<parallel>], iteration_bounds = array<i64: 2, 2>, scalar_prefetch = 0 : i64, scratch_operands = 0 : i64, tpu.core_type = #tpu.core_type<tc>, window_params = [{transform_indices = @transform_0, window_bounds = array<i64: 1, 7, 14, 128>}, {pipeline_mode = #tpu.pipeline_mode<synchronous>, transform_indices = @transform_1, window_bounds = array<i64: 1, 128>}, {pipeline_mode = #tpu.pipeline_mode<synchronous>, transform_indices = @transform_2, window_bounds = array<i64: 1, 128>}, {transform_indices = @transform_3, window_bounds = array<i64: 1, 7, 14, 128>}]} {
    %c0 = arith.constant 0 : index
    %c0_0 = arith.constant 0 : index
    %c0_1 = arith.constant 0 : index
    %c0_2 = arith.constant 0 : index
    %0 = vector.load %arg2[%c0, %c0_0, %c0_1, %c0_2] : memref<1x7x14x128xf32, #tpu.memory_space<vmem>>, vector<1x7x14x128xf32>
    %1 = vector.shape_cast %0 : vector<1x7x14x128xf32> to vector<7x14x128xf32>
    %c0_3 = arith.constant 0 : index
    %c0_4 = arith.constant 0 : index
    %2 = vector.load %arg3[%c0_3, %c0_4] : memref<1x128xf32, #tpu.memory_space<vmem>>, vector<1x128xf32>
    %3 = vector.shape_cast %2 : vector<1x128xf32> to vector<1x1x128xf32>
    %4 = vector.broadcast %3 : vector<1x1x128xf32> to vector<7x14x128xf32>
    %5 = arith.mulf %1, %4 : vector<7x14x128xf32>
    %c0_5 = arith.constant 0 : index
    %c0_6 = arith.constant 0 : index
    %6 = vector.load %arg4[%c0_5, %c0_6] : memref<1x128xf32, #tpu.memory_space<vmem>>, vector<1x128xf32>
    %7 = vector.shape_cast %6 : vector<1x128xf32> to vector<1x1x128xf32>
    %8 = vector.broadcast %7 : vector<1x1x128xf32> to vector<7x14x128xf32>
    %9 = arith.addf %5, %8 : vector<7x14x128xf32>
    %cst = arith.constant 0.000000e+00 : f32
    %10 = vector.broadcast %cst : f32 to vector<7x14x128xf32>
    %11 = arith.maximumf %9, %10 : vector<7x14x128xf32>
    %c0_7 = arith.constant 0 : index
    %c0_8 = arith.constant 0 : index
    %c0_9 = arith.constant 0 : index
    %c0_10 = arith.constant 0 : index
    %12 = vector.load %arg5[%c0_7, %c0_8, %c0_9, %c0_10] : memref<1x7x14x128xf32, #tpu.memory_space<vmem>>, vector<1x7x14x128xf32>
    %13 = vector.shape_cast %12 : vector<1x7x14x128xf32> to vector<7x14x128xf32>
    %14 = vector.shape_cast %11 : vector<7x14x128xf32> to vector<1x7x14x128xf32>
    tpu.vector_store %arg5[%c0_7, %c0_8, %c0_9, %c0_10], %14 {strides = array<i32>} : memref<1x7x14x128xf32, #tpu.memory_space<vmem>>, vector<1x7x14x128xf32>,
    return
  }
  func.func @transform_0(%arg0: i32, %arg1: i32) -> (i32, i32, i32, i32) {
    %c0_i32 = arith.constant 0 : i32
    %c0_i32_0 = arith.constant 0 : i32
    %c0_i32_1 = arith.constant 0 : i32
    return %arg0, %arg1, %c0_i32, %c0_i32_0 : i32, i32, i32, i32
  }
  func.func @transform_1(%arg0: i32, %arg1: i32) -> (i32, i32) {
    %c0_i32 = arith.constant 0 : i32
    %c0_i32_0 = arith.constant 0 : i32
    %c0_i32_1 = arith.constant 0 : i32
    return %c0_i32, %c0_i32_0 : i32, i32
  }
  func.func @transform_2(%arg0: i32, %arg1: i32) -> (i32, i32) {
    %c0_i32 = arith.constant 0 : i32
    %c0_i32_0 = arith.constant 0 : i32
    %c0_i32_1 = arith.constant 0 : i32
    return %c0_i32, %c0_i32_0 : i32, i32
  }
  func.func @transform_3(%arg0: i32, %arg1: i32) -> (i32, i32, i32, i32) {
    %c0_i32 = arith.constant 0 : i32
    %c0_i32_0 = arith.constant 0 : i32
    %c0_i32_1 = arith.constant 0 : i32
    return %arg0, %arg1, %c0_i32, %c0_i32_0 : i32, i32, i32, i32
  }
}

</mosaic_0001>

<bundles_post_ra>
// kernel: basic_block_forward.5
= control target key start
LH: loop header
LB: loop body
LE: loop exit
PB: predicated region body
PF: predicated region fallthrough
CT: control target
= control target key end

     0   :  { %s506_s12 = smov 0   ;;  %s508_s13 = smov 0   ;;  %s595_s0 = inlined_call_operand.vmem [shape: f32[2,14,14,128], index: 0, kind: input, shape index: {}]   ;;  %s596_s1 = inlined_call_operand.vmem [shape: f32[1,128], index: 1, kind: input, shape index: {}]   ;;  %s597_s2 = inlined_call_operand.vmem [shape: f32[1,128], index: 2, kind: input, shape index: {}]   ;;  %s598_s3 = inlined_call_operand.vmem [shape: f32[2,14,14,128], index: 3, kind: output, shape index: {}]  }
   0x1   :  { %s510_s14 = smov 0   ;;  %s512_s15 = smov 0  }
   0x2   :  { %s514_s16 = smov 0  }
   0x3 LB: > { %s22_s17 = sadd.s32 1, %s476_s14  ;;  %s25_s18 = sadd.s32 1, %s480_s15  ;;  %s484_s16 = sphi %s514_s16, %s13_s16   ;;  %s480_s15 = sphi %s512_s15, %s602_s15   ;;  %s476_s14 = sphi %s510_s14, %s601_s14   ;;  %s472_s13 = sphi %s508_s13, %s600_s13   ;;  %s468_s12 = sphi %s506_s12, %s599_s12  }
   0x4   : > { %p23_p0 = scmp.ge.s32.totalorder %s22_s17, 2  ;;  %p396_p1 = scmp.ge.s32.totalorder %s484_s16, 1 }
   0x5   : > { %p159_p2 = scmp.lt.s32.totalorder %s484_s16, 5 }
   0x6   : > { %s604_s17 = smov (%p23_p0, %s22_s17), 0  ;;  %s606_s18 = smov (!%p23_p0, %s25_s18), %s480_s15 }
   0x7   : > { %p160_p3 = pnand %p396_p1, %p159_p2  ;;  %p27_p4 = scmp.ge.s32.totalorder %s606_s18, 2 }
   0x8   : > { %s193_s19 = smul.u32 (!%p160_p3), 7, %s468_s12  ;;  %p194_p5 = scmp.lt.s32.totalorder (!%p160_p3), %s472_s13, 1 }
   0x9   : > { %s608_s18 = smov (%p27_p4, %s606_s18), 0  ;;  %163 = sbr.rel (%p160_p3) target bundleno = 41 (0x29), region = 32 }
   0xa   : > { %p196_p6 = scmp.lt.s32.totalorder (!%p160_p3), %s193_s19, 13 }
   0xe   : > { %s610_s13 = smov (!%p194_p5, %s472_s13), 1  ;;  %s612_s19 = smov (!%p196_p6, %s193_s19), 13  ;;  %v444_v0 = vld [vmem:[%s596_s1] ss:$0 sm:$0xff] }
   0xf   : > { %s403_s20 = smul.u32 28, %s610_s13  ;;  %s397_s21 = sshll.u32 %s612_s19, 1  ;;  %v445_v1 = vld [vmem:[%s597_s2] ss:$0 sm:$0xff] }
  0x11   : > { %s200_s22 = sadd.s32 %s403_s20, %s397_s21 }
  0x12   : > { %s398_s25 = sshll.u32 %s200_s22, 3 }
  0x13   : > { %s542_s28 = scalar_lea.vmem %s595_s0, %s398_s25  ;;  %s559_s6 = scalar_lea.vmem %s598_s3, %s398_s25 }
  0x14   : > { %v215_v2 = vld [vmem:[%s542_s28] sm:$0xff]  ;;  %v216_v3 = vld [vmem:[%s542_s28 + $0x8] sm:$0x3f]  ;;  %v217_v4 = vld [vmem:[%s542_s28 + $0x10] sm:$0xff] }
  0x15   : > { %v233_v5 = vmul.f32 %v444_v0, %v215_v2  ;;  %v234_v6 = vmul.f32 %v444_v0, %v216_v3  ;;  %v235_v7 = vmul.f32 %v444_v0, %v217_v4  ;;  %v218_v8 = vld [vmem:[%s542_s28 + $0x18] sm:$0x3f]  ;;  %v219_v9 = vld [vmem:[%s542_s28 + $0x20] sm:$0xff]  ;;  %v220_v10 = vld [vmem:[%s542_s28 + $0x28] sm:$0x3f] }
  0x16   : > { %v236_v11 = vmul.f32 %v444_v0, %v218_v8  ;;  %v237_v12 = vmul.f32 %v444_v0, %v219_v9  ;;  %v238_v13 = vmul.f32 %v444_v0, %v220_v10  ;;  %v221_v14 = vld [vmem:[%s542_s28 + $0x30] sm:$0xff]  ;;  %v222_v15 = vld [vmem:[%s542_s28 + $0x38] sm:$0x3f]  ;;  %v223_v20 = vld [vmem:[%s542_s28 + $0x40] sm:$0xff] }
  0x17   : > { %v251_v16 = vadd.f32 %v445_v1, %v233_v5  ;;  %v252_v17 = vadd.f32 %v445_v1, %v234_v6  ;;  %v253_v18 = vadd.f32 %v445_v1, %v235_v7  ;;  %v239_v19 = vmul.f32 %v444_v0, %v221_v14  ;;  %v224_v25 = vld [vmem:[%s542_s28 + $0x48] sm:$0x3f]  ;;  %v225_v26 = vld [vmem:[%s542_s28 + $0x50] sm:$0xff]  ;;  %v226_v27 = vld [vmem:[%s542_s28 + $0x58] sm:$0x3f] }
  0x18   : > { %v254_v21 = vadd.f32 %v445_v1, %v236_v11  ;;  %v255_v22 = vadd.f32 %v445_v1, %v237_v12  ;;  %v256_v23 = vadd.f32 %v445_v1, %v238_v13  ;;  %v240_v24 = vmul.f32 %v444_v0, %v222_v15  ;;  %v227_v32 = vld [vmem:[%s542_s28 + $0x60] sm:$0xff]  ;;  %v228_v33 = vld [vmem:[%s542_s28 + $0x68] sm:$0x3f] }
  0x19   : > { %v265_v28 = vmax.f32 %v251_v16, 0.0  ;;  %v266_v29 = vmax.f32 %v252_v17, 0.0  ;;  %v267_v30 = vmax.f32 %v253_v18, 0.0  ;;  %v257_v31 = vadd.f32 %v445_v1, %v239_v19 }
  0x1a   : > { %v268_v34 = vmax.f32 %v254_v21, 0.0  ;;  %v258_v35 = vadd.f32 %v445_v1, %v240_v24  ;;  %v269_v36 = vmax.f32 %v255_v22, 0.0  ;;  %v241_v37 = vmul.f32 %v444_v0, %v223_v20 }
  0x1b   : > { %279 = vst [vmem:[%s559_s6] sm:$0xff] %v265_v28  ;;  %v242_v38 = vmul.f32 %v444_v0, %v224_v25  ;;  %v243_v39 = vmul.f32 %v444_v0, %v225_v26  ;;  %v270_v40 = vmax.f32 %v256_v23, 0.0  ;;  %v244_v41 = vmul.f32 %v444_v0, %v226_v27 }
  0x1c   : > { %280 = vst [vmem:[%s559_s6 + $0x8] sm:$0x3f] %v266_v29  ;;  %v245_v42 = vmul.f32 %v444_v0, %v227_v32  ;;  %v246_v43 = vmul.f32 %v444_v0, %v228_v33  ;;  %v271_v44 = vmax.f32 %v257_v31, 0.0  ;;  %v259_v45 = vadd.f32 %v445_v1, %v241_v37 }
  0x1d   : > { %281 = vst [vmem:[%s559_s6 + $0x10] sm:$0xff] %v267_v30  ;;  %v260_v46 = vadd.f32 %v445_v1, %v242_v38  ;;  %v261_v47 = vadd.f32 %v445_v1, %v243_v39  ;;  %v272_v48 = vmax.f32 %v258_v35, 0.0  ;;  %v262_v49 = vadd.f32 %v445_v1, %v244_v41 }
  0x1e   : > { %282 = vst [vmem:[%s559_s6 + $0x18] sm:$0x3f] %v268_v34  ;;  %v273_v50 = vmax.f32 %v259_v45, 0.0  ;;  %v263_v51 = vadd.f32 %v445_v1, %v245_v42  ;;  %v264_v53 = vadd.f32 %v445_v1, %v246_v43 }
  0x1f   : > { %283 = vst [vmem:[%s559_s6 + $0x20] sm:$0xff] %v269_v36  ;;  %v274_v52 = vmax.f32 %v260_v46, 0.0  ;;  %v275_v54 = vmax.f32 %v261_v47, 0.0  ;;  %v276_v55 = vmax.f32 %v262_v49, 0.0 }
  0x20   : > { %284 = vst [vmem:[%s559_s6 + $0x28] sm:$0x3f] %v270_v40  ;;  %v277_v56 = vmax.f32 %v263_v51, 0.0  ;;  %v278_v57 = vmax.f32 %v264_v53, 0.0 }
  0x21   : > { %285 = vst [vmem:[%s559_s6 + $0x30] sm:$0xff] %v271_v44 }
  0x22   : > { %286 = vst [vmem:[%s559_s6 + $0x38] sm:$0x3f] %v272_v48 }
  0x23   : > { %287 = vst [vmem:[%s559_s6 + $0x40] sm:$0xff] %v273_v50 }
  0x24   : > { %288 = vst [vmem:[%s559_s6 + $0x48] sm:$0x3f] %v274_v52 }
  0x25   : > { %289 = vst [vmem:[%s559_s6 + $0x50] sm:$0xff] %v275_v54 }
  0x26   : > { %290 = vst [vmem:[%s559_s6 + $0x58] sm:$0x3f] %v276_v55 }
  0x27   : > { %291 = vst [vmem:[%s559_s6 + $0x60] sm:$0xff] %v277_v56 }
  0x28   : > { %292 = vst [vmem:[%s559_s6 + $0x68] sm:$0x3f] %v278_v57 }
  0x29 PF: > { %s13_s16 = sadd.s32 1, %s484_s16   ;;  %s599_s12 = smov %s476_s14 }
  0x2a   : > { %p10_p7 = scmp.ge.s32.totalorder %s13_s16, 6   ;;  %s600_s13 = smov %s480_s15 }
  0x2b   : > { %s601_s14 = smov %s604_s17  ;;  %s602_s15 = smov %s608_s18 }
  0x2c   :  { %12 = sbr.rel (!%p10_p7) target bundleno = 3 (0x3), region = 62 }

// kernel: basic_block_forward.4
= control target key start
LH: loop header
LB: loop body
LE: loop exit
PB: predicated region body
PF: predicated region fallthrough
CT: control target
= control target key end

     0   :  { %s2987_s12 = smov 0   ;;  %s2989_s13 = smov 0   ;;  %s3953_s0 = inlined_call_operand.vmem [shape: f32[2,16,16,128], index: 0, kind: input, shape index: {}]   ;;  %s3954_s1 = inlined_call_operand.vmem [shape: f32[9,128,128], index: 1, kind: input, shape index: {}]   ;;  %s3955_s2 = inlined_call_operand.vmem [shape: f32[2,14,14,128], index: 2, kind: output, shape index: {0}]   ;;  %s3956_s3 = inlined_call_operand.vmem [shape: f32[2,2,128], index: 3, kind: output, shape index: {1}]  }
   0x1   :  { %s2991_s14 = smov 0   ;;  %s2993_s15 = smov 0  }
   0x2   :  { %s2995_s16 = smov 0  }
   0x3 LB: > { %s23_s17 = sadd.s32 1, %s2956_s14  ;;  %s26_s18 = sadd.s32 1, %s2960_s15  ;;  %s2964_s16 = sphi %s2995_s16, %s14_s16   ;;  %s2960_s15 = sphi %s2993_s15, %s3960_s15   ;;  %s2956_s14 = sphi %s2991_s14, %s3959_s14   ;;  %s2952_s13 = sphi %s2989_s13, %s3958_s13   ;;  %s2948_s12 = sphi %s2987_s12, %s3957_s12  }
   0x4   : > { %p24_p0 = scmp.ge.s32.totalorder %s23_s17, 2  ;;  %p2611_p1 = scmp.ge.s32.totalorder %s2964_s16, 1 }
   0x5   : > { %p154_p2 = scmp.lt.s32.totalorder %s2964_s16, 5 }
   0x6   : > { %s3962_s17 = smov (%p24_p0, %s23_s17), 0  ;;  %s3964_s18 = smov (!%p24_p0, %s26_s18), %s2960_s15 }
   0x7   : > { %p155_p3 = pnand %p2611_p1, %p154_p2  ;;  %p28_p4 = scmp.ge.s32.totalorder %s3964_s18, 2 }
   0x8   : > { %p187_p5 = scmp.lt.s32.totalorder (!%p155_p3), %s2952_s13, 1  ;;  %s2617_s23 = smul.u32 (!%p155_p3), 112, %s2948_s12 }
   0x9   : > { %s3966_s18 = smov (%p28_p4, %s3964_s18), 0  ;;  %158 = sbr.rel (%p155_p3) target bundleno = 877 (0x36d), region = 28 }
   0xa   : > { %p2832_p7 = scmp.ne.s32.totalorder (!%p155_p3), %s2948_s12, 0 }
   0xe   : > { %v2633_v0 = vld [vmem:[%s3954_s1 + $0xf8] sm:$0xff]  ;;  %v2632_v1 = vld [vmem:[%s3954_s1 + $0xf0] sm:$0xff]  ;;  %v2631_v2 = vld [vmem:[%s3954_s1 + $0xe8] sm:$0xff]  ;;  %s3968_s13 = smov (!%p187_p5, %s2952_s13), 1  ;;  %vm2425_vm0 = vcmask 1041408   ;;  %vm2466_vm1 = vcmask 1040384  }
   0xf   : > { %2836 = vmatpush.msra.mxu1 %v2633_v0  ;;  %2837 = vmatpush.msra.mxu2 %v2633_v0  ;;  %v2630_v3 = vld [vmem:[%s3954_s1 + $0xe0] sm:$0xff]  ;;  %s2835_s28 = sshll.u32 %s3968_s13, 8  ;;  %s2616_s29 = sshll.u32 %s3968_s13, 1  ;;  %v2629_v4 = vld [vmem:[%s3954_s1 + $0xd8] sm:$0xff]  ;;  %v2628_v6 = vld [vmem:[%s3954_s1 + $0xd0] sm:$0xff] }
  0x10   : > { %2838 = vmatpush.msra.mxu3 %v2633_v0  ;;  %451 = vmatpush.msra.mxu0 %v2633_v0  ;;  %s191_s5 = scalar_lea.vmem %s3953_s0, %s2835_s28  ;;  %s3042_s8 = scalar_lea.vmem %s3956_s3, %s2616_s29  ;;  %v2627_v10 = vld [vmem:[%s3954_s1 + $0xc8] sm:$0xff]  ;;  %v2626_v12 = vld [vmem:[%s3954_s1 + $0xc0] sm:$0xff]  ;;  %v2625_v16 = vld [vmem:[%s3954_s1 + $0xb8] sm:$0xff] }
  0x11   : > { %2839 = vmatpush.msra.mxu1 %v2632_v1  ;;  %2840 = vmatpush.msra.mxu2 %v2632_v1  ;;  %s3047_s11 = scalar_lea.vmem %s191_s5, %s2617_s23  ;;  %v2624_v17 = vld [vmem:[%s3954_s1 + $0xb0] sm:$0xff]  ;;  %v2623_v20 = vld [vmem:[%s3954_s1 + $0xa8] sm:$0xff]  ;;  %v2622_v24 = vld [vmem:[%s3954_s1 + $0xa0] sm:$0xff]  ;;  %s2884_s27 = smul.u32 28, %s3968_s13 }
  0x12   : > { %2841 = vmatpush.msra.mxu3 %v2632_v1  ;;  %452 = vmatpush.msra.mxu0 %v2632_v1  ;;  %v289_v5 = vld [vmem:[%s3047_s11 + $0x1] sm:$0xff]  ;;  %v290_v11 = vld [vmem:[%s3047_s11 + $0x9] sm:$0x3f]  ;;  %v291_v13 = vld [vmem:[%s3047_s11 + $0x11] sm:$0xff] }
  0x13   : > { %2842 = vmatpush.msra.mxu1 %v2631_v2  ;;  %2843 = vmatpush.msra.mxu2 %v2631_v2  ;;  %v317_v7 = vrot.slane %v289_v5, 2  ;;  %v318_v8 = vrot.slane %v289_v5, 4  ;;  %v319_v9 = vrot.slane %v289_v5, 6  ;;  %369 = vst [vmem:[#allocation1] ss:$4 sm:$0xff] %v289_v5  ;;  %v320_v14 = vrot.slane %v290_v11, 2 }
  0x14   : > { %2844 = vmatpush.msra.mxu3 %v2631_v2  ;;  %453 = vmatpush.msra.mxu0 %v2631_v2  ;;  %383 = vst [vmem:[#allocation1 + $0x23] ss:$4 sm:$0xff] %v291_v13  ;;  %v321_v15 = vrot.slane %v290_v11, 4  ;;  %v322_v18 = vrot.slane %v291_v13, 2  ;;  %v323_v19 = vrot.slane %v291_v13, 4  ;;  %v324_v21 = vrot.slane %v291_v13, 6 }
  0x15   : > { %2845 = vmatpush.msra.mxu1 %v2630_v3  ;;  %2846 = vmatpush.msra.mxu2 %v2630_v3  ;;  %371 = vst [vmem:[#allocation1 + $0x1] ss:$4 sm:$0xff] %v317_v7  ;;  %v292_v22 = vld [vmem:[%s3047_s11 + $0x19] sm:$0x3f]  ;;  %v293_v28 = vld [vmem:[%s3047_s11 + $0x21] sm:$0xff]  ;;  %v2620_v31 = vld [vmem:[%s3954_s1 + $0x90] sm:$0xff] }
  0x16   : > { %2847 = vmatpush.msra.mxu3 %v2630_v3  ;;  %454 = vmatpush.msra.mxu0 %v2630_v3  ;;  %373 = vst [vmem:[#allocation1 + $0x2] ss:$4 sm:$0xff] %v318_v8  ;;  %v325_v25 = vrot.slane %v292_v22, 2  ;;  %v326_v26 = vrot.slane %v292_v22, 4  ;;  %v2621_v27 = vld [vmem:[%s3954_s1 + $0x98] sm:$0xff]  ;;  %v327_v29 = vrot.slane %v293_v28, 2 }
  0x17   : > { %2848 = vmatpush.msra.mxu1 %v2629_v4  ;;  %2849 = vmatpush.msra.mxu2 %v2629_v4  ;;  %375 = vst [vmem:[#allocation1 + $0x3] ss:$4 sm:$0xff] %v319_v9  ;;  %v2619_v32 = vld [vmem:[%s3954_s1 + $0x88] sm:$0xff]  ;;  %v328_v34 = vrot.slane %v293_v28, 4  ;;  %v2618_v35 = vld [vmem:[%s3954_s1 + $0x80] sm:$0xff]  ;;  %v329_v36 = vrot.slane %v293_v28, 6 }
  0x18   : > { %2850 = vmatpush.msra.mxu3 %v2629_v4  ;;  %455 = vmatpush.msra.mxu0 %v2629_v4  ;;  %377 = vst [vmem:[#allocation1 + $0x20] ss:$4 sm:$0xff] %v290_v11  ;;  %v294_v33 = vld [vmem:[%s3047_s11 + $0x29] sm:$0x3f]  ;;  %v288_v37 = vld [vmem:[%s3954_s1 + $0x78] sm:$0xff]  ;;  %v287_v40 = vld [vmem:[%s3954_s1 + $0x70] sm:$0xff] }
  0x19   : > { %2851 = vmatpush.msra.mxu1 %v2628_v6  ;;  %2852 = vmatpush.msra.mxu2 %v2628_v6  ;;  %379 = vst [vmem:[#allocation1 + $0x21] ss:$4 sm:$0xff] %v320_v14  ;;  %v330_v38 = vrot.slane %v294_v33, 2  ;;  %v331_v41 = vrot.slane %v294_v33, 4  ;;  %v295_v42 = vld [vmem:[%s3047_s11 + $0x31] sm:$0xff]  ;;  %v286_v43 = vld [vmem:[%s3954_s1 + $0x68] sm:$0xff] }
  0x1a   : > { %2853 = vmatpush.msra.mxu3 %v2628_v6  ;;  %456 = vmatpush.msra.mxu0 %v2628_v6  ;;  %381 = vst [vmem:[#allocation1 + $0x22] ss:$4 sm:$0xff] %v321_v15  ;;  %v332_v44 = vrot.slane %v295_v42, 2  ;;  %v333_v45 = vrot.slane %v295_v42, 4  ;;  %v285_v47 = vld [vmem:[%s3954_s1 + $0x60] sm:$0xff]  ;;  %v284_v49 = vld [vmem:[%s3954_s1 + $0x58] sm:$0xff] }
  0x1b   : > { %2854 = vmatpush.msra.mxu1 %v2627_v10  ;;  %2855 = vmatpush.msra.mxu2 %v2627_v10  ;;  %v296_v48 = vld [vmem:[%s3047_s11 + $0x39] sm:$0x3f]  ;;  %v334_v50 = vrot.slane %v295_v42, 6  ;;  %v283_v52 = vld [vmem:[%s3954_s1 + $0x50] sm:$0xff]  ;;  %v297_v53 = vld [vmem:[%s3047_s11 + $0x41] sm:$0xff] }
  0x1c   : > { %2856 = vmatpush.msra.mxu3 %v2627_v10  ;;  %457 = vmatpush.msra.mxu0 %v2627_v10  ;;  %v335_v51 = vrot.slane %v296_v48, 2  ;;  %v336_v55 = vrot.slane %v296_v48, 4  ;;  %v282_v56 = vld [vmem:[%s3954_s1 + $0x48] sm:$0xff]  ;;  %v337_v57 = vrot.slane %v297_v53, 2  ;;  %v281_v58 = vld [vmem:[%s3954_s1 + $0x40] sm:$0xff]  ;;  %v338_v59 = vrot.slane %v297_v53, 4 }
  0x1d   : > { %2857 = vmatpush.msra.mxu1 %v2626_v12  ;;  %2858 = vmatpush.msra.mxu2 %v2626_v12  ;;  %v339_v61 = vrot.slane %v297_v53, 6  ;;  %v280_v62 = vld [vmem:[%s3954_s1 + $0x38] sm:$0xff]  ;;  %v298_v63 = vld [vmem:[%s3047_s11 + $0x49] sm:$0x3f]  ;;  %v279_v0 = vld [vmem:[%s3954_s1 + $0x30] sm:$0xff] }
  0x1e   : > { %2859 = vmatpush.msra.mxu3 %v2626_v12  ;;  %458 = vmatpush.msra.mxu0 %v2626_v12  ;;  %v3071_v23 = vld.sshfl [vmem:[#allocation1] sm:$0xff pattern:$0x73625140]  ;;  %v278_v1 = vld [vmem:[%s3954_s1 + $0x28] sm:$0xff]  ;;  %v340_v2 = vrot.slane %v298_v63, 2  ;;  %v341_v3 = vrot.slane %v298_v63, 4 }
  0x1f   : > { %2860 = vmatpush.msra.mxu1 %v2625_v16  ;;  %2861 = vmatpush.msra.mxu2 %v2625_v16  ;;  %386 = vst [vmem:[#allocation1] ss:$4 sm:$0xff] %v322_v18  ;;  %v277_v5 = vld [vmem:[%s3954_s1 + $0x20] sm:$0xff]  ;;  %v299_v6 = vld [vmem:[%s3047_s11 + $0x51] sm:$0xff]  ;;  %v300_v8 = vld [vmem:[%s3047_s11 + $0x59] sm:$0x3f] }
  0x20   : > { %2862 = vmatpush.msra.mxu3 %v2625_v16  ;;  %459 = vmatpush.msra.mxu0 %v2625_v16  ;;  %387 = vst [vmem:[#allocation1 + $0x1] ss:$4 sm:$0xff] %v323_v19  ;;  %v276_v7 = vld [vmem:[%s3954_s1 + $0x18] sm:$0xff]  ;;  %v275_v10 = vld [vmem:[%s3954_s1 + $0x10] sm:$0xff]  ;;  %v274_v11 = vld [vmem:[%s3954_s1 + $0x8] sm:$0xff]  ;;  %v345_v14 = vrot.slane %v300_v8, 2 }
  0x21   : > { %2863 = vmatpush.msra.mxu1 %v2624_v17  ;;  %2864 = vmatpush.msra.mxu2 %v2624_v17  ;;  %388 = vst [vmem:[#allocation1 + $0x2] ss:$4 sm:$0xff] %v324_v21  ;;  %v3080_v30 = vld.sshfl [vmem:[#allocation1 + $0x20] sm:$0xff pattern:$0x73625140]  ;;  %v346_v15 = vrot.slane %v300_v8, 4 }
  0x22   : > { %2865 = vmatpush.msra.mxu3 %v2624_v17  ;;  %460 = vmatpush.msra.mxu0 %v2624_v17  ;;  %389 = vst [vmem:[#allocation1 + $0x3] ss:$4 sm:$0xff] %v292_v22  ;;  %v273_v12 = vld [vmem:[%s3954_s1] sm:$0xff]  ;;  %v342_v18 = vrot.slane %v299_v6, 2  ;;  %v343_v19 = vrot.slane %v299_v6, 4 }
  0x23   : > { %2866 = vmatpush.msra.mxu1 %v2623_v20  ;;  %2867 = vmatpush.msra.mxu2 %v2623_v20  ;;  %390 = vst [vmem:[#allocation1 + $0x20] ss:$4 sm:$0xff] %v325_v25  ;;  %v301_v13 = vld [vmem:[%s3047_s11 + $0x61] sm:$0xff]  ;;  %v302_v21 = vld [vmem:[%s3047_s11 + $0x69] sm:$0x3f] }
  0x24   : > { %2868 = vmatpush.msra.mxu3 %v2623_v20  ;;  %461 = vmatpush.msra.mxu0 %v2623_v20  ;;  %391 = vst [vmem:[#allocation1 + $0x21] ss:$4 sm:$0xff] %v326_v26  ;;  %v347_v16 = vrot.slane %v301_v13, 2  ;;  %v344_v20 = vrot.slane %v299_v6, 6  ;;  %v351_v22 = vrot.slane %v302_v21, 4  ;;  %v349_v25 = vrot.slane %v301_v13, 6 }
  0x25   : > { %2869 = vmatpush.msra.mxu1 %v2622_v24  ;;  %2870 = vmatpush.msra.mxu2 %v2622_v24  ;;  %392 = vst [vmem:[#allocation1 + $0x22] ss:$4 sm:$0xff] %v293_v28  ;;  %v210_v26 = vld [vmem:[%s3047_s11] sm:$0xff] }
  0x26   : > { %2871 = vmatpush.msra.mxu3 %v2622_v24  ;;  %462 = vmatpush.msra.mxu0 %v2622_v24  ;;  %393 = vst [vmem:[#allocation1 + $0x23] ss:$4 sm:$0xff] %v327_v29  ;;  %v348_v24 = vrot.slane %v301_v13, 4  ;;  %v238_v29 = vrot.slane %v210_v26, 2 }
  0x27   : > { %2872 = vmatpush.msra.mxu1 %v2621_v27  ;;  %2873 = vmatpush.msra.mxu2 %v2621_v27 }
  0x28   : > { %2874 = vmatpush.msra.mxu3 %v2621_v27  ;;  %463 = vmatpush.msra.mxu0 %v2621_v27  ;;  %v350_v27 = vrot.slane %v302_v21, 2 }
  0x29   : > { %2875 = vmatpush.msra.mxu1 %v2620_v31  ;;  %2876 = vmatpush.msra.mxu2 %v2620_v31  ;;  %v394_v39 = vld.sshfl [vmem:[#allocation1] sm:$0xff pattern:$0x73625140] }
  0x2a   : > { %2877 = vmatpush.msra.mxu3 %v2620_v31  ;;  %464 = vmatpush.msra.mxu0 %v2620_v31  ;;  %396 = vst [vmem:[#allocation1] ss:$4 sm:$0xff] %v328_v34  ;;  %v240_v31 = vrot.slane %v210_v26, 6 }
  0x2b   : > { %2878 = vmatpush.msra.mxu1 %v2619_v32  ;;  %2879 = vmatpush.msra.mxu2 %v2619_v32  ;;  %397 = vst [vmem:[#allocation1 + $0x1] ss:$4 sm:$0xff] %v329_v36  ;;  %v2648_v36 = vld [vmem:[%s3954_s1 + $0x170] sm:$0xff] }
  0x2c   : > { %2880 = vmatpush.msra.mxu3 %v2619_v32  ;;  %465 = vmatpush.msra.mxu0 %v2619_v32  ;;  %398 = vst [vmem:[#allocation1 + $0x2] ss:$4 sm:$0xff] %v294_v33  ;;  %v211_v33 = vld [vmem:[%s3047_s11 + $0x8] sm:$0x3f] }
  0x2d   : > { %2881 = vmatpush.msra.mxu1 %v2618_v35  ;;  %2882 = vmatpush.msra.mxu2 %v2618_v35  ;;  %399 = vst [vmem:[#allocation1 + $0x3] ss:$4 sm:$0xff] %v330_v38  ;;  %v3102_v46 = vld.sshfl [vmem:[#allocation1 + $0x20] sm:$0xff pattern:$0x73625140]  ;;  %v241_v34 = vrot.slane %v211_v33, 2 }
  0x2e   : > { %2883 = vmatpush.msra.mxu3 %v2618_v35  ;;  %466 = vmatpush.msra.mxu0 %v2618_v35  ;;  %400 = vst [vmem:[#allocation1 + $0x20] ss:$4 sm:$0xff] %v331_v41  ;;  %v2649_v35 = vld [vmem:[%s3954_s1 + $0x178] sm:$0xff]  ;;  %v242_v38 = vrot.slane %v211_v33, 4 }
  0x2f   : > { %589 = vmatpush.msrb.mxu1 %v288_v37  ;;  %467 = vmatmul.f32.vlgmr.msra.gmra.mxu0 %v3071_v23  ;;  %401 = vst [vmem:[#allocation1 + $0x21] ss:$4 sm:$0xff] %v295_v42  ;;  %v3162_v37 = vld [vmem:[%s3047_s11 + $0x10] sm:$0xff]  ;;  %v2647_v42 = vld [vmem:[%s3954_s1 + $0x168] sm:$0xff] }
  0x30   : > { %402 = vst [vmem:[#allocation1 + $0x22] ss:$4 sm:$0xff] %v332_v44  ;;  %807 = vmatpush.msrb.mxu2 %v2649_v35  ;;  %v2646_v44 = vld [vmem:[%s3954_s1 + $0x160] sm:$0xff]  ;;  %v2667_v35 = vld [vmem:[%s3954_s1 + $0x190] sm:$0xff] }
  0x31   : > { %590 = vmatpush.msrb.mxu1 %v287_v40  ;;  %403 = vst [vmem:[#allocation1 + $0x23] ss:$4 sm:$0xff] %v333_v45  ;;  %v2679_v40 = vld [vmem:[%s3954_s1 + $0x1f0] sm:$0xff]  ;;  %v244_v45 = vrot.slane %v3162_v37, 4 }
  0x32   : > { %808 = vmatpush.msrb.mxu2 %v2648_v36 }
  0x33   : > { %591 = vmatpush.msrb.mxu1 %v286_v43  ;;  %v243_v43 = vrot.slane %v3162_v37, 2 }
  0x34   : > { %v404_v54 = vld.sshfl [vmem:[#allocation1] sm:$0xff pattern:$0x73625140]  ;;  %809 = vmatpush.msrb.mxu2 %v2647_v42 }
  0x35   : > { %592 = vmatpush.msrb.mxu1 %v285_v47  ;;  %406 = vst [vmem:[#allocation1] ss:$4 sm:$0xff] %v334_v50  ;;  %v2678_v50 = vld [vmem:[%s3954_s1 + $0x1e8] sm:$0xff] }
  0x36   : > { %479 = vmatmul.f32.vlgmr.msra.gmra.mxu1 %v404_v54  ;;  %407 = vst [vmem:[#allocation1 + $0x1] ss:$4 sm:$0xff] %v296_v48  ;;  %v213_v48 = vld [vmem:[%s3047_s11 + $0x18] sm:$0x3f]  ;;  %810 = vmatpush.msrb.mxu2 %v2646_v44  ;;  %v2643_v54 = vld [vmem:[%s3954_s1 + $0x148] sm:$0xff] }
  0x37   : > { %593 = vmatpush.msrb.mxu1 %v284_v49  ;;  %470 = vmatmul.f32.gmra.mxu0 %v3080_v30  ;;  %408 = vst [vmem:[#allocation1 + $0x2] ss:$4 sm:$0xff] %v335_v51  ;;  %v239_v30 = vrot.slane %v210_v26, 4  ;;  %v2645_v49 = vld [vmem:[%s3954_s1 + $0x158] sm:$0xff]  ;;  %v2644_v51 = vld [vmem:[%s3954_s1 + $0x150] sm:$0xff] }
  0x38   : > { %v405_v60 = vld.sshfl [vmem:[#allocation1 + $0x20] sm:$0xff pattern:$0x73625140]  ;;  %409 = vst [vmem:[#allocation1 + $0x3] ss:$4 sm:$0xff] %v336_v55  ;;  %811 = vmatpush.msrb.mxu2 %v2645_v49  ;;  %v2676_v55 = vld [vmem:[%s3954_s1 + $0x1d8] sm:$0xff] }
  0x39   : > { %594 = vmatpush.msrb.mxu1 %v283_v52  ;;  %410 = vst [vmem:[#allocation1 + $0x20] ss:$4 sm:$0xff] %v297_v53  ;;  %v2677_v52 = vld [vmem:[%s3954_s1 + $0x1e0] sm:$0xff]  ;;  %v246_v53 = vrot.slane %v213_v48, 2 }
  0x3a   : > { %411 = vst [vmem:[#allocation1 + $0x21] ss:$4 sm:$0xff] %v337_v57  ;;  %v247_v57 = vrot.slane %v213_v48, 4  ;;  %812 = vmatpush.msrb.mxu2 %v2644_v51 }
  0x3b   : > { %595 = vmatpush.msrb.mxu1 %v282_v56  ;;  %412 = vst [vmem:[#allocation1 + $0x22] ss:$4 sm:$0xff] %v338_v59  ;;  %v2710_v56 = vld [vmem:[%s3954_s1 + $0x278] sm:$0xff]  ;;  %v3212_v59 = vld [vmem:[%s3047_s11 + $0x20] sm:$0xff] }
  0x3c   : > { %413 = vst [vmem:[#allocation1 + $0x23] ss:$4 sm:$0xff] %v339_v61  ;;  %1272 = vmatpush.msrb.mxu0 %v2710_v56  ;;  %v2675_v61 = vld [vmem:[%s3954_s1 + $0x1d0] sm:$0xff]  ;;  %813 = vmatpush.msrb.mxu2 %v2643_v54 }
  0x3d   : > { %596 = vmatpush.msrb.mxu1 %v281_v58  ;;  %v2709_v58 = vld [vmem:[%s3954_s1 + $0x270] sm:$0xff] }
  0x3e   : > { %482 = vmatmul.f32.gmra.mxu1 %v405_v60  ;;  %v2642_v60 = vld [vmem:[%s3954_s1 + $0x140] sm:$0xff]  ;;  %1273 = vmatpush.msrb.mxu0 %v2709_v58  ;;  %v2666_v58 = vld [vmem:[%s3954_s1 + $0x188] sm:$0xff] }
  0x3f   : > { %597 = vmatpush.msrb.mxu1 %v280_v62  ;;  %473 = vmatmul.f32.gmra.mxu0 %v394_v39  ;;  %v414_v4 = vld.sshfl [vmem:[#allocation1] sm:$0xff pattern:$0x73625140]  ;;  %v2680_v39 = vld [vmem:[%s3954_s1 + $0x1f8] sm:$0xff] }
  0x40   : > { %416 = vst [vmem:[#allocation1] ss:$4 sm:$0xff] %v298_v63  ;;  %1041 = vmatpush.msrb.mxu3 %v2680_v39  ;;  %v248_v63 = vrot.slane %v3212_v59, 2  ;;  %814 = vmatpush.msrb.mxu2 %v2642_v60  ;;  %v2701_v39 = vld [vmem:[%s3954_s1 + $0x230] sm:$0xff]  ;;  %v2700_v60 = vld [vmem:[%s3954_s1 + $0x228] sm:$0xff] }
  0x41   : > { %598 = vmatpush.msrb.mxu1 %v279_v0  ;;  %417 = vst [vmem:[#allocation1 + $0x1] ss:$4 sm:$0xff] %v340_v2  ;;  %v215_v0 = vld [vmem:[%s3047_s11 + $0x28] sm:$0x3f]  ;;  %v250_v2 = vrot.slane %v3212_v59, 6 }
  0x42   : > { %418 = vst [vmem:[#allocation1 + $0x2] ss:$4 sm:$0xff] %v341_v3  ;;  %1042 = vmatpush.msrb.mxu3 %v2679_v40  ;;  %v2641_v3 = vld [vmem:[%s3954_s1 + $0x138] sm:$0xff]  ;;  %v3316_v40 = vld [vmem:[%s3047_s11 + $0x40] sm:$0xff] }
  0x43   : > { %599 = vmatpush.msrb.mxu1 %v278_v1  ;;  %v415_v9 = vld.sshfl [vmem:[#allocation1 + $0x20] sm:$0xff pattern:$0x73625140]  ;;  %419 = vst [vmem:[#allocation1 + $0x3] ss:$4 sm:$0xff] %v299_v6  ;;  %v249_v1 = vrot.slane %v3212_v59, 4  ;;  %815 = vmatpush.msrb.mxu2 %v2641_v3 }
  0x44   : > { %423 = vst [vmem:[#allocation1 + $0x23] ss:$4 sm:$0xff] %v300_v8  ;;  %1043 = vmatpush.msrb.mxu3 %v2678_v50  ;;  %v2640_v6 = vld [vmem:[%s3954_s1 + $0x130] sm:$0xff]  ;;  %v2707_v8 = vld [vmem:[%s3954_s1 + $0x260] sm:$0xff]  ;;  %v259_v42 = vrot.slane %v3316_v40, 4 }
  0x45   : > { %600 = vmatpush.msrb.mxu1 %v277_v5  ;;  %420 = vst [vmem:[#allocation1 + $0x20] ss:$4 sm:$0xff] %v342_v18  ;;  %v2708_v5 = vld [vmem:[%s3954_s1 + $0x268] sm:$0xff]  ;;  %816 = vmatpush.msrb.mxu2 %v2640_v6  ;;  %v3268_v18 = vld [vmem:[%s3047_s11 + $0x30] sm:$0xff]  ;;  %v2699_v3 = vld [vmem:[%s3954_s1 + $0x220] sm:$0xff] }
  0x46   : > { %485 = vmatmul.f32.gmra.mxu1 %v414_v4  ;;  %421 = vst [vmem:[#allocation1 + $0x21] ss:$4 sm:$0xff] %v343_v19  ;;  %1044 = vmatpush.msrb.mxu3 %v2677_v52  ;;  %v2674_v4 = vld [vmem:[%s3954_s1 + $0x1c8] sm:$0xff]  ;;  %v217_v19 = vld [vmem:[%s3047_s11 + $0x38] sm:$0x3f]  ;;  %v3332_v52 = vld [vmem:[%s3047_s11 + $0x50] sm:$0xff] }
  0x47   : > { %601 = vmatpush.msrb.mxu1 %v276_v7  ;;  %476 = vmatmul.f32.gmra.mxu0 %v3102_v46  ;;  %422 = vst [vmem:[#allocation1 + $0x22] ss:$4 sm:$0xff] %v344_v20  ;;  %v245_v46 = vrot.slane %v3162_v37, 6  ;;  %v2673_v7 = vld [vmem:[%s3954_s1 + $0x1c0] sm:$0xff]  ;;  %v253_v20 = vrot.slane %v3268_v18, 2  ;;  %v265_v6 = vrot.slane %v3332_v52, 6 }
  0x48   : > { %1045 = vmatpush.msrb.mxu3 %v2676_v55  ;;  %1274 = vmatpush.msrb.mxu0 %v2708_v5  ;;  %v3337_v55 = vld [vmem:[%s3047_s11 + $0x60] sm:$0xff]  ;;  %v264_v5 = vrot.slane %v3332_v52, 4 }
  0x49   : > { %602 = vmatpush.msrb.mxu1 %v275_v10  ;;  %v251_v10 = vrot.slane %v215_v0, 2 }
  0x4a   : > { %v424_v17 = vld.sshfl [vmem:[#allocation1] sm:$0xff pattern:$0x73625140]  ;;  %1046 = vmatpush.msrb.mxu3 %v2675_v61  ;;  %1275 = vmatpush.msrb.mxu0 %v2707_v8 }
  0x4b   : > { %603 = vmatpush.msrb.mxu1 %v274_v11  ;;  %426 = vst [vmem:[#allocation1] ss:$4 sm:$0xff] %v345_v14  ;;  %491 = vmatmul.f32.vlgmr.msra.gmra.mxu2 %v424_v17  ;;  %v2639_v11 = vld [vmem:[%s3954_s1 + $0x128] sm:$0xff]  ;;  %v2638_v14 = vld [vmem:[%s3954_s1 + $0x120] sm:$0xff]  ;;  %v2705_v17 = vld [vmem:[%s3954_s1 + $0x250] sm:$0xff] }
  0x4c   : > { %427 = vst [vmem:[#allocation1 + $0x1] ss:$4 sm:$0xff] %v346_v15  ;;  %1047 = vmatpush.msrb.mxu3 %v2674_v4  ;;  %v2671_v15 = vld [vmem:[%s3954_s1 + $0x1b0] sm:$0xff]  ;;  %817 = vmatpush.msrb.mxu2 %v2639_v11  ;;  %v2665_v61 = vld [vmem:[%s3954_s1 + $0x180] sm:$0xff]  ;;  %v263_v4 = vrot.slane %v3332_v52, 2  ;;  %v270_v11 = vrot.slane %v3337_v55, 6 }
  0x4d   : > { %604 = vmatpush.msrb.mxu1 %v273_v12  ;;  %428 = vst [vmem:[#allocation1 + $0x2] ss:$4 sm:$0xff] %v301_v13  ;;  %v2672_v12 = vld [vmem:[%s3954_s1 + $0x1b8] sm:$0xff] }
  0x4e   : > { %488 = vmatmul.f32.gmra.mxu1 %v415_v9  ;;  %429 = vst [vmem:[#allocation1 + $0x3] ss:$4 sm:$0xff] %v347_v16  ;;  %v425_v28 = vld.sshfl [vmem:[#allocation1 + $0x20] sm:$0xff pattern:$0x73625140]  ;;  %1048 = vmatpush.msrb.mxu3 %v2673_v7  ;;  %v2706_v13 = vld [vmem:[%s3954_s1 + $0x258] sm:$0xff] }
  0x4f   : > { %430 = vst [vmem:[#allocation1 + $0x20] ss:$4 sm:$0xff] %v348_v24  ;;  %v252_v16 = vrot.slane %v215_v0, 4  ;;  %1276 = vmatpush.msrb.mxu0 %v2706_v13  ;;  %818 = vmatpush.msrb.mxu2 %v2638_v14  ;;  %v2670_v24 = vld [vmem:[%s3954_s1 + $0x1a8] sm:$0xff] }
  0x50   : > { %431 = vst [vmem:[#allocation1 + $0x21] ss:$4 sm:$0xff] %v349_v25  ;;  %1049 = vmatpush.msrb.mxu3 %v2672_v12  ;;  %v2704_v25 = vld [vmem:[%s3954_s1 + $0x248] sm:$0xff] }
  0x51   : > { %432 = vst [vmem:[#allocation1 + $0x22] ss:$4 sm:$0xff] %v302_v21  ;;  %1277 = vmatpush.msrb.mxu0 %v2705_v17  ;;  %v223_v7 = vld [vmem:[%s3047_s11 + $0x68] sm:$0x3f] }
  0x52   : > { %433 = vst [vmem:[#allocation1 + $0x23] ss:$4 sm:$0xff] %v350_v27  ;;  %1050 = vmatpush.msrb.mxu3 %v2671_v15  ;;  %v2669_v27 = vld [vmem:[%s3954_s1 + $0x1a0] sm:$0xff]  ;;  %v272_v8 = vrot.slane %v223_v7, 4  ;;  %v271_v13 = vrot.slane %v223_v7, 2 }
  0x53   : > { %494 = vmatmul.f32.gmra.mxu2 %v425_v28  ;;  %1278 = vmatpush.msrb.mxu0 %v2704_v25  ;;  %v2703_v28 = vld [vmem:[%s3954_s1 + $0x240] sm:$0xff] }
  0x54   : > { %1051 = vmatpush.msrb.mxu3 %v2670_v24  ;;  %v645_v12 = vld [vmem:[%s3047_s11 + $0x2] sm:$0xff]  ;;  %v3374_v24 = vld [vmem:[%s3047_s11 + $0x12] sm:$0xff] }
  0x55   : > { %v434_v23 = vld.sshfl [vmem:[#allocation1] sm:$0xff pattern:$0x73625140]  ;;  %1279 = vmatpush.msrb.mxu0 %v2703_v28  ;;  %v673_v15 = vrot.slane %v645_v12, 2  ;;  %v679_v28 = vrot.slane %v3374_v24, 4 }
  0x56   : > { %436 = vst [vmem:[#allocation1] ss:$4 sm:$0xff] %v351_v22  ;;  %v254_v22 = vrot.slane %v3268_v18, 4  ;;  %1052 = vmatpush.msrb.mxu3 %v2669_v27  ;;  %v678_v27 = vrot.slane %v3374_v24, 2 }
  0x59   : > { %v435_v41 = vld.sshfl [vmem:[#allocation1 + $0x20] sm:$0xff pattern:$0x73625140] }
  0x5a   : > { %515 = vst [vmem:[#allocation1 + $0x20] ss:$4 sm:$0xff] %v211_v33  ;;  %v257_v33 = vrot.slane %v217_v19, 4 }
  0x5b   : > { %497 = vmatmul.f32.gmra.mxu2 %v434_v23  ;;  %517 = vst [vmem:[#allocation1 + $0x21] ss:$4 sm:$0xff] %v241_v34  ;;  %v2637_v23 = vld [vmem:[%s3954_s1 + $0x118] sm:$0xff]  ;;  %v2634_v34 = vld [vmem:[%s3954_s1 + $0x100] sm:$0xff] }
  0x5c   : > { %519 = vst [vmem:[#allocation1 + $0x22] ss:$4 sm:$0xff] %v242_v38  ;;  %819 = vmatpush.msrb.mxu2 %v2637_v23  ;;  %v255_v38 = vrot.slane %v3268_v18, 6 }
  0x5d   : > { %v437_v32 = vld.sshfl [vmem:[#allocation1] sm:$0xff pattern:$0x73625140]  ;;  %521 = vst [vmem:[#allocation1 + $0x23] ss:$4 sm:$0xff] %v3162_v37 }
  0x5e   : > { %507 = vst [vmem:[#allocation1] ss:$4 sm:$0xff] %v210_v26  ;;  %503 = vmatmul.f32.vlgmr.msra.gmra.mxu3 %v437_v32  ;;  %v2636_v26 = vld [vmem:[%s3954_s1 + $0x110] sm:$0xff]  ;;  %v2702_v32 = vld [vmem:[%s3954_s1 + $0x238] sm:$0xff] }
  0x5f   : > { %509 = vst [vmem:[#allocation1 + $0x1] ss:$4 sm:$0xff] %v238_v29  ;;  %v2635_v29 = vld [vmem:[%s3954_s1 + $0x108] sm:$0xff]  ;;  %820 = vmatpush.msrb.mxu2 %v2636_v26  ;;  %1280 = vmatpush.msrb.mxu0 %v2702_v32 }
  0x60   : > { %511 = vst [vmem:[#allocation1 + $0x2] ss:$4 sm:$0xff] %v239_v30  ;;  %v2668_v30 = vld [vmem:[%s3954_s1 + $0x198] sm:$0xff]  ;;  %v3388_v32 = vld [vmem:[%s3047_s11 + $0x22] sm:$0xff] }
  0x61   : > { %513 = vst [vmem:[#allocation1 + $0x3] ss:$4 sm:$0xff] %v240_v31  ;;  %v256_v31 = vrot.slane %v217_v19, 2  ;;  %821 = vmatpush.msrb.mxu2 %v2635_v29  ;;  %1053 = vmatpush.msrb.mxu3 %v2668_v30  ;;  %v680_v29 = vrot.slane %v3374_v24, 6 }
  0x62   : > { %1281 = vmatpush.msrb.mxu0 %v2701_v39 }
  0x63   : > { %500 = vmatmul.f32.gmra.mxu2 %v435_v41  ;;  %1054 = vmatpush.msrb.mxu3 %v2667_v35  ;;  %v258_v41 = vrot.slane %v3316_v40, 2  ;;  %v684_v35 = vrot.slane %v3388_v32, 4 }
  0x64   : > { %v523_v62 = vld.sshfl [vmem:[#allocation1 + $0x20] sm:$0xff pattern:$0x73625140]  ;;  %822 = vmatpush.msrb.mxu2 %v2634_v34  ;;  %1282 = vmatpush.msrb.mxu0 %v2700_v60  ;;  %v650_v34 = vld [vmem:[%s3047_s11 + $0x2a] sm:$0x3f] }
  0x65   : > { %528 = vst [vmem:[#allocation1 + $0x20] ss:$4 sm:$0xff] %v246_v53  ;;  %v221_v53 = vld [vmem:[%s3047_s11 + $0x58] sm:$0x3f]  ;;  %1055 = vmatpush.msrb.mxu3 %v2666_v58  ;;  %v686_v39 = vrot.slane %v650_v34, 2  ;;  %v687_v60 = vrot.slane %v650_v34, 4 }
  0x66   : > { %529 = vst [vmem:[#allocation1 + $0x21] ss:$4 sm:$0xff] %v247_v57  ;;  %v266_v56 = vrot.slane %v221_v53, 2  ;;  %v267_v57 = vrot.slane %v221_v53, 4  ;;  %1283 = vmatpush.msrb.mxu0 %v2699_v3 }
  0x67   : > { %530 = vst [vmem:[#allocation1 + $0x22] ss:$4 sm:$0xff] %v3212_v59  ;;  %1056 = vmatpush.msrb.mxu3 %v2665_v61 }
  0x68   : > { %v522_v47 = vld.sshfl [vmem:[#allocation1] sm:$0xff pattern:$0x73625140]  ;;  %531 = vst [vmem:[#allocation1 + $0x23] ss:$4 sm:$0xff] %v248_v63 }
  0x69   : > { %605 = vmatmul.f32.vlgmr.msrb.gmra.mxu1 %v522_v47  ;;  %524 = vst [vmem:[#allocation1] ss:$4 sm:$0xff] %v243_v43  ;;  %v260_v47 = vrot.slane %v3316_v40, 6 }
  0x6a   : > { %525 = vst [vmem:[#allocation1 + $0x1] ss:$4 sm:$0xff] %v244_v45 }
  0x6b   : > { %526 = vst [vmem:[#allocation1 + $0x2] ss:$4 sm:$0xff] %v245_v46 }
  0x6c   : > { %527 = vst [vmem:[#allocation1 + $0x3] ss:$4 sm:$0xff] %v213_v48  ;;  %v219_v48 = vld [vmem:[%s3047_s11 + $0x48] sm:$0x3f] }
  0x6d   : > { %v261_v49 = vrot.slane %v219_v48, 2  ;;  %v262_v50 = vrot.slane %v219_v48, 4 }
  0x6f   : > { %v533_v21 = vld.sshfl [vmem:[#allocation1 + $0x20] sm:$0xff pattern:$0x73625140] }
  0x70   : > { %538 = vst [vmem:[#allocation1 + $0x20] ss:$4 sm:$0xff] %v252_v16  ;;  %v674_v16 = vrot.slane %v645_v12, 4 }
  0x71   : > { %608 = vmatmul.f32.gmra.mxu1 %v523_v62  ;;  %539 = vst [vmem:[#allocation1 + $0x21] ss:$4 sm:$0xff] %v3268_v18  ;;  %v268_v62 = vrot.slane %v3337_v55, 2 }
  0x72   : > { %540 = vst [vmem:[#allocation1 + $0x22] ss:$4 sm:$0xff] %v253_v20 }
  0x73   : > { %v532_v9 = vld.sshfl [vmem:[#allocation1] sm:$0xff pattern:$0x73625140]  ;;  %541 = vst [vmem:[#allocation1 + $0x23] ss:$4 sm:$0xff] %v254_v22 }
  0x74   : > { %534 = vst [vmem:[#allocation1] ss:$4 sm:$0xff] %v249_v1 }
  0x75   : > { %535 = vst [vmem:[#allocation1 + $0x1] ss:$4 sm:$0xff] %v250_v2 }
  0x76   : > { %536 = vst [vmem:[#allocation1 + $0x2] ss:$4 sm:$0xff] %v215_v0 }
  0x77   : > { %537 = vst [vmem:[#allocation1 + $0x3] ss:$4 sm:$0xff] %v251_v10  ;;  %v269_v10 = vrot.slane %v3337_v55, 4 }
  0x79   : > { %611 = vmatmul.f32.gmra.mxu1 %v532_v9 }
  0x7a   : > { %v543_v44 = vld.sshfl [vmem:[#allocation1 + $0x20] sm:$0xff pattern:$0x73625140] }
  0x7b   : > { %548 = vst [vmem:[#allocation1 + $0x20] ss:$4 sm:$0xff] %v3316_v40 }
  0x7c   : > { %549 = vst [vmem:[#allocation1 + $0x21] ss:$4 sm:$0xff] %v258_v41 }
  0x7d   : > { %550 = vst [vmem:[#allocation1 + $0x22] ss:$4 sm:$0xff] %v259_v42 }
  0x7e   : > { %v542_v36 = vld.sshfl [vmem:[#allocation1] sm:$0xff pattern:$0x73625140]  ;;  %551 = vst [vmem:[#allocation1 + $0x23] ss:$4 sm:$0xff] %v260_v47 }
  0x7f   : > { %545 = vst [vmem:[#allocation1 + $0x1] ss:$4 sm:$0xff] %v217_v19  ;;  %v675_v19 = vrot.slane %v645_v12, 6 }
  0x80   : > { %546 = vst [vmem:[#allocation1 + $0x2] ss:$4 sm:$0xff] %v256_v31  ;;  %v648_v31 = vld [vmem:[%s3047_s11 + $0x1a] sm:$0x3f] }
  0x81   : > { %547 = vst [vmem:[#allocation1 + $0x3] ss:$4 sm:$0xff] %v257_v33  ;;  %614 = vmatmul.f32.gmra.mxu1 %v533_v21  ;;  %v646_v21 = vld [vmem:[%s3047_s11 + $0xa] sm:$0x3f] }
  0x82   : > { %544 = vst [vmem:[#allocation1] ss:$4 sm:$0xff] %v255_v38  ;;  %v676_v23 = vrot.slane %v646_v21, 2  ;;  %v677_v25 = vrot.slane %v646_v21, 4 }
  0x85   : > { %v553_v54 = vld.sshfl [vmem:[#allocation1 + $0x20] sm:$0xff pattern:$0x73625140] }
  0x86   : > { %561 = vst [vmem:[#allocation1 + $0x23] ss:$4 sm:$0xff] %v221_v53  ;;  %v652_v53 = vld [vmem:[%s3047_s11 + $0x3a] sm:$0x3f] }
  0x87   : > { %558 = vst [vmem:[#allocation1 + $0x20] ss:$4 sm:$0xff] %v263_v4 }
  0x88   : > { %559 = vst [vmem:[#allocation1 + $0x21] ss:$4 sm:$0xff] %v264_v5 }
  0x89   : > { %617 = vmatmul.f32.gmra.mxu1 %v542_v36  ;;  %v552_v51 = vld.sshfl [vmem:[#allocation1] sm:$0xff pattern:$0x73625140]  ;;  %560 = vst [vmem:[#allocation1 + $0x22] ss:$4 sm:$0xff] %v265_v6  ;;  %v685_v36 = vrot.slane %v3388_v32, 6 }
  0x8a   : > { %554 = vst [vmem:[#allocation1] ss:$4 sm:$0xff] %v219_v48  ;;  %v3399_v48 = vld [vmem:[%s3047_s11 + $0x32] sm:$0xff] }
  0x8b   : > { %555 = vst [vmem:[#allocation1 + $0x1] ss:$4 sm:$0xff] %v261_v49  ;;  %v681_v49 = vrot.slane %v648_v31, 2  ;;  %v688_v61 = vrot.slane %v3399_v48, 2  ;;  %v689_v3 = vrot.slane %v3399_v48, 4 }
  0x8c   : > { %556 = vst [vmem:[#allocation1 + $0x2] ss:$4 sm:$0xff] %v262_v50  ;;  %v682_v50 = vrot.slane %v648_v31, 4 }
  0x8d   : > { %557 = vst [vmem:[#allocation1 + $0x3] ss:$4 sm:$0xff] %v3332_v52 }
  0x90   : > { %v563_v14 = vld.sshfl [vmem:[#allocation1 + $0x20] sm:$0xff pattern:$0x73625140] }
  0x91   : > { %620 = vmatmul.f32.gmra.mxu1 %v543_v44  ;;  %568 = vst [vmem:[#allocation1 + $0x20] ss:$4 sm:$0xff] %v269_v10 }
  0x92   : > { %569 = vst [vmem:[#allocation1 + $0x21] ss:$4 sm:$0xff] %v270_v11 }
  0x93   : > { %570 = vst [vmem:[#allocation1 + $0x22] ss:$4 sm:$0xff] %v223_v7 }
  0x94   : > { %v562_v0 = vld.sshfl [vmem:[#allocation1] sm:$0xff pattern:$0x73625140]  ;;  %571 = vst [vmem:[#allocation1 + $0x23] ss:$4 sm:$0xff] %v271_v13  ;;  %v655_v13 = vld [vmem:[%s3047_s11 + $0x52] sm:$0xff] }
  0x95   : > { %564 = vst [vmem:[#allocation1] ss:$4 sm:$0xff] %v266_v56  ;;  %v691_v56 = vrot.slane %v652_v53, 2 }
  0x96   : > { %565 = vst [vmem:[#allocation1 + $0x1] ss:$4 sm:$0xff] %v267_v57  ;;  %v692_v57 = vrot.slane %v652_v53, 4 }
  0x97   : > { %566 = vst [vmem:[#allocation1 + $0x2] ss:$4 sm:$0xff] %v3337_v55 }
  0x98   : > { %567 = vst [vmem:[#allocation1 + $0x3] ss:$4 sm:$0xff] %v268_v62 }
  0x99   : > { %623 = vmatmul.f32.gmra.mxu1 %v552_v51  ;;  %v683_v51 = vrot.slane %v3388_v32, 2 }
  0x9b   : > { %v573_v26 = vld.sshfl [vmem:[#allocation1 + $0x20] sm:$0xff pattern:$0x73625140] }
  0x9c   : > { %733 = vst [vmem:[#allocation1 + $0x20] ss:$4 sm:$0xff] %v646_v21 }
  0x9d   : > { %735 = vst [vmem:[#allocation1 + $0x21] ss:$4 sm:$0xff] %v676_v23  ;;  %v657_v23 = vld [vmem:[%s3047_s11 + $0x62] sm:$0xff] }
  0x9e   : > { %737 = vst [vmem:[#allocation1 + $0x22] ss:$4 sm:$0xff] %v677_v25 }
  0x9f   : > { %v572_v9 = vld.sshfl [vmem:[#allocation1] sm:$0xff pattern:$0x73625140]  ;;  %739 = vst [vmem:[#allocation1 + $0x23] ss:$4 sm:$0xff] %v3374_v24 }
  0xa0   : > { %574 = vst [vmem:[#allocation1] ss:$4 sm:$0xff] %v272_v8 }
  0xa1   : > { %626 = vmatmul.f32.gmra.mxu1 %v553_v54  ;;  %v690_v54 = vrot.slane %v3399_v48, 6 }
  0xa6   : > { %v741_v33 = vld.sshfl [vmem:[#allocation1 + $0x20] sm:$0xff pattern:$0x73625140] }
  0xa7   : > { %v575_v17 = vld.sshfl [vmem:[#allocation1] sm:$0xff pattern:$0x73625140]  ;;  %748 = vst [vmem:[#allocation1 + $0x22] ss:$4 sm:$0xff] %v3388_v32 }
  0xa8   : > { %725 = vst [vmem:[#allocation1] ss:$4 sm:$0xff] %v645_v12 }
  0xa9   : > { %727 = vst [vmem:[#allocation1 + $0x1] ss:$4 sm:$0xff] %v673_v15  ;;  %629 = vmatmul.f32.gmra.mxu1 %v562_v0  ;;  %v654_v0 = vld [vmem:[%s3047_s11 + $0x4a] sm:$0x3f] }
  0xaa   : > { %729 = vst [vmem:[#allocation1 + $0x2] ss:$4 sm:$0xff] %v674_v16  ;;  %v696_v8 = vrot.slane %v654_v0, 2  ;;  %v656_v16 = vld [vmem:[%s3047_s11 + $0x5a] sm:$0x3f] }
  0xab   : > { %731 = vst [vmem:[#allocation1 + $0x3] ss:$4 sm:$0xff] %v675_v19  ;;  %v701_v25 = vrot.slane %v656_v16, 2 }
  0xac   : > { %746 = vst [vmem:[#allocation1 + $0x20] ss:$4 sm:$0xff] %v681_v49  ;;  %v698_v49 = vrot.slane %v655_v13, 2 }
  0xad   : > { %747 = vst [vmem:[#allocation1 + $0x21] ss:$4 sm:$0xff] %v682_v50  ;;  %v658_v50 = vld [vmem:[%s3047_s11 + $0x6a] sm:$0x3f] }
  0xae   : > { %749 = vst [vmem:[#allocation1 + $0x23] ss:$4 sm:$0xff] %v683_v51 }
  0xb1   : > { %632 = vmatmul.f32.gmra.mxu1 %v563_v14  ;;  %v3418_v14 = vld [vmem:[%s3047_s11 + $0x42] sm:$0xff] }
  0xb2   : > { %v740_v30 = vld.sshfl [vmem:[#allocation1] sm:$0xff pattern:$0x73625140]  ;;  %v693_v15 = vrot.slane %v3418_v14, 2  ;;  %v695_v21 = vrot.slane %v3418_v14, 6 }
  0xb3   : > { %823 = vmatmul.f32.vlgmr.msrb.gmra.mxu2 %v740_v30  ;;  %742 = vst [vmem:[#allocation1] ss:$4 sm:$0xff] %v678_v27  ;;  %v2698_v30 = vld [vmem:[%s3954_s1 + $0x218] sm:$0xff] }
  0xb4   : > { %743 = vst [vmem:[#allocation1 + $0x1] ss:$4 sm:$0xff] %v679_v28  ;;  %1284 = vmatpush.msrb.mxu0 %v2698_v30 }
  0xb5   : > { %744 = vst [vmem:[#allocation1 + $0x2] ss:$4 sm:$0xff] %v680_v29  ;;  %v751_v7 = vld.sshfl [vmem:[#allocation1 + $0x20] sm:$0xff pattern:$0x73625140] }
  0xb6   : > { %745 = vst [vmem:[#allocation1 + $0x3] ss:$4 sm:$0xff] %v648_v31  ;;  %v2697_v31 = vld [vmem:[%s3954_s1 + $0x210] sm:$0xff] }
  0xb7   : > { %756 = vst [vmem:[#allocation1 + $0x20] ss:$4 sm:$0xff] %v687_v60  ;;  %1285 = vmatpush.msrb.mxu0 %v2697_v31 }
  0xb8   : > { %757 = vst [vmem:[#allocation1 + $0x21] ss:$4 sm:$0xff] %v3399_v48 }
  0xb9   : > { %635 = vmatmul.f32.gmra.mxu1 %v572_v9  ;;  %758 = vst [vmem:[#allocation1 + $0x22] ss:$4 sm:$0xff] %v688_v61  ;;  %v697_v9 = vrot.slane %v654_v0, 4 }
  0xba   : > { %759 = vst [vmem:[#allocation1 + $0x23] ss:$4 sm:$0xff] %v689_v3 }
  0xbb   : > { %826 = vmatmul.f32.gmra.mxu2 %v741_v33  ;;  %v703_v33 = vrot.slane %v657_v23, 2 }
  0xbd   : > { %v750_v44 = vld.sshfl [vmem:[#allocation1] sm:$0xff pattern:$0x73625140] }
  0xbe   : > { %752 = vst [vmem:[#allocation1] ss:$4 sm:$0xff] %v684_v35 }
  0xbf   : > { %753 = vst [vmem:[#allocation1 + $0x1] ss:$4 sm:$0xff] %v685_v36 }
  0xc0   : > { %754 = vst [vmem:[#allocation1 + $0x2] ss:$4 sm:$0xff] %v650_v34 }
  0xc1   : > { %755 = vst [vmem:[#allocation1 + $0x3] ss:$4 sm:$0xff] %v686_v39  ;;  %638 = vmatmul.f32.gmra.mxu1 %v573_v26  ;;  %v761_v19 = vld.sshfl [vmem:[#allocation1 + $0x20] sm:$0xff pattern:$0x73625140]  ;;  %v702_v26 = vrot.slane %v656_v16, 4 }
  0xc2   : > { %766 = vst [vmem:[#allocation1 + $0x20] ss:$4 sm:$0xff] %v3418_v14  ;;  %v2696_v39 = vld [vmem:[%s3954_s1 + $0x208] sm:$0xff] }
  0xc3   : > { %829 = vmatmul.f32.gmra.mxu2 %v750_v44  ;;  %767 = vst [vmem:[#allocation1 + $0x21] ss:$4 sm:$0xff] %v693_v15  ;;  %v2695_v44 = vld [vmem:[%s3954_s1 + $0x200] sm:$0xff]  ;;  %1286 = vmatpush.msrb.mxu0 %v2696_v39  ;;  %v2662_v39 = vld [vmem:[%s3047_s11 + $0x68] sm:$0x3f] }
  0xc4   : > { %769 = vst [vmem:[#allocation1 + $0x23] ss:$4 sm:$0xff] %v695_v21 }
  0xc5   : > { %1287 = vmatpush.msrb.mxu0 %v2695_v44  ;;  %v2740_v44 = vld [vmem:[%s3954_s1 + $0x2f8] sm:$0xff] }
  0xc6   : > { %1503 = vmatpush.msra.mxu1 %v2740_v44 }
  0xc8   : > { %v760_v58 = vld.sshfl [vmem:[#allocation1] sm:$0xff pattern:$0x73625140] }
  0xc9   : > { %762 = vst [vmem:[#allocation1] ss:$4 sm:$0xff] %v690_v54  ;;  %641 = vmatmul.f32.gmra.mxu1 %v575_v17  ;;  %v694_v17 = vrot.slane %v3418_v14, 4 }
  0xca   : > { %763 = vst [vmem:[#allocation1 + $0x1] ss:$4 sm:$0xff] %v652_v53  ;;  %v699_v53 = vrot.slane %v655_v13, 4 }
  0xcb   : > { %764 = vst [vmem:[#allocation1 + $0x2] ss:$4 sm:$0xff] %v691_v56  ;;  %832 = vmatmul.f32.gmra.mxu2 %v751_v7  ;;  %v700_v56 = vrot.slane %v655_v13, 6 }
  0xcc   : > { %765 = vst [vmem:[#allocation1 + $0x3] ss:$4 sm:$0xff] %v692_v57 }
  0xcd   : > { %768 = vst [vmem:[#allocation1 + $0x22] ss:$4 sm:$0xff] %v694_v17 }
  0xd3   : > { %v770_v12 = vld.sshfl [vmem:[#allocation1] sm:$0xff pattern:$0x73625140]  ;;  %835 = vmatmul.f32.gmra.mxu2 %v760_v58  ;;  %v707_v58 = vrot.slane %v658_v50, 4 }
  0xd4   : > { %772 = vst [vmem:[#allocation1] ss:$4 sm:$0xff] %v654_v0  ;;  %v771_v57 = vld.sshfl [vmem:[#allocation1 + $0x20] sm:$0xff pattern:$0x73625140]  ;;  %v704_v0 = vrot.slane %v657_v23, 4 }
  0xd5   : > { %773 = vst [vmem:[#allocation1 + $0x1] ss:$4 sm:$0xff] %v696_v8 }
  0xd6   : > { %774 = vst [vmem:[#allocation1 + $0x2] ss:$4 sm:$0xff] %v697_v9  ;;  %v705_v9 = vrot.slane %v657_v23, 6 }
  0xd7   : > { %775 = vst [vmem:[#allocation1 + $0x3] ss:$4 sm:$0xff] %v655_v13  ;;  %v2652_v13 = vld [vmem:[%s3047_s11 + $0x18] sm:$0x3f] }
  0xd8   : > { %776 = vst [vmem:[#allocation1 + $0x20] ss:$4 sm:$0xff] %v698_v49  ;;  %v2739_v49 = vld [vmem:[%s3954_s1 + $0x2f0] sm:$0xff] }
  0xd9   : > { %777 = vst [vmem:[#allocation1 + $0x21] ss:$4 sm:$0xff] %v699_v53  ;;  %1504 = vmatpush.msra.mxu1 %v2739_v49  ;;  %v2737_v53 = vld [vmem:[%s3954_s1 + $0x2e0] sm:$0xff] }
  0xda   : > { %778 = vst [vmem:[#allocation1 + $0x22] ss:$4 sm:$0xff] %v700_v56 }
  0xdb   : > { %838 = vmatmul.f32.gmra.mxu2 %v761_v19  ;;  %779 = vst [vmem:[#allocation1 + $0x23] ss:$4 sm:$0xff] %v656_v16  ;;  %v910_v19 = vrot.slane %v2652_v13, 2 }
  0xde   : > { %v780_v34 = vld.sshfl [vmem:[#allocation1] sm:$0xff pattern:$0x73625140] }
  0xdf   : > { %782 = vst [vmem:[#allocation1] ss:$4 sm:$0xff] %v701_v25 }
  0xe0   : > { %783 = vst [vmem:[#allocation1 + $0x1] ss:$4 sm:$0xff] %v702_v26 }
  0xe1   : > { %784 = vst [vmem:[#allocation1 + $0x2] ss:$4 sm:$0xff] %v657_v23 }
  0xe2   : > { %785 = vst [vmem:[#allocation1 + $0x3] ss:$4 sm:$0xff] %v703_v33  ;;  %v781_v7 = vld.sshfl [vmem:[#allocation1 + $0x20] sm:$0xff pattern:$0x73625140] }
  0xe3   : > { %841 = vmatmul.f32.gmra.mxu2 %v770_v12  ;;  %786 = vst [vmem:[#allocation1 + $0x20] ss:$4 sm:$0xff] %v704_v0  ;;  %v706_v12 = vrot.slane %v658_v50, 2  ;;  %v2660_v33 = vld [vmem:[%s3047_s11 + $0x58] sm:$0x3f] }
  0xe4   : > { %787 = vst [vmem:[#allocation1 + $0x21] ss:$4 sm:$0xff] %v705_v9 }
  0xe5   : > { %788 = vst [vmem:[#allocation1 + $0x22] ss:$4 sm:$0xff] %v658_v50 }
  0xe6   : > { %789 = vst [vmem:[#allocation1 + $0x23] ss:$4 sm:$0xff] %v706_v12  ;;  %v2732_v12 = vld [vmem:[%s3954_s1 + $0x2b8] sm:$0xff] }
  0xe9   : > { %v790_v60 = vld.sshfl [vmem:[#allocation1] sm:$0xff pattern:$0x73625140] }
  0xea   : > { %792 = vst [vmem:[#allocation1] ss:$4 sm:$0xff] %v707_v58  ;;  %v2681_v58 = vld [vmem:[%s3047_s11 + $0x11] sm:$0xff] }
  0xeb   : > { %844 = vmatmul.f32.gmra.mxu2 %v771_v57  ;;  %v1138_v9 = vrot.slane %v2681_v58, 2 }
  0xf1   : > { %v793_v8 = vld.sshfl [vmem:[#allocation1] sm:$0xff pattern:$0x73625140] }
  0xf2   : > { %959 = vst [vmem:[#allocation1] ss:$4 sm:$0xff] %v3162_v37  ;;  %v2654_v37 = vld [vmem:[%s3047_s11 + $0x28] sm:$0x3f] }
  0xf3   : > { %961 = vst [vmem:[#allocation1 + $0x1] ss:$4 sm:$0xff] %v243_v43  ;;  %847 = vmatmul.f32.gmra.mxu2 %v780_v34  ;;  %v911_v43 = vrot.slane %v2652_v13, 4 }
  0xf4   : > { %963 = vst [vmem:[#allocation1 + $0x2] ss:$4 sm:$0xff] %v244_v45  ;;  %v791_v45 = vld.sshfl [vmem:[#allocation1 + $0x20] sm:$0xff pattern:$0x73625140] }
  0xf5   : > { %965 = vst [vmem:[#allocation1 + $0x3] ss:$4 sm:$0xff] %v245_v46  ;;  %v2656_v46 = vld [vmem:[%s3047_s11 + $0x38] sm:$0x3f] }
  0xf6   : > { %967 = vst [vmem:[#allocation1 + $0x20] ss:$4 sm:$0xff] %v2652_v13  ;;  %v920_v23 = vrot.slane %v2656_v46, 2  ;;  %v1139_v13 = vrot.slane %v2681_v58, 4 }
  0xf7   : > { %969 = vst [vmem:[#allocation1 + $0x21] ss:$4 sm:$0xff] %v910_v19 }
  0xf8   : > { %971 = vst [vmem:[#allocation1 + $0x22] ss:$4 sm:$0xff] %v911_v43  ;;  %v2731_v43 = vld [vmem:[%s3954_s1 + $0x2b0] sm:$0xff] }
  0xf9   : > { %973 = vst [vmem:[#allocation1 + $0x23] ss:$4 sm:$0xff] %v3212_v59  ;;  %v2658_v59 = vld [vmem:[%s3047_s11 + $0x48] sm:$0x3f] }
  0xfa   : > { %v925_v26 = vrot.slane %v2658_v59, 2  ;;  %v926_v30 = vrot.slane %v2658_v59, 4 }
  0xfb   : > { %850 = vmatmul.f32.gmra.mxu2 %v781_v7  ;;  %v2734_v7 = vld [vmem:[%s3954_s1 + $0x2c8] sm:$0xff] }
  0xfc   : > { %v974_v16 = vld.sshfl [vmem:[#allocation1] sm:$0xff pattern:$0x73625140] }
  0xfd   : > { %1057 = vmatmul.f32.vlgmr.msrb.gmra.mxu3 %v974_v16  ;;  %976 = vst [vmem:[#allocation1] ss:$4 sm:$0xff] %v248_v63  ;;  %v1140_v16 = vrot.slane %v2681_v58, 6 }
  0xfe   : > { %977 = vst [vmem:[#allocation1 + $0x1] ss:$4 sm:$0xff] %v249_v1  ;;  %v915_v1 = vrot.slane %v2654_v37, 2 }
  0xff   : > { %978 = vst [vmem:[#allocation1 + $0x2] ss:$4 sm:$0xff] %v250_v2  ;;  %v916_v2 = vrot.slane %v2654_v37, 4 }
 0x100   : > { %979 = vst [vmem:[#allocation1 + $0x3] ss:$4 sm:$0xff] %v2654_v37  ;;  %v975_v63 = vld.sshfl [vmem:[#allocation1 + $0x20] sm:$0xff pattern:$0x73625140]  ;;  %v2730_v37 = vld [vmem:[%s3954_s1 + $0x2a8] sm:$0xff] }
 0x101   : > { %982 = vst [vmem:[#allocation1 + $0x22] ss:$4 sm:$0xff] %v3268_v18  ;;  %v930_v18 = vrot.slane %v2660_v33, 2 }
 0x102   : > { %980 = vst [vmem:[#allocation1 + $0x20] ss:$4 sm:$0xff] %v915_v1  ;;  %v2728_v1 = vld [vmem:[%s3954_s1 + $0x298] sm:$0xff] }
 0x103   : > { %853 = vmatmul.f32.gmra.mxu2 %v790_v60  ;;  %981 = vst [vmem:[#allocation1 + $0x21] ss:$4 sm:$0xff] %v916_v2 }
 0x104   : > { %983 = vst [vmem:[#allocation1 + $0x23] ss:$4 sm:$0xff] %v253_v20  ;;  %v931_v20 = vrot.slane %v2660_v33, 4 }
 0x105   : > { %1060 = vmatmul.f32.gmra.mxu3 %v975_v63  ;;  %v2683_v63 = vld [vmem:[%s3047_s11 + $0x21] sm:$0xff] }
 0x107   : > { %v984_v25 = vld.sshfl [vmem:[#allocation1] sm:$0xff pattern:$0x73625140] }
 0x108   : > { %986 = vst [vmem:[#allocation1] ss:$4 sm:$0xff] %v254_v22  ;;  %v921_v22 = vrot.slane %v2656_v46, 4 }
 0x109   : > { %987 = vst [vmem:[#allocation1 + $0x1] ss:$4 sm:$0xff] %v255_v38 }
 0x10a   : > { %988 = vst [vmem:[#allocation1 + $0x2] ss:$4 sm:$0xff] %v2656_v46  ;;  %v2729_v46 = vld [vmem:[%s3954_s1 + $0x2a0] sm:$0xff] }
 0x10b   : > { %989 = vst [vmem:[#allocation1 + $0x3] ss:$4 sm:$0xff] %v920_v23  ;;  %856 = vmatmul.f32.gmra.mxu2 %v791_v45  ;;  %v985_v38 = vld.sshfl [vmem:[#allocation1 + $0x20] sm:$0xff pattern:$0x73625140] }
 0x10c   : > { %990 = vst [vmem:[#allocation1 + $0x20] ss:$4 sm:$0xff] %v921_v22  ;;  %v2682_v45 = vld [vmem:[%s3047_s11 + $0x19] sm:$0x3f] }
 0x10d   : > { %1063 = vmatmul.f32.gmra.mxu3 %v984_v25  ;;  %991 = vst [vmem:[#allocation1 + $0x21] ss:$4 sm:$0xff] %v3316_v40  ;;  %v2663_v40 = vld [vmem:[%s3047_s11 + $0x70] sm:$0xff]  ;;  %v1141_v23 = vrot.slane %v2682_v45, 2  ;;  %v1142_v25 = vrot.slane %v2682_v45, 4 }
 0x10e   : > { %992 = vst [vmem:[#allocation1 + $0x22] ss:$4 sm:$0xff] %v258_v41  ;;  %v935_v41 = vrot.slane %v2662_v39, 2  ;;  %v939_v57 = vrot.slane %v2663_v40, 6 }
 0x10f   : > { %993 = vst [vmem:[#allocation1 + $0x23] ss:$4 sm:$0xff] %v259_v42  ;;  %v936_v42 = vrot.slane %v2662_v39, 4 }
 0x112   : > { %v994_v31 = vld.sshfl [vmem:[#allocation1] sm:$0xff pattern:$0x73625140] }
 0x113   : > { %996 = vst [vmem:[#allocation1] ss:$4 sm:$0xff] %v260_v47  ;;  %859 = vmatmul.f32.gmra.mxu2 %v793_v8  ;;  %v2733_v8 = vld [vmem:[%s3954_s1 + $0x2c0] sm:$0xff] }
 0x114   : > { %997 = vst [vmem:[#allocation1 + $0x1] ss:$4 sm:$0xff] %v2658_v59  ;;  %v1143_v59 = vrot.slane %v2683_v63, 2 }
 0x115   : > { %998 = vst [vmem:[#allocation1 + $0x2] ss:$4 sm:$0xff] %v925_v26  ;;  %1066 = vmatmul.f32.gmra.mxu3 %v985_v38  ;;  %v2727_v26 = vld [vmem:[%s3954_s1 + $0x290] sm:$0xff]  ;;  %v2684_v38 = vld [vmem:[%s3047_s11 + $0x29] sm:$0x3f] }
 0x116   : > { %999 = vst [vmem:[#allocation1 + $0x3] ss:$4 sm:$0xff] %v926_v30  ;;  %v995_v34 = vld.sshfl [vmem:[#allocation1 + $0x20] sm:$0xff pattern:$0x73625140]  ;;  %v1144_v30 = vrot.slane %v2683_v63, 4 }
 0x117   : > { %1000 = vst [vmem:[#allocation1 + $0x20] ss:$4 sm:$0xff] %v3332_v52 }
 0x118   : > { %1001 = vst [vmem:[#allocation1 + $0x21] ss:$4 sm:$0xff] %v263_v4  ;;  %v937_v4 = vrot.slane %v2663_v40, 2 }
 0x119   : > { %1002 = vst [vmem:[#allocation1 + $0x22] ss:$4 sm:$0xff] %v264_v5  ;;  %v2664_v5 = vld [vmem:[%s3047_s11 + $0x78] sm:$0x3f] }
 0x11a   : > { %1003 = vst [vmem:[#allocation1 + $0x23] ss:$4 sm:$0xff] %v265_v6  ;;  %v2738_v6 = vld [vmem:[%s3954_s1 + $0x2e8] sm:$0xff]  ;;  %v941_v56 = vrot.slane %v2664_v5, 4  ;;  %v940_v60 = vrot.slane %v2664_v5, 2 }
 0x11b   : > { %1505 = vmatpush.msra.mxu1 %v2738_v6 }
 0x11d   : > { %v1004_v47 = vld.sshfl [vmem:[#allocation1] sm:$0xff pattern:$0x73625140]  ;;  %1069 = vmatmul.f32.gmra.mxu3 %v994_v31  ;;  %1506 = vmatpush.msra.mxu1 %v2737_v53  ;;  %v1145_v31 = vrot.slane %v2683_v63, 6  ;;  %v2688_v53 = vld [vmem:[%s3047_s11 + $0x49] sm:$0x3f] }
 0x11e   : > { %1006 = vst [vmem:[#allocation1] ss:$4 sm:$0xff] %v2660_v33  ;;  %v2726_v33 = vld [vmem:[%s3954_s1 + $0x288] sm:$0xff] }
 0x11f   : > { %1007 = vst [vmem:[#allocation1 + $0x1] ss:$4 sm:$0xff] %v930_v18  ;;  %v2725_v18 = vld [vmem:[%s3954_s1 + $0x280] sm:$0xff] }
 0x120   : > { %1008 = vst [vmem:[#allocation1 + $0x2] ss:$4 sm:$0xff] %v931_v20  ;;  %v1146_v20 = vrot.slane %v2684_v38, 2 }
 0x121   : > { %1009 = vst [vmem:[#allocation1 + $0x3] ss:$4 sm:$0xff] %v3337_v55  ;;  %v1005_v52 = vld.sshfl [vmem:[#allocation1 + $0x20] sm:$0xff pattern:$0x73625140] }
 0x122   : > { %1010 = vst [vmem:[#allocation1 + $0x20] ss:$4 sm:$0xff] %v268_v62  ;;  %v2736_v62 = vld [vmem:[%s3954_s1 + $0x2d8] sm:$0xff] }
 0x123   : > { %1011 = vst [vmem:[#allocation1 + $0x21] ss:$4 sm:$0xff] %v269_v10  ;;  %v2735_v10 = vld [vmem:[%s3954_s1 + $0x2d0] sm:$0xff]  ;;  %1507 = vmatpush.msra.mxu1 %v2736_v62 }
 0x124   : > { %1012 = vst [vmem:[#allocation1 + $0x22] ss:$4 sm:$0xff] %v270_v11  ;;  %v938_v11 = vrot.slane %v2663_v40, 4 }
 0x125   : > { %1072 = vmatmul.f32.gmra.mxu3 %v995_v34  ;;  %1013 = vst [vmem:[#allocation1 + $0x23] ss:$4 sm:$0xff] %v2662_v39  ;;  %1508 = vmatpush.msra.mxu1 %v2735_v10  ;;  %v1147_v34 = vrot.slane %v2684_v38, 4 }
 0x127   : > { %1509 = vmatpush.msra.mxu1 %v2734_v7 }
 0x128   : > { %v1014_v50 = vld.sshfl [vmem:[#allocation1] sm:$0xff pattern:$0x73625140] }
 0x129   : > { %1016 = vst [vmem:[#allocation1] ss:$4 sm:$0xff] %v935_v41  ;;  %1510 = vmatpush.msra.mxu1 %v2733_v8 }
 0x12a   : > { %1017 = vst [vmem:[#allocation1 + $0x1] ss:$4 sm:$0xff] %v936_v42  ;;  %v2686_v42 = vld [vmem:[%s3047_s11 + $0x39] sm:$0x3f] }
 0x12b   : > { %1018 = vst [vmem:[#allocation1 + $0x2] ss:$4 sm:$0xff] %v2663_v40  ;;  %1511 = vmatpush.msra.mxu1 %v2732_v12 }
 0x12c   : > { %1019 = vst [vmem:[#allocation1 + $0x3] ss:$4 sm:$0xff] %v937_v4  ;;  %v1015_v0 = vld.sshfl [vmem:[#allocation1 + $0x20] sm:$0xff pattern:$0x73625140]  ;;  %v1151_v4 = vrot.slane %v2686_v42, 2 }
 0x12d   : > { %1075 = vmatmul.f32.gmra.mxu3 %v1004_v47  ;;  %1020 = vst [vmem:[#allocation1 + $0x20] ss:$4 sm:$0xff] %v938_v11  ;;  %1512 = vmatpush.msra.mxu1 %v2731_v43  ;;  %v2685_v47 = vld [vmem:[%s3047_s11 + $0x31] sm:$0xff]  ;;  %v1157_v11 = vrot.slane %v2688_v53, 4 }
 0x12e   : > { %1021 = vst [vmem:[#allocation1 + $0x21] ss:$4 sm:$0xff] %v939_v57  ;;  %v1148_v40 = vrot.slane %v2685_v47, 2  ;;  %v1149_v41 = vrot.slane %v2685_v47, 4  ;;  %v1150_v44 = vrot.slane %v2685_v47, 6  ;;  %v2689_v57 = vld [vmem:[%s3047_s11 + $0x51] sm:$0xff] }
 0x12f   : > { %1022 = vst [vmem:[#allocation1 + $0x22] ss:$4 sm:$0xff] %v2664_v5  ;;  %1513 = vmatpush.msra.mxu1 %v2730_v37  ;;  %v2693_v43 = vld [vmem:[%s3047_s11 + $0x71] sm:$0xff] }
 0x130   : > { %1023 = vst [vmem:[#allocation1 + $0x23] ss:$4 sm:$0xff] %v940_v60  ;;  %v2690_v60 = vld [vmem:[%s3047_s11 + $0x59] sm:$0x3f] }
 0x131   : > { %1514 = vmatpush.msra.mxu1 %v2729_v46  ;;  %v1161_v8 = vrot.slane %v2690_v60, 2  ;;  %v1168_v46 = vrot.slane %v2693_v43, 2 }
 0x133   : > { %v3510_v55 = vld.sshfl [vmem:[#allocation1] sm:$0xff pattern:$0x73625140]  ;;  %1515 = vmatpush.msra.mxu1 %v2728_v1 }
 0x134   : > { %1026 = vst [vmem:[#allocation1] ss:$4 sm:$0xff] %v941_v56 }
 0x135   : > { %1078 = vmatmul.f32.gmra.mxu3 %v1005_v52  ;;  %1516 = vmatpush.msra.mxu1 %v2727_v26  ;;  %v1152_v52 = vrot.slane %v2686_v42, 4 }
 0x137   : > { %v1025_v2 = vld.sshfl [vmem:[#allocation1 + $0x20] sm:$0xff pattern:$0x73625140]  ;;  %1517 = vmatpush.msra.mxu1 %v2726_v33 }
 0x138   : > { %1198 = vst [vmem:[#allocation1 + $0x20] ss:$4 sm:$0xff] %v2682_v45 }
 0x139   : > { %1200 = vst [vmem:[#allocation1 + $0x21] ss:$4 sm:$0xff] %v1141_v23  ;;  %1518 = vmatpush.msra.mxu1 %v2725_v18 }
 0x13a   : > { %1202 = vst [vmem:[#allocation1 + $0x22] ss:$4 sm:$0xff] %v1142_v25 }
 0x13b   : > { %v3525_v19 = vld.sshfl [vmem:[#allocation1] sm:$0xff pattern:$0x73625140]  ;;  %1204 = vst [vmem:[#allocation1 + $0x23] ss:$4 sm:$0xff] %v2683_v63 }
 0x13c   : > { %1190 = vst [vmem:[#allocation1] ss:$4 sm:$0xff] %v2681_v58  ;;  %v1158_v58 = vrot.slane %v2689_v57, 2 }
 0x13d   : > { %1192 = vst [vmem:[#allocation1 + $0x1] ss:$4 sm:$0xff] %v1138_v9  ;;  %1081 = vmatmul.f32.gmra.mxu3 %v1014_v50  ;;  %v2687_v50 = vld [vmem:[%s3047_s11 + $0x41] sm:$0xff]  ;;  %v1162_v9 = vrot.slane %v2690_v60, 4 }
 0x13e   : > { %1194 = vst [vmem:[#allocation1 + $0x2] ss:$4 sm:$0xff] %v1139_v13  ;;  %v1153_v5 = vrot.slane %v2687_v50, 2  ;;  %v1154_v56 = vrot.slane %v2687_v50, 4  ;;  %v1155_v62 = vrot.slane %v2687_v50, 6  ;;  %v2691_v13 = vld [vmem:[%s3047_s11 + $0x61] sm:$0xff] }
 0x13f   : > { %1196 = vst [vmem:[#allocation1 + $0x3] ss:$4 sm:$0xff] %v1140_v16  ;;  %v1160_v16 = vrot.slane %v2689_v57, 6  ;;  %v1163_v23 = vrot.slane %v2691_v13, 2  ;;  %v1164_v25 = vrot.slane %v2691_v13, 4 }
 0x142   : > { %v1206_v39 = vld.sshfl [vmem:[#allocation1 + $0x20] sm:$0xff pattern:$0x73625140] }
 0x143   : > { %1211 = vst [vmem:[#allocation1 + $0x20] ss:$4 sm:$0xff] %v1146_v20  ;;  %v2712_v20 = vld [vmem:[%s3047_s11 + $0x1a] sm:$0x3f] }
 0x144   : > { %1212 = vst [vmem:[#allocation1 + $0x21] ss:$4 sm:$0xff] %v1147_v34  ;;  %v2770_v34 = vld [vmem:[%s3954_s1 + $0x370] sm:$0xff] }
 0x145   : > { %1084 = vmatmul.f32.gmra.mxu3 %v1015_v0  ;;  %1213 = vst [vmem:[#allocation1 + $0x22] ss:$4 sm:$0xff] %v2685_v47  ;;  %v1159_v0 = vrot.slane %v2689_v57, 4  ;;  %v2771_v47 = vld [vmem:[%s3954_s1 + $0x378] sm:$0xff] }
 0x146   : > { %v1205_v22 = vld.sshfl [vmem:[#allocation1] sm:$0xff pattern:$0x73625140]  ;;  %1214 = vst [vmem:[#allocation1 + $0x23] ss:$4 sm:$0xff] %v1148_v40  ;;  %1737 = vmatpush.msra.mxu2 %v2771_v47  ;;  %v2769_v40 = vld [vmem:[%s3954_s1 + $0x368] sm:$0xff] }
 0x147   : > { %1288 = vmatmul.f32.vlgmr.msrb.gmra.mxu0 %v1205_v22  ;;  %1207 = vst [vmem:[#allocation1] ss:$4 sm:$0xff] %v1143_v59  ;;  %v2694_v59 = vld [vmem:[%s3047_s11 + $0x79] sm:$0x3f]  ;;  %v1170_v22 = vrot.slane %v2693_v43, 6 }
 0x148   : > { %1208 = vst [vmem:[#allocation1 + $0x1] ss:$4 sm:$0xff] %v1144_v30  ;;  %v1172_v26 = vrot.slane %v2694_v59, 4  ;;  %1738 = vmatpush.msra.mxu2 %v2770_v34 }
 0x149   : > { %1209 = vst [vmem:[#allocation1 + $0x2] ss:$4 sm:$0xff] %v1145_v31  ;;  %v1169_v31 = vrot.slane %v2693_v43, 4 }
 0x14a   : > { %1210 = vst [vmem:[#allocation1 + $0x3] ss:$4 sm:$0xff] %v2684_v38  ;;  %v1171_v38 = vrot.slane %v2694_v59, 2  ;;  %1739 = vmatpush.msra.mxu2 %v2769_v40 }
 0x14d   : > { %1087 = vmatmul.f32.gmra.mxu3 %v3510_v55  ;;  %v1216_v6 = vld.sshfl [vmem:[#allocation1 + $0x20] sm:$0xff pattern:$0x73625140]  ;;  %v1156_v55 = vrot.slane %v2688_v53, 2 }
 0x14e   : > { %1222 = vst [vmem:[#allocation1 + $0x21] ss:$4 sm:$0xff] %v2687_v50  ;;  %v2764_v50 = vld [vmem:[%s3954_s1 + $0x340] sm:$0xff] }
 0x14f   : > { %1291 = vmatmul.f32.gmra.mxu0 %v1206_v39  ;;  %1221 = vst [vmem:[#allocation1 + $0x20] ss:$4 sm:$0xff] %v1152_v52  ;;  %v1372_v39 = vrot.slane %v2712_v20, 2 }
 0x150   : > { %1223 = vst [vmem:[#allocation1 + $0x22] ss:$4 sm:$0xff] %v1153_v5  ;;  %v2716_v5 = vld [vmem:[%s3047_s11 + $0x3a] sm:$0x3f] }
 0x151   : > { %v1215_v49 = vld.sshfl [vmem:[#allocation1] sm:$0xff pattern:$0x73625140]  ;;  %1224 = vst [vmem:[#allocation1 + $0x23] ss:$4 sm:$0xff] %v1154_v56 }
 0x152   : > { %1217 = vst [vmem:[#allocation1] ss:$4 sm:$0xff] %v1149_v41  ;;  %v2714_v41 = vld [vmem:[%s3047_s11 + $0x2a] sm:$0x3f]  ;;  %v2760_v56 = vld [vmem:[%s3954_s1 + $0x320] sm:$0xff] }
 0x153   : > { %1218 = vst [vmem:[#allocation1 + $0x1] ss:$4 sm:$0xff] %v1150_v44  ;;  %v2766_v44 = vld [vmem:[%s3954_s1 + $0x350] sm:$0xff] }
 0x154   : > { %1219 = vst [vmem:[#allocation1 + $0x2] ss:$4 sm:$0xff] %v2686_v42  ;;  %v2767_v42 = vld [vmem:[%s3954_s1 + $0x358] sm:$0xff] }
 0x155   : > { %1220 = vst [vmem:[#allocation1 + $0x3] ss:$4 sm:$0xff] %v1151_v4  ;;  %1090 = vmatmul.f32.gmra.mxu3 %v1025_v2  ;;  %v1165_v2 = vrot.slane %v2691_v13, 6  ;;  %v1378_v4 = vrot.slane %v2714_v41, 4 }
 0x157   : > { %1294 = vmatmul.f32.gmra.mxu0 %v1215_v49  ;;  %v1377_v49 = vrot.slane %v2714_v41, 2 }
 0x158   : > { %v1226_v7 = vld.sshfl [vmem:[#allocation1 + $0x20] sm:$0xff pattern:$0x73625140] }
 0x159   : > { %1231 = vst [vmem:[#allocation1 + $0x20] ss:$4 sm:$0xff] %v2689_v57  ;;  %v2756_v57 = vld [vmem:[%s3954_s1 + $0x300] sm:$0xff] }
 0x15a   : > { %1232 = vst [vmem:[#allocation1 + $0x21] ss:$4 sm:$0xff] %v1158_v58 }
 0x15b   : > { %1233 = vst [vmem:[#allocation1 + $0x22] ss:$4 sm:$0xff] %v1159_v0 }
 0x15c   : > { %v1225_v10 = vld.sshfl [vmem:[#allocation1] sm:$0xff pattern:$0x73625140]  ;;  %1234 = vst [vmem:[#allocation1 + $0x23] ss:$4 sm:$0xff] %v1160_v16  ;;  %v3652_v16 = vpop.f32.mrf.mxu2 }
 0x15d   : > { %1227 = vst [vmem:[#allocation1] ss:$4 sm:$0xff] %v1155_v62  ;;  %1093 = vmatmul.f32.gmra.mxu3 %v3525_v19  ;;  %v2692_v19 = vld [vmem:[%s3047_s11 + $0x69] sm:$0x3f]  ;;  %v3625_v62 = vpop.f32.mrf.mxu1 }
 0x15e   : > { %1228 = vst [vmem:[#allocation1 + $0x1] ss:$4 sm:$0xff] %v2688_v53  ;;  %v1166_v45 = vrot.slane %v2692_v19, 2  ;;  %v1167_v37 = vrot.slane %v2692_v19, 4  ;;  %v2761_v53 = vld [vmem:[%s3954_s1 + $0x328] sm:$0xff] }
 0x15f   : > { %1297 = vmatmul.f32.gmra.mxu0 %v1216_v6  ;;  %1229 = vst [vmem:[#allocation1 + $0x2] ss:$4 sm:$0xff] %v1156_v55  ;;  %v2718_v55 = vld [vmem:[%s3047_s11 + $0x4a] sm:$0x3f] }
 0x160   : > { %1230 = vst [vmem:[#allocation1 + $0x3] ss:$4 sm:$0xff] %v1157_v11  ;;  %v1387_v11 = vrot.slane %v2718_v55, 2 }
 0x163   : > { %v1236_v1 = vld.sshfl [vmem:[#allocation1 + $0x20] sm:$0xff pattern:$0x73625140] }
 0x164   : > { %1241 = vst [vmem:[#allocation1 + $0x20] ss:$4 sm:$0xff] %v1163_v23 }
 0x165   : > { %1242 = vst [vmem:[#allocation1 + $0x21] ss:$4 sm:$0xff] %v1164_v25  ;;  %v3649_v0 = vpop.f32.mrf.mxu1  ;;  %v2723_v25 = vld [vmem:[%s3047_s11 + $0x72] sm:$0xff] }
 0x166   : > { %1243 = vst [vmem:[#allocation1 + $0x22] ss:$4 sm:$0xff] %v1165_v2  ;;  %v1401_v47 = vrot.slane %v2723_v25, 6 }
 0x167   : > { %1300 = vmatmul.f32.gmra.mxu0 %v1225_v10  ;;  %v1235_v12 = vld.sshfl [vmem:[#allocation1] sm:$0xff pattern:$0x73625140]  ;;  %1244 = vst [vmem:[#allocation1 + $0x23] ss:$4 sm:$0xff] %v2692_v19  ;;  %v2757_v10 = vld [vmem:[%s3954_s1 + $0x308] sm:$0xff] }
 0x168   : > { %1237 = vst [vmem:[#allocation1] ss:$4 sm:$0xff] %v2690_v60  ;;  %v1388_v60 = vrot.slane %v2718_v55, 4  ;;  %v2721_v19 = vld [vmem:[%s3047_s11 + $0x62] sm:$0xff] }
 0x169   : > { %1238 = vst [vmem:[#allocation1 + $0x1] ss:$4 sm:$0xff] %v1161_v8  ;;  %v2720_v8 = vld [vmem:[%s3047_s11 + $0x5a] sm:$0x3f]  ;;  %v1396_v23 = vrot.slane %v2721_v19, 6 }
 0x16a   : > { %1239 = vst [vmem:[#allocation1 + $0x2] ss:$4 sm:$0xff] %v1162_v9 }
 0x16b   : > { %1240 = vst [vmem:[#allocation1 + $0x3] ss:$4 sm:$0xff] %v2691_v13 }
 0x16e   : > { %v1246_v33 = vld.sshfl [vmem:[#allocation1 + $0x20] sm:$0xff pattern:$0x73625140] }
 0x16f   : > { %1303 = vmatmul.f32.gmra.mxu0 %v1226_v7  ;;  %1251 = vst [vmem:[#allocation1 + $0x20] ss:$4 sm:$0xff] %v1169_v31  ;;  %v2800_v31 = vld [vmem:[%s3954_s1 + $0x3f0] sm:$0xff] }
 0x170   : > { %1252 = vst [vmem:[#allocation1 + $0x21] ss:$4 sm:$0xff] %v1170_v22  ;;  %v1399_v22 = vrot.slane %v2723_v25, 2 }
 0x171   : > { %1253 = vst [vmem:[#allocation1 + $0x22] ss:$4 sm:$0xff] %v2694_v59  ;;  %v2801_v59 = vld [vmem:[%s3954_s1 + $0x3f8] sm:$0xff] }
 0x172   : > { %v1245_v63 = vld.sshfl [vmem:[#allocation1] sm:$0xff pattern:$0x73625140]  ;;  %1254 = vst [vmem:[#allocation1 + $0x23] ss:$4 sm:$0xff] %v1171_v38  ;;  %1968 = vmatpush.msra.mxu3 %v2801_v59 }
 0x173   : > { %1247 = vst [vmem:[#allocation1] ss:$4 sm:$0xff] %v1166_v45  ;;  %v2722_v45 = vld [vmem:[%s3047_s11 + $0x6a] sm:$0x3f] }
 0x174   : > { %1248 = vst [vmem:[#allocation1 + $0x1] ss:$4 sm:$0xff] %v1167_v37  ;;  %v1394_v37 = vrot.slane %v2721_v19, 2  ;;  %v1398_v2 = vrot.slane %v2722_v45, 4  ;;  %1969 = vmatpush.msra.mxu3 %v2800_v31  ;;  %v2747_v31 = vld [vmem:[%s3047_s11 + $0x48] sm:$0x3f] }
 0x175   : > { %1249 = vst [vmem:[#allocation1 + $0x2] ss:$4 sm:$0xff] %v2693_v43  ;;  %v3655_v43 = vpop.f32.mrf.mxu1 }
 0x176   : > { %1250 = vst [vmem:[#allocation1 + $0x3] ss:$4 sm:$0xff] %v1168_v46  ;;  %v1395_v46 = vrot.slane %v2721_v19, 4 }
 0x177   : > { %1306 = vmatmul.f32.gmra.mxu0 %v1235_v12 }
 0x17d   : > { %v1255_v30 = vld.sshfl [vmem:[#allocation1] sm:$0xff pattern:$0x73625140] }
 0x17e   : > { %1257 = vst [vmem:[#allocation1] ss:$4 sm:$0xff] %v1172_v26  ;;  %v3662_v26 = vpop.f32.mrf.mxu0 }
 0x17f   : > { %1309 = vmatmul.f32.gmra.mxu0 %v1236_v1  ;;  %v1397_v1 = vrot.slane %v2722_v45, 2 }
 0x185   : > { %v3563_v18 = vld.sshfl [vmem:[#allocation1] sm:$0xff pattern:$0x73625140] }
 0x186   : > { %1421 = vst [vmem:[#allocation1] ss:$4 sm:$0xff] %v3374_v24  ;;  %v2768_v24 = vld [vmem:[%s3954_s1 + $0x360] sm:$0xff]  ;;  %v3675_v40 = vpop.f32.mrf.mxu0 }
 0x187   : > { %1423 = vst [vmem:[#allocation1 + $0x1] ss:$4 sm:$0xff] %v678_v27  ;;  %1312 = vmatmul.f32.gmra.mxu0 %v1245_v63  ;;  %v1373_v27 = vrot.slane %v2712_v20, 4  ;;  %1740 = vmatpush.msra.mxu2 %v2768_v24  ;;  %v2799_v24 = vld [vmem:[%s3954_s1 + $0x3e8] sm:$0xff] }
 0x188   : > { %1425 = vst [vmem:[#allocation1 + $0x2] ss:$4 sm:$0xff] %v679_v28  ;;  %v1256_v28 = vld.sshfl [vmem:[#allocation1 + $0x20] sm:$0xff pattern:$0x73625140]  ;;  %1970 = vmatpush.msra.mxu3 %v2799_v24  ;;  %v2825_v24 = vld [vmem:[%s3954_s1 + $0x448] sm:$0xff] }
 0x189   : > { %1427 = vst [vmem:[#allocation1 + $0x3] ss:$4 sm:$0xff] %v680_v29  ;;  %1741 = vmatpush.msra.mxu2 %v2767_v42 }
 0x18a   : > { %1429 = vst [vmem:[#allocation1 + $0x20] ss:$4 sm:$0xff] %v2712_v20  ;;  %v2724_v20 = vld [vmem:[%s3047_s11 + $0x7a] sm:$0x3f] }
 0x18b   : > { %1431 = vst [vmem:[#allocation1 + $0x21] ss:$4 sm:$0xff] %v1372_v39  ;;  %1742 = vmatpush.msra.mxu2 %v2766_v44  ;;  %v1402_v34 = vrot.slane %v2724_v20, 2 }
 0x18c   : > { %1433 = vst [vmem:[#allocation1 + $0x22] ss:$4 sm:$0xff] %v1373_v27  ;;  %v2831_v27 = vld [vmem:[%s3954_s1 + $0x478] sm:$0xff] }
 0x18d   : > { %1435 = vst [vmem:[#allocation1 + $0x23] ss:$4 sm:$0xff] %v3388_v32  ;;  %v2763_v32 = vld [vmem:[%s3954_s1 + $0x338] sm:$0xff]  ;;  %2199 = vmatpush.msra.mxu0 %v2831_v27 }
 0x18f   : > { %1315 = vmatmul.f32.gmra.mxu0 %v1246_v33  ;;  %v3669_v33 = vpop.f32.mrf.mxu1 }
 0x190   : > { %v1436_v29 = vld.sshfl [vmem:[#allocation1] sm:$0xff pattern:$0x73625140] }
 0x191   : > { %1519 = vmatmul.f32.vlgmr.msra.gmra.mxu1 %v1436_v29  ;;  %1438 = vst [vmem:[#allocation1] ss:$4 sm:$0xff] %v683_v51  ;;  %v2765_v51 = vld [vmem:[%s3954_s1 + $0x348] sm:$0xff]  ;;  %v1403_v29 = vrot.slane %v2724_v20, 4 }
 0x192   : > { %1439 = vst [vmem:[#allocation1 + $0x1] ss:$4 sm:$0xff] %v684_v35  ;;  %1743 = vmatpush.msra.mxu2 %v2765_v51  ;;  %v2762_v35 = vld [vmem:[%s3954_s1 + $0x330] sm:$0xff]  ;;  %v2742_v51 = vld [vmem:[%s3047_s11 + $0x20] sm:$0xff] }
 0x193   : > { %1440 = vst [vmem:[#allocation1 + $0x2] ss:$4 sm:$0xff] %v685_v36  ;;  %v1382_v36 = vrot.slane %v2716_v5, 2 }
 0x194   : > { %1441 = vst [vmem:[#allocation1 + $0x3] ss:$4 sm:$0xff] %v2714_v41  ;;  %v1437_v52 = vld.sshfl [vmem:[#allocation1 + $0x20] sm:$0xff pattern:$0x73625140]  ;;  %1744 = vmatpush.msra.mxu2 %v2764_v50  ;;  %v2830_v41 = vld [vmem:[%s3954_s1 + $0x470] sm:$0xff] }
 0x195   : > { %1442 = vst [vmem:[#allocation1 + $0x20] ss:$4 sm:$0xff] %v1377_v49  ;;  %2200 = vmatpush.msra.mxu0 %v2830_v41  ;;  %v474_v49 = vpop.f32.mrf.mxu0  ;;  %v2798_v50 = vld [vmem:[%s3954_s1 + $0x3e0] sm:$0xff]  ;;  %v1616_v41 = vrot.slane %v2747_v31, 2 }
 0x196   : > { %1443 = vst [vmem:[#allocation1 + $0x21] ss:$4 sm:$0xff] %v1378_v4  ;;  %1745 = vmatpush.msra.mxu2 %v2763_v32  ;;  %1971 = vmatpush.msra.mxu3 %v2798_v50  ;;  %v1603_v32 = vrot.slane %v2742_v51, 2 }
 0x197   : > { %1318 = vmatmul.f32.gmra.mxu0 %v1255_v30  ;;  %1444 = vst [vmem:[#allocation1 + $0x22] ss:$4 sm:$0xff] %v3399_v48  ;;  %v2758_v48 = vld [vmem:[%s3954_s1 + $0x310] sm:$0xff]  ;;  %v3664_v30 = vpop.f32.mrf.mxu2  ;;  %v3687_v44 = vpop.f32.mrf.mxu1 }
 0x198   : > { %1445 = vst [vmem:[#allocation1 + $0x23] ss:$4 sm:$0xff] %v688_v61  ;;  %1746 = vmatpush.msra.mxu2 %v2762_v35  ;;  %v1383_v61 = vrot.slane %v2716_v5, 4  ;;  %v2743_v35 = vld [vmem:[%s3047_s11 + $0x28] sm:$0x3f] }
 0x199   : > { %1522 = vmatmul.f32.gmra.mxu1 %v1437_v52  ;;  %v2829_v52 = vld [vmem:[%s3954_s1 + $0x468] sm:$0xff] }
 0x19a   : > { %1747 = vmatpush.msra.mxu2 %v2761_v53  ;;  %2201 = vmatpush.msra.mxu0 %v2829_v52  ;;  %v2748_v52 = vld [vmem:[%s3047_s11 + $0x50] sm:$0xff] }
 0x19b   : > { %v1446_v6 = vld.sshfl [vmem:[#allocation1] sm:$0xff pattern:$0x73625140] }
 0x19c   : > { %1448 = vst [vmem:[#allocation1] ss:$4 sm:$0xff] %v689_v3  ;;  %1748 = vmatpush.msra.mxu2 %v2760_v56  ;;  %v2759_v3 = vld [vmem:[%s3954_s1 + $0x318] sm:$0xff]  ;;  %v1605_v56 = vrot.slane %v2742_v51, 6 }
 0x19d   : > { %1449 = vst [vmem:[#allocation1 + $0x1] ss:$4 sm:$0xff] %v690_v54 }
 0x19e   : > { %1450 = vst [vmem:[#allocation1 + $0x2] ss:$4 sm:$0xff] %v2716_v5  ;;  %1749 = vmatpush.msra.mxu2 %v2759_v3  ;;  %v3698_v5 = vpop.f32.mrf.mxu3  ;;  %v1607_v3 = vrot.slane %v2743_v35, 4 }
 0x19f   : > { %1451 = vst [vmem:[#allocation1 + $0x3] ss:$4 sm:$0xff] %v1382_v36  ;;  %1321 = vmatmul.f32.gmra.mxu0 %v1256_v28  ;;  %v1447_v54 = vld.sshfl [vmem:[#allocation1 + $0x20] sm:$0xff pattern:$0x73625140]  ;;  %v3677_v28 = vpop.f32.mrf.mxu2  ;;  %v1604_v36 = vrot.slane %v2742_v51, 4 }
 0x1a0   : > { %1452 = vst [vmem:[#allocation1 + $0x20] ss:$4 sm:$0xff] %v1383_v61  ;;  %1750 = vmatpush.msra.mxu2 %v2758_v48  ;;  %v1606_v61 = vrot.slane %v2743_v35, 2  ;;  %v3705_v48 = vpop.f32.mrf.mxu1 }
 0x1a1   : > { %1525 = vmatmul.f32.gmra.mxu1 %v1446_v6  ;;  %1453 = vst [vmem:[#allocation1 + $0x21] ss:$4 sm:$0xff] %v3418_v14  ;;  %v1392_v14 = vrot.slane %v2720_v8, 2 }
 0x1a2   : > { %1454 = vst [vmem:[#allocation1 + $0x22] ss:$4 sm:$0xff] %v693_v15  ;;  %1751 = vmatpush.msra.mxu2 %v2757_v10  ;;  %v2719_v15 = vld [vmem:[%s3047_s11 + $0x52] sm:$0xff] }
 0x1a3   : > { %1455 = vst [vmem:[#allocation1 + $0x23] ss:$4 sm:$0xff] %v694_v17  ;;  %v1389_v7 = vrot.slane %v2719_v15, 2  ;;  %v1390_v9 = vrot.slane %v2719_v15, 4  ;;  %v1391_v12 = vrot.slane %v2719_v15, 6 }
 0x1a4   : > { %1752 = vmatpush.msra.mxu2 %v2756_v57  ;;  %v2744_v57 = vld [vmem:[%s3047_s11 + $0x30] sm:$0xff] }
 0x1a6   : > { %v1456_v58 = vld.sshfl [vmem:[#allocation1] sm:$0xff pattern:$0x73625140] }
 0x1a7   : > { %1458 = vst [vmem:[#allocation1] ss:$4 sm:$0xff] %v695_v21  ;;  %1324 = vmatmul.f32.gmra.mxu0 %v3563_v18  ;;  %v1393_v21 = vrot.slane %v2720_v8, 4  ;;  %v1400_v18 = vrot.slane %v2723_v25, 4  ;;  %v3690_v4 = vpop.f32.mrf.mxu2 }
 0x1a8   : > { %1459 = vst [vmem:[#allocation1 + $0x1] ss:$4 sm:$0xff] %v2718_v55  ;;  %v2797_v55 = vld [vmem:[%s3954_s1 + $0x3d8] sm:$0xff] }
 0x1a9   : > { %1528 = vmatmul.f32.gmra.mxu1 %v1447_v54  ;;  %1460 = vst [vmem:[#allocation1 + $0x2] ss:$4 sm:$0xff] %v1387_v11  ;;  %v3707_v54 = vpop.f32.mrf.mxu0  ;;  %v2828_v11 = vld [vmem:[%s3954_s1 + $0x460] sm:$0xff]  ;;  %1972 = vmatpush.msra.mxu3 %v2797_v55  ;;  %v2789_v55 = vld [vmem:[%s3954_s1 + $0x398] sm:$0xff] }
 0x1aa   : > { %1461 = vst [vmem:[#allocation1 + $0x3] ss:$4 sm:$0xff] %v1388_v60  ;;  %v1457_v17 = vld.sshfl [vmem:[#allocation1 + $0x20] sm:$0xff pattern:$0x73625140]  ;;  %2202 = vmatpush.msra.mxu0 %v2828_v11  ;;  %v1608_v60 = vrot.slane %v2744_v57, 2 }
 0x1ab   : > { %1462 = vst [vmem:[#allocation1 + $0x20] ss:$4 sm:$0xff] %v2719_v15  ;;  %v1609_v15 = vrot.slane %v2744_v57, 4 }
 0x1ac   : > { %1463 = vst [vmem:[#allocation1 + $0x21] ss:$4 sm:$0xff] %v1389_v7  ;;  %v1610_v7 = vrot.slane %v2744_v57, 6 }
 0x1ad   : > { %1464 = vst [vmem:[#allocation1 + $0x22] ss:$4 sm:$0xff] %v1390_v9  ;;  %v2745_v9 = vld [vmem:[%s3047_s11 + $0x38] sm:$0x3f] }
 0x1ae   : > { %1465 = vst [vmem:[#allocation1 + $0x23] ss:$4 sm:$0xff] %v1391_v12 }
 0x1af   : > { %v3712_v10 = vpop.f32.mrf.mxu2 }
 0x1b1   : > { %1531 = vmatmul.f32.gmra.mxu1 %v1456_v58  ;;  %v1466_v13 = vld.sshfl [vmem:[#allocation1] sm:$0xff pattern:$0x73625140]  ;;  %v3718_v58 = vpop.f32.mrf.mxu3 }
 0x1b2   : > { %1468 = vst [vmem:[#allocation1] ss:$4 sm:$0xff] %v2720_v8 }
 0x1b3   : > { %1469 = vst [vmem:[#allocation1 + $0x1] ss:$4 sm:$0xff] %v1392_v14  ;;  %v2796_v14 = vld [vmem:[%s3954_s1 + $0x3d0] sm:$0xff] }
 0x1b4   : > { %1470 = vst [vmem:[#allocation1 + $0x2] ss:$4 sm:$0xff] %v1393_v21  ;;  %v2827_v21 = vld [vmem:[%s3954_s1 + $0x458] sm:$0xff]  ;;  %1973 = vmatpush.msra.mxu3 %v2796_v14 }
 0x1b5   : > { %1471 = vst [vmem:[#allocation1 + $0x3] ss:$4 sm:$0xff] %v2721_v19  ;;  %v1467_v63 = vld.sshfl [vmem:[#allocation1 + $0x20] sm:$0xff pattern:$0x73625140]  ;;  %v2795_v19 = vld [vmem:[%s3954_s1 + $0x3c8] sm:$0xff]  ;;  %2203 = vmatpush.msra.mxu0 %v2827_v21 }
 0x1b6   : > { %1475 = vst [vmem:[#allocation1 + $0x23] ss:$4 sm:$0xff] %v2722_v45  ;;  %v1612_v45 = vrot.slane %v2745_v9, 4  ;;  %1974 = vmatpush.msra.mxu3 %v2795_v19  ;;  %v2786_v21 = vld [vmem:[%s3954_s1 + $0x380] sm:$0xff] }
 0x1b7   : > { %1472 = vst [vmem:[#allocation1 + $0x20] ss:$4 sm:$0xff] %v1394_v37  ;;  %v2750_v19 = vld [vmem:[%s3047_s11 + $0x60] sm:$0xff] }
 0x1b8   : > { %1473 = vst [vmem:[#allocation1 + $0x21] ss:$4 sm:$0xff] %v1395_v46  ;;  %v612_v46 = vpop.f32.mrf.mxu1 }
 0x1b9   : > { %1534 = vmatmul.f32.gmra.mxu1 %v1457_v17  ;;  %1474 = vst [vmem:[#allocation1 + $0x22] ss:$4 sm:$0xff] %v1396_v23  ;;  %v1611_v17 = vrot.slane %v2745_v9, 2  ;;  %v3734_v37 = vpop.f32.mrf.mxu3  ;;  %v2794_v23 = vld [vmem:[%s3954_s1 + $0x3c0] sm:$0xff] }
 0x1ba   : > { %1975 = vmatpush.msra.mxu3 %v2794_v23  ;;  %v1624_v23 = vrot.slane %v2750_v19, 4 }
 0x1bc   : > { %v1476_v38 = vld.sshfl [vmem:[#allocation1] sm:$0xff pattern:$0x73625140] }
 0x1bd   : > { %1478 = vst [vmem:[#allocation1] ss:$4 sm:$0xff] %v1397_v1 }
 0x1be   : > { %1479 = vst [vmem:[#allocation1 + $0x1] ss:$4 sm:$0xff] %v1398_v2  ;;  %v613_v2 = vadd.f32 %v612_v46, %v474_v49 }
 0x1bf   : > { %1480 = vst [vmem:[#allocation1 + $0x2] ss:$4 sm:$0xff] %v2723_v25 }
 0x1c0   : > { %1481 = vst [vmem:[#allocation1 + $0x3] ss:$4 sm:$0xff] %v1399_v22  ;;  %v1477_v39 = vld.sshfl [vmem:[#allocation1 + $0x20] sm:$0xff pattern:$0x73625140]  ;;  %v615_v50 = vpop.f32.mrf.mxu1 }
 0x1c1   : > { %1537 = vmatmul.f32.gmra.mxu1 %v1466_v13  ;;  %1482 = vst [vmem:[#allocation1 + $0x20] ss:$4 sm:$0xff] %v1400_v18  ;;  %v3729_v13 = vpop.f32.mrf.mxu2  ;;  %v2793_v18 = vld [vmem:[%s3954_s1 + $0x3b8] sm:$0xff]  ;;  %v1064_v27 = vpop.f32.mrf.mxu3 }
 0x1c2   : > { %1483 = vst [vmem:[#allocation1 + $0x21] ss:$4 sm:$0xff] %v1401_v47  ;;  %1976 = vmatpush.msra.mxu3 %v2793_v18 }
 0x1c3   : > { %1484 = vst [vmem:[#allocation1 + $0x22] ss:$4 sm:$0xff] %v2724_v20  ;;  %v2826_v20 = vld [vmem:[%s3954_s1 + $0x450] sm:$0xff] }
 0x1c4   : > { %1485 = vst [vmem:[#allocation1 + $0x23] ss:$4 sm:$0xff] %v1402_v34  ;;  %v3721_v12 = vpop.f32.mrf.mxu0  ;;  %v2792_v34 = vld [vmem:[%s3954_s1 + $0x3b0] sm:$0xff]  ;;  %2204 = vmatpush.msra.mxu0 %v2826_v20 }
 0x1c5   : > { %1977 = vmatpush.msra.mxu3 %v2792_v34 }
 0x1c6   : > { %2205 = vmatpush.msra.mxu0 %v2825_v24  ;;  %v2753_v24 = vld [vmem:[%s3047_s11 + $0x78] sm:$0x3f] }
 0x1c7   : > { %v3685_v42 = vld.sshfl [vmem:[#allocation1] sm:$0xff pattern:$0x73625140] }
 0x1c8   : > { %1488 = vst [vmem:[#allocation1] ss:$4 sm:$0xff] %v1403_v29 }
 0x1c9   : > { %1540 = vmatmul.f32.gmra.mxu1 %v1467_v63  ;;  %v2746_v63 = vld [vmem:[%s3047_s11 + $0x40] sm:$0xff]  ;;  %v830_v47 = vpop.f32.mrf.mxu2 }
 0x1ca   : > { %v1613_v1 = vrot.slane %v2746_v63, 2  ;;  %v1614_v59 = vrot.slane %v2746_v63, 4  ;;  %v1615_v22 = vrot.slane %v2746_v63, 6 }
 0x1cb   : > { %v3701_v6 = vld.sshfl [vmem:[#allocation1 + $0x20] sm:$0xff pattern:$0x73625140] }
 0x1cc   : > { %1663 = vst [vmem:[#allocation1 + $0x20] ss:$4 sm:$0xff] %v2743_v35  ;;  %v616_v35 = vadd.f32 %v615_v50, %v3707_v54  ;;  %v2788_v54 = vld [vmem:[%s3954_s1 + $0x390] sm:$0xff] }
 0x1cd   : > { %1665 = vst [vmem:[#allocation1 + $0x21] ss:$4 sm:$0xff] %v1606_v61  ;;  %v1619_v61 = vrot.slane %v2748_v52, 4 }
 0x1ce   : > { %1667 = vst [vmem:[#allocation1 + $0x22] ss:$4 sm:$0xff] %v1607_v3 }
 0x1cf   : > { %v3703_v53 = vld.sshfl [vmem:[#allocation1] sm:$0xff pattern:$0x73625140]  ;;  %1669 = vst [vmem:[#allocation1 + $0x23] ss:$4 sm:$0xff] %v2744_v57 }
 0x1d0   : > { %1655 = vst [vmem:[#allocation1] ss:$4 sm:$0xff] %v2742_v51  ;;  %v1617_v51 = vrot.slane %v2747_v31, 4  ;;  %v2749_v57 = vld [vmem:[%s3047_s11 + $0x58] sm:$0x3f] }
 0x1d1   : > { %1657 = vst [vmem:[#allocation1 + $0x1] ss:$4 sm:$0xff] %v1603_v32  ;;  %1543 = vmatmul.f32.gmra.mxu1 %v1476_v38  ;;  %v3742_v38 = vpop.f32.mrf.mxu0  ;;  %v2790_v32 = vld [vmem:[%s3954_s1 + $0x3a0] sm:$0xff]  ;;  %v833_v11 = vpop.f32.mrf.mxu2  ;;  %v1621_v14 = vrot.slane %v2749_v57, 2  ;;  %v1622_v46 = vrot.slane %v2749_v57, 4 }
 0x1d2   : > { %1659 = vst [vmem:[#allocation1 + $0x2] ss:$4 sm:$0xff] %v1604_v36  ;;  %v1618_v36 = vrot.slane %v2748_v52, 2 }
 0x1d3   : > { %1661 = vst [vmem:[#allocation1 + $0x3] ss:$4 sm:$0xff] %v1605_v56 }
 0x1d6   : > { %v1671_v25 = vld.sshfl [vmem:[#allocation1 + $0x20] sm:$0xff pattern:$0x73625140] }
 0x1d7   : > { %1676 = vst [vmem:[#allocation1 + $0x20] ss:$4 sm:$0xff] %v1611_v17 }
 0x1d8   : > { %1677 = vst [vmem:[#allocation1 + $0x21] ss:$4 sm:$0xff] %v1612_v45 }
 0x1d9   : > { %1546 = vmatmul.f32.gmra.mxu1 %v1477_v39  ;;  %1678 = vst [vmem:[#allocation1 + $0x22] ss:$4 sm:$0xff] %v2746_v63  ;;  %v865_v39 = vadd.f32 %v830_v47, %v613_v2  ;;  %v1295_v3 = vpop.f32.mrf.mxu0  ;;  %v1623_v63 = vrot.slane %v2750_v19, 2  ;;  %v1625_v2 = vrot.slane %v2750_v19, 6  ;;  %v836_v50 = vpop.f32.mrf.mxu2 }
 0x1da   : > { %v1670_v8 = vld.sshfl [vmem:[#allocation1] sm:$0xff pattern:$0x73625140]  ;;  %1679 = vst [vmem:[#allocation1 + $0x23] ss:$4 sm:$0xff] %v1613_v1 }
 0x1db   : > { %1753 = vmatmul.f32.vlgmr.msra.gmra.mxu2 %v1670_v8  ;;  %1672 = vst [vmem:[#allocation1] ss:$4 sm:$0xff] %v1608_v60  ;;  %v1099_v49 = vadd.f32 %v1064_v27, %v865_v39  ;;  %v866_v60 = vadd.f32 %v833_v11, %v616_v35  ;;  %v2787_v8 = vld [vmem:[%s3954_s1 + $0x388] sm:$0xff] }
 0x1dc   : > { %1673 = vst [vmem:[#allocation1 + $0x1] ss:$4 sm:$0xff] %v1609_v15  ;;  %v2824_v15 = vld [vmem:[%s3954_s1 + $0x440] sm:$0xff]  ;;  %v2755_v11 = vld [vmem:[%s3047_s11 + $0x88] sm:$0x3f] }
 0x1dd   : > { %1674 = vst [vmem:[#allocation1 + $0x2] ss:$4 sm:$0xff] %v1610_v7  ;;  %v1620_v7 = vrot.slane %v2748_v52, 6  ;;  %2206 = vmatpush.msra.mxu0 %v2824_v15  ;;  %v1636_v15 = vrot.slane %v2755_v11, 2 }
 0x1de   : > { %1675 = vst [vmem:[#allocation1 + $0x3] ss:$4 sm:$0xff] %v2745_v9  ;;  %v1067_v9 = vpop.f32.mrf.mxu3 }
 0x1df   : > { %v1100_v17 = vadd.f32 %v1067_v9, %v866_v60  ;;  %v2822_v9 = vld [vmem:[%s3954_s1 + $0x430] sm:$0xff] }
 0x1e1   : > { %1549 = vmatmul.f32.gmra.mxu1 %v3685_v42  ;;  %v2791_v42 = vld [vmem:[%s3954_s1 + $0x3a8] sm:$0xff]  ;;  %v1681_v56 = vld.sshfl [vmem:[#allocation1 + $0x20] sm:$0xff pattern:$0x73625140] }
 0x1e2   : > { %1978 = vmatpush.msra.mxu3 %v2791_v42  ;;  %1686 = vst [vmem:[#allocation1 + $0x20] ss:$4 sm:$0xff] %v1617_v51  ;;  %v2754_v42 = vld [vmem:[%s3047_s11 + $0x80] sm:$0xff]  ;;  %v1632_v51 = vrot.slane %v2753_v24, 4 }
 0x1e3   : > { %1756 = vmatmul.f32.gmra.mxu2 %v1671_v25  ;;  %1687 = vst [vmem:[#allocation1 + $0x21] ss:$4 sm:$0xff] %v2748_v52  ;;  %v618_v25 = vpop.f32.mrf.mxu1  ;;  %v2823_v52 = vld [vmem:[%s3954_s1 + $0x438] sm:$0xff]  ;;  %v1633_v35 = vrot.slane %v2754_v42, 2 }
 0x1e4   : > { %1979 = vmatpush.msra.mxu3 %v2790_v32  ;;  %1688 = vst [vmem:[#allocation1 + $0x22] ss:$4 sm:$0xff] %v1618_v36  ;;  %2207 = vmatpush.msra.mxu0 %v2823_v52 }
 0x1e5   : > { %v1680_v29 = vld.sshfl [vmem:[#allocation1] sm:$0xff pattern:$0x73625140]  ;;  %1689 = vst [vmem:[#allocation1 + $0x23] ss:$4 sm:$0xff] %v1619_v61 }
 0x1e6   : > { %1682 = vst [vmem:[#allocation1] ss:$4 sm:$0xff] %v1614_v59  ;;  %1980 = vmatpush.msra.mxu3 %v2789_v55  ;;  %v2751_v59 = vld [vmem:[%s3047_s11 + $0x68] sm:$0x3f]  ;;  %v1634_v55 = vrot.slane %v2754_v42, 4  ;;  %2208 = vmatpush.msra.mxu0 %v2822_v9 }
 0x1e7   : > { %1683 = vst [vmem:[#allocation1 + $0x1] ss:$4 sm:$0xff] %v1615_v22  ;;  %v2752_v22 = vld [vmem:[%s3047_s11 + $0x70] sm:$0xff] }
 0x1e8   : > { %1684 = vst [vmem:[#allocation1 + $0x2] ss:$4 sm:$0xff] %v2747_v31  ;;  %1981 = vmatpush.msra.mxu3 %v2788_v54  ;;  %v1626_v31 = vrot.slane %v2751_v59, 2  ;;  %v1628_v20 = vrot.slane %v2752_v22, 2  ;;  %v1629_v47 = vrot.slane %v2752_v22, 4  ;;  %v1630_v39 = vrot.slane %v2752_v22, 6 }
 0x1e9   : > { %1552 = vmatmul.f32.gmra.mxu1 %v3701_v6  ;;  %1685 = vst [vmem:[#allocation1 + $0x3] ss:$4 sm:$0xff] %v1616_v41  ;;  %v3772_v6 = vadd.f32 %v1295_v3, %v1099_v49  ;;  %v1631_v41 = vrot.slane %v2753_v24, 2  ;;  %v1298_v49 = vpop.f32.mrf.mxu0  ;;  %v1635_v54 = vrot.slane %v2754_v42, 6 }
 0x1ea   : > { %1982 = vmatpush.msra.mxu3 %v2787_v8  ;;  %v3793_v36 = vadd.f32 %v1298_v49, %v1100_v17  ;;  %v839_v8 = vpop.f32.mrf.mxu2  ;;  %v1637_v17 = vrot.slane %v2755_v11, 4 }
 0x1eb   : > { %1759 = vmatmul.f32.gmra.mxu2 %v1680_v29  ;;  %v621_v34 = vpop.f32.mrf.mxu1  ;;  %v619_v29 = vadd.f32 %v618_v25, %v3625_v62  ;;  %v1070_v62 = vpop.f32.mrf.mxu3 }
 0x1ec   : > { %1983 = vmatpush.msra.mxu3 %v2786_v21  ;;  %v1691_v1 = vld.sshfl [vmem:[#allocation1 + $0x20] sm:$0xff pattern:$0x73625140] }
 0x1ed   : > { %1696 = vst [vmem:[#allocation1 + $0x20] ss:$4 sm:$0xff] %v2750_v19  ;;  %v2773_v19 = vld [vmem:[%s3047_s11 + $0x29] sm:$0x3f] }
 0x1ee   : > { %1697 = vst [vmem:[#allocation1 + $0x21] ss:$4 sm:$0xff] %v1623_v63  ;;  %v1837_v25 = vrot.slane %v2773_v19, 2 }
 0x1ef   : > { %1698 = vst [vmem:[#allocation1 + $0x22] ss:$4 sm:$0xff] %v1624_v23 }
 0x1f0   : > { %v1690_v45 = vld.sshfl [vmem:[#allocation1] sm:$0xff pattern:$0x73625140]  ;;  %1699 = vst [vmem:[#allocation1 + $0x23] ss:$4 sm:$0xff] %v1625_v2  ;;  %v1838_v2 = vrot.slane %v2773_v19, 4 }
 0x1f1   : > { %1555 = vmatmul.f32.gmra.mxu1 %v3703_v53  ;;  %1692 = vst [vmem:[#allocation1] ss:$4 sm:$0xff] %v1620_v7  ;;  %v1627_v53 = vrot.slane %v2751_v59, 4  ;;  %v1301_v7 = vpop.f32.mrf.mxu0 }
 0x1f2   : > { %1693 = vst [vmem:[#allocation1 + $0x1] ss:$4 sm:$0xff] %v2749_v57  ;;  %v622_v57 = vadd.f32 %v621_v34, %v3649_v0 }
 0x1f3   : > { %1762 = vmatmul.f32.gmra.mxu2 %v1681_v56  ;;  %1694 = vst [vmem:[#allocation1 + $0x2] ss:$4 sm:$0xff] %v1621_v14  ;;  %v867_v56 = vadd.f32 %v836_v50, %v619_v29  ;;  %v624_v61 = vpop.f32.mrf.mxu1  ;;  %v1073_v21 = vpop.f32.mrf.mxu3  ;;  %v2820_v50 = vld [vmem:[%s3954_s1 + $0x420] sm:$0xff] }
 0x1f4   : > { %1695 = vst [vmem:[#allocation1 + $0x3] ss:$4 sm:$0xff] %v1622_v46  ;;  %v868_v0 = vadd.f32 %v839_v8, %v622_v57  ;;  %v625_v63 = vadd.f32 %v624_v61, %v3655_v43 }
 0x1f5   : > { %v1101_v3 = vadd.f32 %v1070_v62, %v867_v56  ;;  %v2819_v56 = vld [vmem:[%s3954_s1 + $0x418] sm:$0xff] }
 0x1f7   : > { %v1701_v27 = vld.sshfl [vmem:[#allocation1 + $0x20] sm:$0xff pattern:$0x73625140]  ;;  %v3802_v14 = vadd.f32 %v1301_v7, %v1101_v3 }
 0x1f8   : > { %1706 = vst [vmem:[#allocation1 + $0x20] ss:$4 sm:$0xff] %v1628_v20  ;;  %v2776_v3 = vld [vmem:[%s3047_s11 + $0x41] sm:$0xff] }
 0x1f9   : > { %1707 = vst [vmem:[#allocation1 + $0x21] ss:$4 sm:$0xff] %v1629_v47 }
 0x1fa   : > { %1708 = vst [vmem:[#allocation1 + $0x22] ss:$4 sm:$0xff] %v1630_v39  ;;  %v2774_v39 = vld [vmem:[%s3047_s11 + $0x31] sm:$0xff] }
 0x1fb   : > { %1765 = vmatmul.f32.gmra.mxu2 %v1690_v45  ;;  %v1700_v18 = vld.sshfl [vmem:[#allocation1] sm:$0xff pattern:$0x73625140]  ;;  %1709 = vst [vmem:[#allocation1 + $0x23] ss:$4 sm:$0xff] %v2753_v24  ;;  %v1102_v45 = vadd.f32 %v1073_v21, %v868_v0  ;;  %v627_v23 = vpop.f32.mrf.mxu1  ;;  %v1076_v20 = vpop.f32.mrf.mxu3  ;;  %v1839_v57 = vrot.slane %v2774_v39, 2 }
 0x1fc   : > { %1702 = vst [vmem:[#allocation1] ss:$4 sm:$0xff] %v2751_v59  ;;  %v1840_v7 = vrot.slane %v2774_v39, 4  ;;  %v1841_v8 = vrot.slane %v2774_v39, 6  ;;  %v2818_v21 = vld [vmem:[%s3954_s1 + $0x410] sm:$0xff] }
 0x1fd   : > { %1703 = vst [vmem:[#allocation1 + $0x1] ss:$4 sm:$0xff] %v1626_v31  ;;  %v1304_v31 = vpop.f32.mrf.mxu0 }
 0x1fe   : > { %1704 = vst [vmem:[#allocation1 + $0x2] ss:$4 sm:$0xff] %v1627_v53  ;;  %v2821_v53 = vld [vmem:[%s3954_s1 + $0x428] sm:$0xff] }
 0x1ff   : > { %1705 = vst [vmem:[#allocation1 + $0x3] ss:$4 sm:$0xff] %v2752_v22  ;;  %v842_v22 = vpop.f32.mrf.mxu2  ;;  %2209 = vmatpush.msra.mxu0 %v2821_v53 }
 0x200   : > { %v869_v43 = vadd.f32 %v842_v22, %v625_v63  ;;  %v2777_v63 = vld [vmem:[%s3047_s11 + $0x49] sm:$0x3f] }
 0x201   : > { %2210 = vmatpush.msra.mxu0 %v2820_v50 }
 0x202   : > { %v3797_v60 = vld.sshfl [vmem:[#allocation1 + $0x20] sm:$0xff pattern:$0x73625140] }
 0x203   : > { %1768 = vmatmul.f32.gmra.mxu2 %v1691_v1  ;;  %1718 = vst [vmem:[#allocation1 + $0x22] ss:$4 sm:$0xff] %v2755_v11  ;;  %v2772_v1 = vld [vmem:[%s3047_s11 + $0x21] sm:$0xff]  ;;  %v1079_v61 = vpop.f32.mrf.mxu3  ;;  %v1844_v11 = vrot.slane %v2776_v3, 2  ;;  %2211 = vmatpush.msra.mxu0 %v2819_v56 }
 0x204   : > { %1716 = vst [vmem:[#allocation1 + $0x20] ss:$4 sm:$0xff] %v1634_v55  ;;  %v1834_v47 = vrot.slane %v2772_v1, 2  ;;  %v1835_v34 = vrot.slane %v2772_v1, 4  ;;  %v1836_v29 = vrot.slane %v2772_v1, 6  ;;  %v2816_v56 = vld [vmem:[%s3954_s1 + $0x400] sm:$0xff] }
 0x205   : > { %1717 = vst [vmem:[#allocation1 + $0x21] ss:$4 sm:$0xff] %v1635_v54  ;;  %v1307_v52 = vpop.f32.mrf.mxu0  ;;  %2212 = vmatpush.msra.mxu0 %v2818_v21 }
 0x206   : > { %v1710_v32 = vld.sshfl [vmem:[#allocation1] sm:$0xff pattern:$0x73625140]  ;;  %1719 = vst [vmem:[#allocation1 + $0x23] ss:$4 sm:$0xff] %v1636_v15 }
 0x207   : > { %1712 = vst [vmem:[#allocation1] ss:$4 sm:$0xff] %v1631_v41  ;;  %v628_v41 = vadd.f32 %v627_v23, %v3669_v33  ;;  %v1848_v23 = vrot.slane %v2777_v63, 4 }
 0x208   : > { %1713 = vst [vmem:[#allocation1 + $0x1] ss:$4 sm:$0xff] %v1632_v51  ;;  %v2775_v51 = vld [vmem:[%s3047_s11 + $0x39] sm:$0x3f] }
 0x209   : > { %1714 = vst [vmem:[#allocation1 + $0x2] ss:$4 sm:$0xff] %v2754_v42  ;;  %v630_v42 = vpop.f32.mrf.mxu1  ;;  %v1842_v49 = vrot.slane %v2775_v51, 2  ;;  %v1843_v33 = vrot.slane %v2775_v51, 4 }
 0x20a   : > { %1715 = vst [vmem:[#allocation1 + $0x3] ss:$4 sm:$0xff] %v1633_v35  ;;  %v845_v35 = vpop.f32.mrf.mxu2  ;;  %v631_v15 = vadd.f32 %v630_v42, %v3652_v16 }
 0x20b   : > { %1771 = vmatmul.f32.gmra.mxu2 %v1700_v18  ;;  %v3814_v18 = vadd.f32 %v1304_v31, %v1102_v45  ;;  %v1082_v45 = vpop.f32.mrf.mxu3 }
 0x20d   : > { %v3809_v59 = vld.sshfl [vmem:[#allocation1 + $0x20] sm:$0xff pattern:$0x73625140] }
 0x20e   : > { %1894 = vst [vmem:[#allocation1 + $0x20] ss:$4 sm:$0xff] %v2773_v19 }
 0x20f   : > { %1896 = vst [vmem:[#allocation1 + $0x21] ss:$4 sm:$0xff] %v1837_v25 }
 0x210   : > { %1898 = vst [vmem:[#allocation1 + $0x22] ss:$4 sm:$0xff] %v1838_v2 }
 0x211   : > { %v3805_v46 = vld.sshfl [vmem:[#allocation1] sm:$0xff pattern:$0x73625140]  ;;  %1900 = vst [vmem:[#allocation1 + $0x23] ss:$4 sm:$0xff] %v2774_v39  ;;  %v2817_v39 = vld [vmem:[%s3954_s1 + $0x408] sm:$0xff] }
 0x212   : > { %1722 = vst [vmem:[#allocation1] ss:$4 sm:$0xff] %v1637_v17  ;;  %v1310_v17 = vpop.f32.mrf.mxu0  ;;  %v848_v0 = vpop.f32.mrf.mxu2  ;;  %2213 = vmatpush.msra.mxu0 %v2817_v39 }
 0x213   : > { %1774 = vmatmul.f32.gmra.mxu2 %v1701_v27  ;;  %v1103_v27 = vadd.f32 %v1076_v20, %v869_v43  ;;  %v871_v19 = vadd.f32 %v848_v0, %v631_v15  ;;  %v1845_v43 = vrot.slane %v2776_v3, 4  ;;  %v1846_v20 = vrot.slane %v2776_v3, 6  ;;  %v2781_v0 = vld [vmem:[%s3047_s11 + $0x69] sm:$0x3f] }
 0x214   : > { %2214 = vmatpush.msra.mxu0 %v2816_v56 }
 0x215   : > { %v3827_v62 = vadd.f32 %v1307_v52, %v1103_v27  ;;  %v1105_v25 = vadd.f32 %v1082_v45, %v871_v19  ;;  %v2783_v45 = vld [vmem:[%s3047_s11 + $0x79] sm:$0x3f] }
 0x218   : > { %v1902_v55 = vld.sshfl [vmem:[#allocation1 + $0x20] sm:$0xff pattern:$0x73625140] }
 0x219   : > { %v3817_v24 = vld.sshfl [vmem:[#allocation1] sm:$0xff pattern:$0x73625140]  ;;  %1907 = vst [vmem:[#allocation1 + $0x20] ss:$4 sm:$0xff] %v1842_v49 }
 0x21a   : > { %1886 = vst [vmem:[#allocation1] ss:$4 sm:$0xff] %v2772_v1  ;;  %v2778_v1 = vld [vmem:[%s3047_s11 + $0x51] sm:$0xff]  ;;  %v2780_v49 = vld [vmem:[%s3047_s11 + $0x61] sm:$0xff] }
 0x21b   : > { %1888 = vst [vmem:[#allocation1 + $0x1] ss:$4 sm:$0xff] %v1834_v47  ;;  %1777 = vmatmul.f32.gmra.mxu2 %v1710_v32  ;;  %v870_v32 = vadd.f32 %v845_v35, %v628_v41  ;;  %v1849_v31 = vrot.slane %v2778_v1, 2  ;;  %v1850_v22 = vrot.slane %v2778_v1, 4  ;;  %v1313_v47 = vpop.f32.mrf.mxu0  ;;  %v1847_v41 = vrot.slane %v2777_v63, 2 }
 0x21c   : > { %1890 = vst [vmem:[#allocation1 + $0x2] ss:$4 sm:$0xff] %v1835_v34  ;;  %v851_v34 = vpop.f32.mrf.mxu2  ;;  %v3844_v27 = vadd.f32 %v1313_v47, %v1105_v25  ;;  %v1854_v52 = vrot.slane %v2780_v49, 2  ;;  %v2784_v25 = vld [vmem:[%s3047_s11 + $0x81] sm:$0xff]  ;;  %v1862_v47 = vrot.slane %v2783_v45, 2 }
 0x21d   : > { %1892 = vst [vmem:[#allocation1 + $0x3] ss:$4 sm:$0xff] %v1836_v29  ;;  %v1104_v54 = vadd.f32 %v1079_v61, %v870_v32  ;;  %v1855_v32 = vrot.slane %v2780_v49, 4 }
 0x21e   : > { %1908 = vst [vmem:[#allocation1 + $0x21] ss:$4 sm:$0xff] %v1843_v33 }
 0x21f   : > { %1909 = vst [vmem:[#allocation1 + $0x22] ss:$4 sm:$0xff] %v2776_v3  ;;  %v3835_v16 = vadd.f32 %v1310_v17, %v1104_v54  ;;  %v2779_v3 = vld [vmem:[%s3047_s11 + $0x59] sm:$0x3f]  ;;  %v1851_v54 = vrot.slane %v2778_v1, 6 }
 0x220   : > { %1910 = vst [vmem:[#allocation1 + $0x23] ss:$4 sm:$0xff] %v1844_v11  ;;  %v1852_v15 = vrot.slane %v2779_v3, 2 }
 0x223   : > { %1780 = vmatmul.f32.gmra.mxu2 %v3797_v60  ;;  %v633_v60 = vpop.f32.mrf.mxu1  ;;  %v1316_v35 = vpop.f32.mrf.mxu0 }
 0x224   : > { %v1901_v9 = vld.sshfl [vmem:[#allocation1] sm:$0xff pattern:$0x73625140]  ;;  %v634_v2 = vadd.f32 %v633_v60, %v3664_v30  ;;  %v854_v33 = vpop.f32.mrf.mxu2 }
 0x225   : > { %1984 = vmatmul.f32.vlgmr.msra.gmra.mxu3 %v1901_v9  ;;  %1903 = vst [vmem:[#allocation1] ss:$4 sm:$0xff] %v1839_v57  ;;  %v2782_v9 = vld [vmem:[%s3047_s11 + $0x71] sm:$0xff] }
 0x226   : > { %1904 = vst [vmem:[#allocation1 + $0x1] ss:$4 sm:$0xff] %v1840_v7  ;;  %v872_v30 = vadd.f32 %v851_v34, %v634_v2  ;;  %v1859_v17 = vrot.slane %v2782_v9, 2  ;;  %v1860_v21 = vrot.slane %v2782_v9, 4  ;;  %v1861_v60 = vrot.slane %v2782_v9, 6 }
 0x227   : > { %1905 = vst [vmem:[#allocation1 + $0x2] ss:$4 sm:$0xff] %v1841_v8  ;;  %v1912_v53 = vld.sshfl [vmem:[#allocation1 + $0x20] sm:$0xff pattern:$0x73625140]  ;;  %v1853_v8 = vrot.slane %v2779_v3, 4 }
 0x228   : > { %1906 = vst [vmem:[#allocation1 + $0x3] ss:$4 sm:$0xff] %v2775_v51  ;;  %v1865_v2 = vrot.slane %v2784_v25, 4  ;;  %v1863_v34 = vrot.slane %v2783_v45, 4 }
 0x229   : > { %1917 = vst [vmem:[#allocation1 + $0x20] ss:$4 sm:$0xff] %v1848_v23  ;;  %v1858_v23 = vrot.slane %v2781_v0, 4 }
 0x22a   : > { %1918 = vst [vmem:[#allocation1 + $0x21] ss:$4 sm:$0xff] %v2778_v1 }
 0x22b   : > { %1783 = vmatmul.f32.gmra.mxu2 %v3805_v46  ;;  %1919 = vst [vmem:[#allocation1 + $0x22] ss:$4 sm:$0xff] %v1849_v31  ;;  %v1085_v46 = vpop.f32.mrf.mxu3  ;;  %v636_v51 = vpop.f32.mrf.mxu1  ;;  %v1866_v31 = vrot.slane %v2784_v25, 6 }
 0x22c   : > { %1920 = vst [vmem:[#allocation1 + $0x23] ss:$4 sm:$0xff] %v1850_v22  ;;  %v1106_v42 = vadd.f32 %v1085_v46, %v872_v30  ;;  %v637_v50 = vadd.f32 %v636_v51, %v3677_v28  ;;  %v1856_v28 = vrot.slane %v2780_v49, 6  ;;  %v1319_v39 = vpop.f32.mrf.mxu0  ;;  %v857_v30 = vpop.f32.mrf.mxu2  ;;  %v1864_v46 = vrot.slane %v2784_v25, 2 }
 0x22d   : > { %1987 = vmatmul.f32.gmra.mxu3 %v1902_v55 }
 0x22e   : > { %v3853_v55 = vadd.f32 %v1316_v35, %v1106_v42  ;;  %v873_v11 = vadd.f32 %v854_v33, %v637_v50 }
 0x22f   : > { %v1911_v29 = vld.sshfl [vmem:[#allocation1] sm:$0xff pattern:$0x73625140] }
 0x230   : > { %1913 = vst [vmem:[#allocation1] ss:$4 sm:$0xff] %v1845_v43 }
 0x231   : > { %1914 = vst [vmem:[#allocation1 + $0x1] ss:$4 sm:$0xff] %v1846_v20 }
 0x232   : > { %1915 = vst [vmem:[#allocation1 + $0x2] ss:$4 sm:$0xff] %v2777_v63  ;;  %v1857_v63 = vrot.slane %v2781_v0, 2 }
 0x233   : > { %1786 = vmatmul.f32.gmra.mxu2 %v3809_v59  ;;  %1916 = vst [vmem:[#allocation1 + $0x3] ss:$4 sm:$0xff] %v1847_v41  ;;  %v1922_v61 = vld.sshfl [vmem:[#allocation1 + $0x20] sm:$0xff pattern:$0x73625140]  ;;  %v1088_v59 = vpop.f32.mrf.mxu3  ;;  %v639_v1 = vpop.f32.mrf.mxu1 }
 0x234   : > { %1927 = vst [vmem:[#allocation1 + $0x20] ss:$4 sm:$0xff] %v2780_v49  ;;  %v1107_v57 = vadd.f32 %v1088_v59, %v873_v11  ;;  %v640_v22 = vadd.f32 %v639_v1, %v3690_v4  ;;  %v2803_v49 = vld [vmem:[%s3047_s11 + $0x2a] sm:$0x3f]  ;;  %v2804_v11 = vld [vmem:[%s3047_s11 + $0x32] sm:$0xff]  ;;  %v2802_v59 = vld [vmem:[%s3047_s11 + $0x22] sm:$0xff] }
 0x235   : > { %1990 = vmatmul.f32.gmra.mxu3 %v1911_v29  ;;  %1928 = vst [vmem:[#allocation1 + $0x21] ss:$4 sm:$0xff] %v1854_v52  ;;  %v2068_v35 = vrot.slane %v2803_v49, 2  ;;  %v2069_v56 = vrot.slane %v2803_v49, 4  ;;  %v2808_v1 = vld [vmem:[%s3047_s11 + $0x52] sm:$0xff] }
 0x236   : > { %1929 = vst [vmem:[#allocation1 + $0x22] ss:$4 sm:$0xff] %v1855_v32  ;;  %v3862_v41 = vadd.f32 %v1319_v39, %v1107_v57  ;;  %v874_v42 = vadd.f32 %v857_v30, %v640_v22  ;;  %v1322_v32 = vpop.f32.mrf.mxu0  ;;  %v2805_v57 = vld [vmem:[%s3047_s11 + $0x3a] sm:$0x3f]  ;;  %v2081_v22 = vrot.slane %v2808_v1, 4  ;;  %v2810_v39 = vld [vmem:[%s3047_s11 + $0x62] sm:$0xff] }
 0x237   : > { %1930 = vst [vmem:[#allocation1 + $0x23] ss:$4 sm:$0xff] %v1856_v28 }
 0x23a   : > { %v1921_v7 = vld.sshfl [vmem:[#allocation1] sm:$0xff pattern:$0x73625140] }
 0x23b   : > { %1789 = vmatmul.f32.gmra.mxu2 %v3817_v24  ;;  %1923 = vst [vmem:[#allocation1] ss:$4 sm:$0xff] %v1851_v54  ;;  %v1091_v4 = vpop.f32.mrf.mxu3  ;;  %v642_v50 = vpop.f32.mrf.mxu1 }
 0x23c   : > { %1924 = vst [vmem:[#allocation1 + $0x1] ss:$4 sm:$0xff] %v2779_v3  ;;  %v1108_v51 = vadd.f32 %v1091_v4, %v874_v42  ;;  %v643_v52 = vadd.f32 %v642_v50, %v3698_v5  ;;  %v2087_v42 = vrot.slane %v2810_v39, 6  ;;  %v2809_v4 = vld [vmem:[%s3047_s11 + $0x5a] sm:$0x3f] }
 0x23d   : > { %1993 = vmatmul.f32.gmra.mxu3 %v1912_v53  ;;  %1925 = vst [vmem:[#allocation1 + $0x2] ss:$4 sm:$0xff] %v1852_v15  ;;  %v2785_v53 = vld [vmem:[%s3047_s11 + $0x89] sm:$0x3f]  ;;  %v2073_v15 = vrot.slane %v2805_v57, 2 }
 0x23e   : > { %1926 = vst [vmem:[#allocation1 + $0x3] ss:$4 sm:$0xff] %v1853_v8  ;;  %v1932_v19 = vld.sshfl [vmem:[#allocation1 + $0x20] sm:$0xff pattern:$0x73625140]  ;;  %v1867_v43 = vrot.slane %v2785_v53, 2  ;;  %v3869_v28 = vadd.f32 %v1322_v32, %v1108_v51 }
 0x23f   : > { %1940 = vst [vmem:[#allocation1 + $0x23] ss:$4 sm:$0xff] %v2783_v45  ;;  %v1868_v3 = vrot.slane %v2785_v53, 4  ;;  %v2066_v8 = vrot.slane %v2802_v59, 4  ;;  %v2074_v45 = vrot.slane %v2805_v57, 4  ;;  %v2082_v51 = vrot.slane %v2808_v1, 6 }
 0x240   : > { %1937 = vst [vmem:[#allocation1 + $0x20] ss:$4 sm:$0xff] %v1859_v17 }
 0x241   : > { %1938 = vst [vmem:[#allocation1 + $0x21] ss:$4 sm:$0xff] %v1860_v21  ;;  %v2806_v21 = vld [vmem:[%s3047_s11 + $0x42] sm:$0xff] }
 0x242   : > { %1939 = vst [vmem:[#allocation1 + $0x22] ss:$4 sm:$0xff] %v1861_v60  ;;  %v2075_v60 = vrot.slane %v2806_v21, 2 }
 0x245   : > { %1996 = vmatmul.f32.gmra.mxu3 %v1921_v7  ;;  %v1931_v24 = vld.sshfl [vmem:[#allocation1] sm:$0xff pattern:$0x73625140]  ;;  %v2065_v7 = vrot.slane %v2802_v59, 2 }
 0x246   : > { %1933 = vst [vmem:[#allocation1] ss:$4 sm:$0xff] %v2781_v0 }
 0x247   : > { %1934 = vst [vmem:[#allocation1 + $0x1] ss:$4 sm:$0xff] %v1857_v63  ;;  %v2071_v63 = vrot.slane %v2804_v11, 4 }
 0x248   : > { %1935 = vst [vmem:[#allocation1 + $0x2] ss:$4 sm:$0xff] %v1858_v23  ;;  %v2072_v23 = vrot.slane %v2804_v11, 6 }
 0x249   : > { %1936 = vst [vmem:[#allocation1 + $0x3] ss:$4 sm:$0xff] %v2782_v9  ;;  %v1942_v20 = vld.sshfl [vmem:[#allocation1 + $0x20] sm:$0xff pattern:$0x73625140]  ;;  %v2067_v9 = vrot.slane %v2802_v59, 6 }
 0x24a   : > { %1947 = vst [vmem:[#allocation1 + $0x20] ss:$4 sm:$0xff] %v1865_v2 }
 0x24b   : > { %1948 = vst [vmem:[#allocation1 + $0x21] ss:$4 sm:$0xff] %v1866_v31  ;;  %v2080_v31 = vrot.slane %v2808_v1, 2 }
 0x24c   : > { %1949 = vst [vmem:[#allocation1 + $0x22] ss:$4 sm:$0xff] %v2785_v53 }
 0x24d   : > { %1999 = vmatmul.f32.gmra.mxu3 %v1922_v61  ;;  %1950 = vst [vmem:[#allocation1 + $0x23] ss:$4 sm:$0xff] %v1867_v43  ;;  %v860_v61 = vpop.f32.mrf.mxu2  ;;  %v2076_v43 = vrot.slane %v2806_v21, 4 }
 0x24e   : > { %v3871_v54 = vadd.f32 %v860_v61, %v643_v52  ;;  %v2084_v52 = vrot.slane %v2809_v4, 4 }
 0x250   : > { %v1941_v29 = vld.sshfl [vmem:[#allocation1] sm:$0xff pattern:$0x73625140] }
 0x251   : > { %1943 = vst [vmem:[#allocation1] ss:$4 sm:$0xff] %v1862_v47 }
 0x252   : > { %1944 = vst [vmem:[#allocation1 + $0x1] ss:$4 sm:$0xff] %v1863_v34 }
 0x253   : > { %1945 = vst [vmem:[#allocation1 + $0x2] ss:$4 sm:$0xff] %v2784_v25  ;;  %v2807_v25 = vld [vmem:[%s3047_s11 + $0x4a] sm:$0x3f] }
 0x254   : > { %1946 = vst [vmem:[#allocation1 + $0x3] ss:$4 sm:$0xff] %v1864_v46  ;;  %v3866_v33 = vld.sshfl [vmem:[#allocation1 + $0x20] sm:$0xff pattern:$0x73625140]  ;;  %v2079_v2 = vrot.slane %v2807_v25, 4 }
 0x255   : > { %2002 = vmatmul.f32.gmra.mxu3 %v1931_v24  ;;  %2125 = vst [vmem:[#allocation1 + $0x20] ss:$4 sm:$0xff] %v2803_v49  ;;  %v2078_v34 = vrot.slane %v2807_v25, 2  ;;  %v2085_v46 = vrot.slane %v2810_v39, 2  ;;  %v2083_v49 = vrot.slane %v2809_v4, 2 }
 0x256   : > { %2127 = vst [vmem:[#allocation1 + $0x21] ss:$4 sm:$0xff] %v2068_v35  ;;  %v2812_v35 = vld [vmem:[%s3047_s11 + $0x72] sm:$0xff] }
 0x257   : > { %2129 = vst [vmem:[#allocation1 + $0x22] ss:$4 sm:$0xff] %v2069_v56  ;;  %v2090_v56 = vrot.slane %v2812_v35, 2  ;;  %v2092_v32 = vrot.slane %v2812_v35, 6 }
 0x258   : > { %2131 = vst [vmem:[#allocation1 + $0x23] ss:$4 sm:$0xff] %v2804_v11 }
 0x25b   : > { %v1951_v5 = vld.sshfl [vmem:[#allocation1] sm:$0xff pattern:$0x73625140] }
 0x25c   : > { %1953 = vst [vmem:[#allocation1] ss:$4 sm:$0xff] %v1868_v3  ;;  %v2811_v3 = vld [vmem:[%s3047_s11 + $0x6a] sm:$0x3f] }
 0x25d   : > { %2005 = vmatmul.f32.gmra.mxu3 %v1932_v19  ;;  %v2070_v19 = vrot.slane %v2804_v11, 2  ;;  %v2088_v11 = vrot.slane %v2811_v3, 2 }
 0x25f   : > { %v2133_v17 = vld.sshfl [vmem:[#allocation1 + $0x20] sm:$0xff pattern:$0x73625140] }
 0x260   : > { %2138 = vst [vmem:[#allocation1 + $0x20] ss:$4 sm:$0xff] %v2073_v15 }
 0x261   : > { %2139 = vst [vmem:[#allocation1 + $0x21] ss:$4 sm:$0xff] %v2074_v45  ;;  %v2815_v45 = vld [vmem:[%s3047_s11 + $0x8a] sm:$0x3f] }
 0x262   : > { %2140 = vst [vmem:[#allocation1 + $0x22] ss:$4 sm:$0xff] %v2806_v21 }
 0x263   : > { %v1954_v0 = vld.sshfl [vmem:[#allocation1] sm:$0xff pattern:$0x73625140]  ;;  %2141 = vst [vmem:[#allocation1 + $0x23] ss:$4 sm:$0xff] %v2075_v60 }
 0x264   : > { %2117 = vst [vmem:[#allocation1] ss:$4 sm:$0xff] %v2802_v59 }
 0x265   : > { %2119 = vst [vmem:[#allocation1 + $0x1] ss:$4 sm:$0xff] %v2065_v7  ;;  %2008 = vmatmul.f32.gmra.mxu3 %v1941_v29  ;;  %v2086_v29 = vrot.slane %v2810_v39, 4  ;;  %v2814_v7 = vld [vmem:[%s3047_s11 + $0x82] sm:$0xff] }
 0x266   : > { %2121 = vst [vmem:[#allocation1 + $0x2] ss:$4 sm:$0xff] %v2066_v8 }
 0x267   : > { %2123 = vst [vmem:[#allocation1 + $0x3] ss:$4 sm:$0xff] %v2067_v9 }
 0x26a   : > { %v2143_v53 = vld.sshfl [vmem:[#allocation1 + $0x20] sm:$0xff pattern:$0x73625140] }
 0x26b   : > { %2148 = vst [vmem:[#allocation1 + $0x20] ss:$4 sm:$0xff] %v2079_v2 }
 0x26c   : > { %2149 = vst [vmem:[#allocation1 + $0x21] ss:$4 sm:$0xff] %v2808_v1  ;;  %v1520_v1 = vpop.f32.mrf.mxu1 }
 0x26d   : > { %2011 = vmatmul.f32.gmra.mxu3 %v1942_v20  ;;  %2150 = vst [vmem:[#allocation1 + $0x22] ss:$4 sm:$0xff] %v2080_v31  ;;  %v2077_v20 = vrot.slane %v2806_v21, 6  ;;  %v2097_v21 = vrot.slane %v2814_v7, 6  ;;  %v1754_v31 = vpop.f32.mrf.mxu2 }
 0x26e   : > { %v2132_v24 = vld.sshfl [vmem:[#allocation1] sm:$0xff pattern:$0x73625140]  ;;  %2151 = vst [vmem:[#allocation1 + $0x23] ss:$4 sm:$0xff] %v2081_v22 }
 0x26f   : > { %2215 = vmatmul.f32.vlgmr.msra.gmra.mxu0 %v2132_v24  ;;  %2134 = vst [vmem:[#allocation1] ss:$4 sm:$0xff] %v2070_v19  ;;  %v2098_v19 = vrot.slane %v2815_v45, 2 }
 0x270   : > { %2135 = vst [vmem:[#allocation1 + $0x1] ss:$4 sm:$0xff] %v2071_v63  ;;  %v2099_v63 = vrot.slane %v2815_v45, 4 }
 0x271   : > { %2136 = vst [vmem:[#allocation1 + $0x2] ss:$4 sm:$0xff] %v2072_v23 }
 0x272   : > { %2137 = vst [vmem:[#allocation1 + $0x3] ss:$4 sm:$0xff] %v2805_v57  ;;  %v2813_v57 = vld [vmem:[%s3047_s11 + $0x7a] sm:$0x3f]  ;;  %s192_s11 = smul.u32 7, %s2948_s12 }
 0x273   : > { %v2093_v15 = vrot.slane %v2813_v57, 2  ;;  %v2094_v8 = vrot.slane %v2813_v57, 4 }
 0x274   : > { %v1523_v22 = vpop.f32.mrf.mxu1  ;;  %p195_p6 = scmp.lt.s32.totalorder %s192_s11, 13 }
 0x275   : > { %2014 = vmatmul.f32.gmra.mxu3 %v1951_v5  ;;  %v2153_v30 = vld.sshfl [vmem:[#allocation1 + $0x20] sm:$0xff pattern:$0x73625140]  ;;  %v2089_v5 = vrot.slane %v2811_v3, 4 }
 0x276   : > { %2158 = vst [vmem:[#allocation1 + $0x20] ss:$4 sm:$0xff] %v2810_v39  ;;  %v610_v39 = vadd.f32 %v3705_v48, %v3675_v40  ;;  %s3970_s11 = smov (!%p195_p6, %s192_s11), 13 }
 0x277   : > { %2218 = vmatmul.f32.gmra.mxu0 %v2133_v17  ;;  %2159 = vst [vmem:[#allocation1 + $0x21] ss:$4 sm:$0xff] %v2085_v46  ;;  %v2095_v17 = vrot.slane %v2814_v7, 2  ;;  %s2614_s28 = sshll.u32 %s3970_s11, 1 }
 0x278   : > { %2160 = vst [vmem:[#allocation1 + $0x22] ss:$4 sm:$0xff] %v2086_v29  ;;  %s199_s29 = sadd.s32 %s2884_s27, %s2614_s28 }
 0x279   : > { %v2142_v47 = vld.sshfl [vmem:[#allocation1] sm:$0xff pattern:$0x73625140]  ;;  %2161 = vst [vmem:[#allocation1 + $0x23] ss:$4 sm:$0xff] %v2087_v42  ;;  %s2615_s30 = sshll.u32 %s199_s29, 3 }
 0x27a   : > { %2144 = vst [vmem:[#allocation1] ss:$4 sm:$0xff] %v2076_v43  ;;  %v607_v43 = vadd.f32 %v3687_v44, %v3662_v26  ;;  %s3906_s5 = scalar_lea.vmem %s3955_s2, %s2615_s30 }
 0x27b   : > { %2145 = vst [vmem:[#allocation1 + $0x1] ss:$4 sm:$0xff] %v2077_v20  ;;  %v1757_v20 = vpop.f32.mrf.mxu2 }
 0x27c   : > { %2146 = vst [vmem:[#allocation1 + $0x2] ss:$4 sm:$0xff] %v2807_v25  ;;  %v3886_v25 = vpop.f32.mrf.mxu3  ;;  %v1526_v46 = vpop.f32.mrf.mxu1 }
 0x27d   : > { %2017 = vmatmul.f32.gmra.mxu3 %v3866_v33  ;;  %2147 = vst [vmem:[#allocation1 + $0x3] ss:$4 sm:$0xff] %v2078_v34  ;;  %v2091_v33 = vrot.slane %v2812_v35, 4  ;;  %v863_v34 = vadd.f32 %v3712_v10, %v607_v43 }
 0x27f   : > { %2221 = vmatmul.f32.gmra.mxu0 %v2142_v47 }
 0x280   : > { %v2163_v61 = vld.sshfl [vmem:[#allocation1 + $0x20] sm:$0xff pattern:$0x73625140] }
 0x281   : > { %2168 = vst [vmem:[#allocation1 + $0x20] ss:$4 sm:$0xff] %v2090_v56 }
 0x282   : > { %2169 = vst [vmem:[#allocation1 + $0x21] ss:$4 sm:$0xff] %v2091_v33 }
 0x283   : > { %2170 = vst [vmem:[#allocation1 + $0x22] ss:$4 sm:$0xff] %v2092_v32  ;;  %v1760_v29 = vpop.f32.mrf.mxu2 }
 0x284   : > { %v2152_v50 = vld.sshfl [vmem:[#allocation1] sm:$0xff pattern:$0x73625140]  ;;  %2171 = vst [vmem:[#allocation1 + $0x23] ss:$4 sm:$0xff] %v2813_v57 }
 0x285   : > { %2020 = vmatmul.f32.gmra.mxu3 %v1954_v0  ;;  %2154 = vst [vmem:[#allocation1] ss:$4 sm:$0xff] %v2082_v51  ;;  %v2096_v0 = vrot.slane %v2814_v7, 4  ;;  %v3896_v51 = vpop.f32.mrf.mxu0 }
 0x286   : > { %2155 = vst [vmem:[#allocation1 + $0x1] ss:$4 sm:$0xff] %v2809_v4  ;;  %v864_v4 = vadd.f32 %v3729_v13, %v610_v39 }
 0x287   : > { %2224 = vmatmul.f32.gmra.mxu0 %v2143_v53  ;;  %2156 = vst [vmem:[#allocation1 + $0x2] ss:$4 sm:$0xff] %v2083_v49 }
 0x288   : > { %2157 = vst [vmem:[#allocation1 + $0x3] ss:$4 sm:$0xff] %v2084_v52  ;;  %v1098_v26 = vadd.f32 %v3734_v37, %v864_v4 }
 0x28a   : > { %v1329_v40 = vadd.f32 %v3742_v38, %v1098_v26 }
 0x28b   : > { %v2173_v60 = vld.sshfl [vmem:[#allocation1 + $0x20] sm:$0xff pattern:$0x73625140] }
 0x28c   : > { %2178 = vst [vmem:[#allocation1 + $0x20] ss:$4 sm:$0xff] %v2096_v0  ;;  %v1560_v13 = vadd.f32 %v1523_v22, %v1329_v40 }
 0x28d   : > { %2179 = vst [vmem:[#allocation1 + $0x21] ss:$4 sm:$0xff] %v2097_v21 }
 0x28e   : > { %2180 = vst [vmem:[#allocation1 + $0x22] ss:$4 sm:$0xff] %v2815_v45  ;;  %v1794_v37 = vadd.f32 %v1757_v20, %v1560_v13 }
 0x28f   : > { %2227 = vmatmul.f32.gmra.mxu0 %v2152_v50  ;;  %v2162_v59 = vld.sshfl [vmem:[#allocation1] sm:$0xff pattern:$0x73625140]  ;;  %2181 = vst [vmem:[#allocation1 + $0x23] ss:$4 sm:$0xff] %v2098_v19  ;;  %v1529_v50 = vpop.f32.mrf.mxu1 }
 0x290   : > { %2164 = vst [vmem:[#allocation1] ss:$4 sm:$0xff] %v2811_v3 }
 0x291   : > { %2165 = vst [vmem:[#allocation1 + $0x1] ss:$4 sm:$0xff] %v2088_v11 }
 0x292   : > { %2166 = vst [vmem:[#allocation1 + $0x2] ss:$4 sm:$0xff] %v2089_v5  ;;  %v1561_v5 = vadd.f32 %v1526_v46, %v3772_v6 }
 0x293   : > { %2167 = vst [vmem:[#allocation1 + $0x3] ss:$4 sm:$0xff] %v2812_v35 }
 0x294   : > { %v1795_v21 = vadd.f32 %v1760_v29, %v1561_v5 }
 0x296   : > { %v2183_v24 = vld.sshfl [vmem:[#allocation1 + $0x20] sm:$0xff pattern:$0x73625140] }
 0x297   : > { %2230 = vmatmul.f32.gmra.mxu0 %v2153_v30  ;;  %v1097_v30 = vadd.f32 %v3718_v58, %v863_v34  ;;  %v1763_v58 = vpop.f32.mrf.mxu2  ;;  %v1532_v38 = vpop.f32.mrf.mxu1 }
 0x299   : > { %v1328_v42 = vadd.f32 %v3721_v12, %v1097_v30 }
 0x29a   : > { %v2172_v9 = vld.sshfl [vmem:[#allocation1] sm:$0xff pattern:$0x73625140] }
 0x29b   : > { %2174 = vst [vmem:[#allocation1] ss:$4 sm:$0xff] %v2093_v15  ;;  %v1559_v44 = vadd.f32 %v1520_v1, %v1328_v42 }
 0x29c   : > { %2175 = vst [vmem:[#allocation1 + $0x1] ss:$4 sm:$0xff] %v2094_v8 }
 0x29d   : > { %2176 = vst [vmem:[#allocation1 + $0x2] ss:$4 sm:$0xff] %v2814_v7  ;;  %v1793_v10 = vadd.f32 %v1754_v31, %v1559_v44 }
 0x29e   : > { %2177 = vst [vmem:[#allocation1 + $0x3] ss:$4 sm:$0xff] %v2095_v17 }
 0x29f   : > { %2233 = vmatmul.f32.gmra.mxu0 %v2162_v59  ;;  %v1766_v59 = vpop.f32.mrf.mxu2 }
 0x2a5   : > { %v2182_v23 = vld.sshfl [vmem:[#allocation1] sm:$0xff pattern:$0x73625140] }
 0x2a6   : > { %2184 = vst [vmem:[#allocation1] ss:$4 sm:$0xff] %v2099_v63 }
 0x2a7   : > { %2236 = vmatmul.f32.gmra.mxu0 %v2163_v61 }
 0x2a8   : > { %v1985_v53 = vpop.f32.mrf.mxu3 }
 0x2a9   : > { %v2024_v48 = vadd.f32 %v1985_v53, %v1793_v10  ;;  %v1769_v53 = vpop.f32.mrf.mxu2 }
 0x2ad   : > { %v2185_v2 = vld.sshfl [vmem:[#allocation1] sm:$0xff pattern:$0x73625140] }
 0x2af   : > { %2239 = vmatmul.f32.gmra.mxu0 %v2172_v9 }
 0x2b0   : > { %v1988_v47 = vpop.f32.mrf.mxu3 }
 0x2b1   : > { %v2025_v61 = vadd.f32 %v1988_v47, %v1794_v37  ;;  %v1772_v40 = vpop.f32.mrf.mxu2 }
 0x2b7   : > { %2242 = vmatmul.f32.gmra.mxu0 %v2173_v60 }
 0x2b8   : > { %v1991_v49 = vpop.f32.mrf.mxu3 }
 0x2b9   : > { %v2026_v60 = vadd.f32 %v1991_v49, %v1795_v21 }
 0x2bf   : > { %2245 = vmatmul.f32.gmra.mxu0 %v2182_v23  ;;  %v1535_v23 = vpop.f32.mrf.mxu1 }
 0x2c0   : > { %v1994_v35 = vpop.f32.mrf.mxu3  ;;  %v1564_v13 = vadd.f32 %v1535_v23, %v3814_v18 }
 0x2c7   : > { %2248 = vmatmul.f32.gmra.mxu0 %v2183_v24  ;;  %v1562_v24 = vadd.f32 %v1529_v50, %v3793_v36  ;;  %v1563_v36 = vadd.f32 %v1532_v38, %v3802_v14  ;;  %v1538_v49 = vpop.f32.mrf.mxu1 }
 0x2c8   : > { %v1997_v9 = vpop.f32.mrf.mxu3 }
 0x2c9   : > { %v1796_v20 = vadd.f32 %v1763_v58, %v1562_v24  ;;  %v1797_v10 = vadd.f32 %v1766_v59, %v1563_v36 }
 0x2cb   : > { %v2027_v30 = vadd.f32 %v1994_v35, %v1796_v20 }
 0x2cf   : > { %2251 = vmatmul.f32.gmra.mxu0 %v2185_v2 }
 0x2d0   : > { %v2000_v34 = vpop.f32.mrf.mxu3 }
 0x2ec   : > { %v2216_v52 = vpop.f32.mrf.mxu0 }
 0x2ed   : > { %v2255_v12 = vadd.f32 %v2216_v52, %v2024_v48  ;;  %v2028_v52 = vadd.f32 %v1997_v9, %v1797_v10 }
 0x2ef   : > { %v2281_v56 = vrot.slane %v2255_v12, 2  ;;  %v2282_v33 = vrot.slane %v2255_v12, 4  ;;  %v2283_v32 = vrot.slane %v2255_v12, 6  ;;  %2317 = vst [vmem:[#allocation1] ss:$4 sm:$0xff] %v2255_v12  ;;  %v2434_v17 = vmul.f32 %v2255_v12, %v2255_v12 }
 0x2f1   : > { %2319 = vst [vmem:[#allocation1 + $0x1] ss:$4 sm:$0xff] %v2281_v56 }
 0x2f2   : > { %2321 = vst [vmem:[#allocation1 + $0x2] ss:$4 sm:$0xff] %v2282_v33 }
 0x2f3   : > { %2323 = vst [vmem:[#allocation1 + $0x3] ss:$4 sm:$0xff] %v2283_v32 }
 0x2f4   : > { %v2219_v3 = vpop.f32.mrf.mxu0 }
 0x2f5   : > { %v2256_v11 = vadd.f32 %v2219_v3, %v2025_v61  ;;  %v1798_v3 = vadd.f32 %v1769_v53, %v1564_v13 }
 0x2f7   : > { %v2284_v57 = vrot.slane %v2256_v11, 2  ;;  %v2285_v15 = vrot.slane %v2256_v11, 4  ;;  %v2286_v7 = vrot.slane %v2256_v11, 6  ;;  %2325 = vst [vmem:[#allocation1 + $0x20] ss:$4 sm:$0xff] %v2256_v11  ;;  %v2414_v8 = vadd.f32 %v2256_v11, %v2255_v12  ;;  %v2003_v12 = vpop.f32.mrf.mxu3 }
 0x2f8   : > { %v2435_v0 = vmul.f32 %v2256_v11, %v2256_v11  ;;  %v1541_v11 = vpop.f32.mrf.mxu1  ;;  %v2029_v59 = vadd.f32 %v2000_v34, %v1798_v3 }
 0x2f9   : > { %2327 = vst [vmem:[#allocation1 + $0x21] ss:$4 sm:$0xff] %v2284_v57  ;;  %v1775_v57 = vpop.f32.mrf.mxu2 }
 0x2fa   : > { %2329 = vst [vmem:[#allocation1 + $0x22] ss:$4 sm:$0xff] %v2285_v15  ;;  %v2330_v6 = vld.sshfl [vmem:[#allocation1] sm:$0xff pattern:$0x73625140]  ;;  %v2447_v45 = vadd.f32 %v2435_v0, %v2434_v17 }
 0x2fb   : > { %2332 = vst [vmem:[#allocation1] ss:$4 sm:$0xff] %v2286_v7 }
 0x2fc   : > { %2400 = vst [vmem:[%s3906_s5] sm:$0xff] %v2330_v6  ;;  %v2222_v19 = vpop.f32.mrf.mxu0 }
 0x2fd   : > { %v2257_v63 = vadd.f32 %v2222_v19, %v2026_v60 }
 0x2ff   : > { %v2287_v1 = vrot.slane %v2257_v63, 2  ;;  %v2288_v2 = vrot.slane %v2257_v63, 4  ;;  %2333 = vst [vmem:[#allocation1 + $0x1] ss:$4 sm:$0xff] %v2257_v63  ;;  %v2415_v31 = vadd.f32 %v2414_v8, %v2257_v63  ;;  %v2289_v22 = vrot.slane %v2257_v63, 6  ;;  %v2006_v18 = vpop.f32.mrf.mxu3 }
 0x300   : > { %v2436_v43 = vmul.f32 %v2257_v63, %v2257_v63  ;;  %v1565_v8 = vadd.f32 %v1538_v49, %v3827_v62  ;;  %v1544_v23 = vpop.f32.mrf.mxu1  ;;  %v1566_v62 = vadd.f32 %v1541_v11, %v3835_v16 }
 0x301   : > { %v2331_v47 = vld.sshfl [vmem:[#allocation1 + $0x20] sm:$0xff pattern:$0x73625140]  ;;  %2334 = vst [vmem:[#allocation1 + $0x2] ss:$4 sm:$0xff] %v2287_v1 }
 0x302   : > { %2401 = vst [vmem:[%s3906_s5 + $0x8] sm:$0x3f] %v2331_v47  ;;  %v2448_v39 = vadd.f32 %v2447_v45, %v2436_v43  ;;  %v1799_v6 = vadd.f32 %v1772_v40, %v1565_v8 }
 0x303   : > { %2335 = vst [vmem:[#allocation1 + $0x3] ss:$4 sm:$0xff] %v2288_v2  ;;  %v1778_v2 = vpop.f32.mrf.mxu2 }
 0x304   : > { %2336 = vst [vmem:[#allocation1 + $0x20] ss:$4 sm:$0xff] %v2289_v22  ;;  %v2225_v46 = vpop.f32.mrf.mxu0  ;;  %v2030_v63 = vadd.f32 %v2003_v12, %v1799_v6 }
 0x305   : > { %v2258_v29 = vadd.f32 %v2225_v46, %v2027_v30 }
 0x307   : > { %v2290_v42 = vrot.slane %v2258_v29, 2  ;;  %2337 = vst [vmem:[#allocation1 + $0x21] ss:$4 sm:$0xff] %v2258_v29  ;;  %v2416_v4 = vadd.f32 %v2415_v31, %v2258_v29  ;;  %v2291_v26 = vrot.slane %v2258_v29, 4  ;;  %v2437_v44 = vmul.f32 %v2258_v29, %v2258_v29  ;;  %v2009_v47 = vpop.f32.mrf.mxu3 }
 0x308   : > { %v2292_v50 = vrot.slane %v2258_v29, 6  ;;  %v1547_v16 = vpop.f32.mrf.mxu1 }
 0x309   : > { %2338 = vst [vmem:[#allocation1 + $0x22] ss:$4 sm:$0xff] %v2290_v42  ;;  %v2449_v58 = vadd.f32 %v2448_v39, %v2437_v44  ;;  %v1800_v39 = vadd.f32 %v1775_v57, %v1566_v62  ;;  %v1567_v42 = vadd.f32 %v1544_v23, %v3844_v27  ;;  %v1568_v13 = vadd.f32 %v1547_v16, %v3853_v55 }
 0x30a   : > { %v2339_v48 = vld.sshfl [vmem:[#allocation1] sm:$0xff pattern:$0x73625140] }
 0x30b   : > { %2402 = vst [vmem:[%s3906_s5 + $0x10] sm:$0xff] %v2339_v48  ;;  %v2031_v46 = vadd.f32 %v2006_v18, %v1800_v39  ;;  %v1781_v44 = vpop.f32.mrf.mxu2  ;;  %v1801_v40 = vadd.f32 %v1778_v2, %v1567_v42 }
 0x30c   : > { %2341 = vst [vmem:[#allocation1] ss:$4 sm:$0xff] %v2291_v26  ;;  %v2228_v35 = vpop.f32.mrf.mxu0 }
 0x30d   : > { %2342 = vst [vmem:[#allocation1 + $0x1] ss:$4 sm:$0xff] %v2292_v50  ;;  %v2259_v14 = vadd.f32 %v2228_v35, %v2028_v52  ;;  %v2032_v35 = vadd.f32 %v2009_v47, %v1801_v40 }
 0x30f   : > { %v2293_v56 = vrot.slane %v2259_v14, 2  ;;  %v2294_v33 = vrot.slane %v2259_v14, 4  ;;  %2343 = vst [vmem:[#allocation1 + $0x2] ss:$4 sm:$0xff] %v2259_v14  ;;  %v2417_v32 = vadd.f32 %v2416_v4, %v2259_v14  ;;  %v2295_v61 = vrot.slane %v2259_v14, 6  ;;  %v2012_v52 = vpop.f32.mrf.mxu3 }
 0x310   : > { %v2340_v37 = vld.sshfl [vmem:[#allocation1 + $0x20] sm:$0xff pattern:$0x73625140]  ;;  %v2438_v38 = vmul.f32 %v2259_v14, %v2259_v14 }
 0x311   : > { %2403 = vst [vmem:[%s3906_s5 + $0x18] sm:$0x3f] %v2340_v37  ;;  %v1550_v37 = vpop.f32.mrf.mxu1 }
 0x312   : > { %2344 = vst [vmem:[#allocation1 + $0x3] ss:$4 sm:$0xff] %v2293_v56  ;;  %v2450_v5 = vadd.f32 %v2449_v58, %v2438_v38  ;;  %v1802_v38 = vadd.f32 %v1781_v44, %v1568_v13  ;;  %v1569_v18 = vadd.f32 %v1550_v37, %v3862_v41 }
 0x313   : > { %2345 = vst [vmem:[#allocation1 + $0x20] ss:$4 sm:$0xff] %v2294_v33  ;;  %v1784_v3 = vpop.f32.mrf.mxu2 }
 0x314   : > { %2346 = vst [vmem:[#allocation1 + $0x21] ss:$4 sm:$0xff] %v2295_v61  ;;  %v2231_v15 = vpop.f32.mrf.mxu0  ;;  %v1803_v6 = vadd.f32 %v1784_v3, %v1569_v18 }
 0x315   : > { %v2260_v7 = vadd.f32 %v2231_v15, %v2029_v59  ;;  %v2033_v59 = vadd.f32 %v2012_v52, %v1802_v38 }
 0x317   : > { %v2296_v9 = vrot.slane %v2260_v7, 2  ;;  %2347 = vst [vmem:[#allocation1 + $0x22] ss:$4 sm:$0xff] %v2260_v7  ;;  %v2418_v17 = vadd.f32 %v2417_v32, %v2260_v7  ;;  %v2297_v0 = vrot.slane %v2260_v7, 4  ;;  %v2439_v21 = vmul.f32 %v2260_v7, %v2260_v7  ;;  %v2015_v57 = vpop.f32.mrf.mxu3 }
 0x318   : > { %v2298_v60 = vrot.slane %v2260_v7, 6 }
 0x319   : > { %v2348_v45 = vld.sshfl [vmem:[#allocation1] sm:$0xff pattern:$0x73625140]  ;;  %v2451_v19 = vadd.f32 %v2450_v5, %v2439_v21 }
 0x31a   : > { %2404 = vst [vmem:[%s3906_s5 + $0x20] sm:$0xff] %v2348_v45 }
 0x31b   : > { %2350 = vst [vmem:[#allocation1] ss:$4 sm:$0xff] %v2296_v9  ;;  %v1787_v23 = vpop.f32.mrf.mxu2 }
 0x31c   : > { %2351 = vst [vmem:[#allocation1 + $0x1] ss:$4 sm:$0xff] %v2297_v0  ;;  %v2234_v24 = vpop.f32.mrf.mxu0 }
 0x31d   : > { %2352 = vst [vmem:[#allocation1 + $0x2] ss:$4 sm:$0xff] %v2298_v60  ;;  %v2261_v1 = vadd.f32 %v2234_v24, %v2030_v63  ;;  %v1553_v60 = vpop.f32.mrf.mxu1  ;;  %v2034_v63 = vadd.f32 %v2015_v57, %v1803_v6 }
 0x31e   : > { %v2349_v31 = vld.sshfl [vmem:[#allocation1 + $0x20] sm:$0xff pattern:$0x73625140]  ;;  %v1570_v62 = vadd.f32 %v1553_v60, %v3869_v28 }
 0x31f   : > { %2405 = vst [vmem:[%s3906_s5 + $0x28] sm:$0x3f] %v2349_v31  ;;  %v2299_v53 = vrot.slane %v2261_v1, 2  ;;  %v2300_v22 = vrot.slane %v2261_v1, 4  ;;  %v2301_v43 = vrot.slane %v2261_v1, 6  ;;  %v2440_v20 = vmul.f32 %v2261_v1, %v2261_v1  ;;  %v2018_v41 = vpop.f32.mrf.mxu3 }
 0x320   : > { %2353 = vst [vmem:[#allocation1 + $0x3] ss:$4 sm:$0xff] %v2261_v1  ;;  %v2419_v34 = vadd.f32 %v2418_v17, %v2261_v1 }
 0x321   : > { %2354 = vst [vmem:[#allocation1 + $0x20] ss:$4 sm:$0xff] %v2299_v53  ;;  %v2452_v30 = vadd.f32 %v2451_v19, %v2440_v20  ;;  %v1804_v20 = vadd.f32 %v1787_v23, %v1570_v62 }
 0x322   : > { %2355 = vst [vmem:[#allocation1 + $0x21] ss:$4 sm:$0xff] %v2300_v22 }
 0x323   : > { %2356 = vst [vmem:[#allocation1 + $0x22] ss:$4 sm:$0xff] %v2301_v43  ;;  %v1109_v43 = vadd.f32 %v3886_v25, %v3871_v54  ;;  %v1790_v16 = vpop.f32.mrf.mxu2 }
 0x324   : > { %v2237_v29 = vpop.f32.mrf.mxu0 }
 0x325   : > { %v2262_v36 = vadd.f32 %v2237_v29, %v2031_v46  ;;  %v1556_v46 = vpop.f32.mrf.mxu1  ;;  %v1340_v28 = vadd.f32 %v3896_v51, %v1109_v43 }
 0x327   : > { %v2357_v4 = vld.sshfl [vmem:[#allocation1] sm:$0xff pattern:$0x73625140]  ;;  %v2302_v49 = vrot.slane %v2262_v36, 2  ;;  %v2441_v26 = vmul.f32 %v2262_v36, %v2262_v36  ;;  %v2303_v10 = vrot.slane %v2262_v36, 4  ;;  %v2420_v50 = vadd.f32 %v2419_v34, %v2262_v36  ;;  %v2021_v25 = vpop.f32.mrf.mxu3 }
 0x328   : > { %2406 = vst [vmem:[%s3906_s5 + $0x30] sm:$0xff] %v2357_v4  ;;  %v2304_v48 = vrot.slane %v2262_v36, 6  ;;  %v1571_v42 = vadd.f32 %v1556_v46, %v1340_v28 }
 0x329   : > { %2359 = vst [vmem:[#allocation1] ss:$4 sm:$0xff] %v2262_v36  ;;  %v2453_v58 = vadd.f32 %v2452_v30, %v2441_v26  ;;  %v2035_v30 = vadd.f32 %v2018_v41, %v1804_v20 }
 0x32a   : > { %v2358_v12 = vld.sshfl [vmem:[#allocation1 + $0x20] sm:$0xff pattern:$0x73625140]  ;;  %2360 = vst [vmem:[#allocation1 + $0x1] ss:$4 sm:$0xff] %v2302_v49 }
 0x32b   : > { %2407 = vst [vmem:[%s3906_s5 + $0x38] sm:$0x3f] %v2358_v12 }
 0x32c   : > { %2361 = vst [vmem:[#allocation1 + $0x2] ss:$4 sm:$0xff] %v2303_v10  ;;  %v2240_v14 = vpop.f32.mrf.mxu0 }
 0x32d   : > { %2362 = vst [vmem:[#allocation1 + $0x3] ss:$4 sm:$0xff] %v2304_v48  ;;  %v2263_v27 = vadd.f32 %v2240_v14, %v2032_v35 }
 0x32f   : > { %v2305_v56 = vrot.slane %v2263_v27, 2  ;;  %v2306_v33 = vrot.slane %v2263_v27, 4  ;;  %2363 = vst [vmem:[#allocation1 + $0x20] ss:$4 sm:$0xff] %v2263_v27  ;;  %v2421_v32 = vadd.f32 %v2420_v50, %v2263_v27  ;;  %v2442_v61 = vmul.f32 %v2263_v27, %v2263_v27 }
 0x330   : > { %v2307_v11 = vrot.slane %v2263_v27, 6  ;;  %v1805_v50 = vadd.f32 %v1790_v16, %v1571_v42 }
 0x331   : > { %2364 = vst [vmem:[#allocation1 + $0x21] ss:$4 sm:$0xff] %v2305_v56  ;;  %v2454_v5 = vadd.f32 %v2453_v58, %v2442_v61 }
 0x332   : > { %2365 = vst [vmem:[#allocation1 + $0x22] ss:$4 sm:$0xff] %v2306_v33  ;;  %v2036_v48 = vadd.f32 %v2021_v25, %v1805_v50 }
 0x334   : > { %v2366_v15 = vld.sshfl [vmem:[#allocation1] sm:$0xff pattern:$0x73625140]  ;;  %v2243_v7 = vpop.f32.mrf.mxu0 }
 0x335   : > { %2408 = vst [vmem:[%s3906_s5 + $0x40] sm:$0xff] %v2366_v15  ;;  %v2264_v55 = vadd.f32 %v2243_v7, %v2033_v59 }
 0x336   : > { %2368 = vst [vmem:[#allocation1] ss:$4 sm:$0xff] %v2307_v11 }
 0x337   : > { %v2308_v8 = vrot.slane %v2264_v55, 2  ;;  %v2309_v9 = vrot.slane %v2264_v55, 4  ;;  %2369 = vst [vmem:[#allocation1 + $0x1] ss:$4 sm:$0xff] %v2264_v55  ;;  %v2422_v17 = vadd.f32 %v2421_v32, %v2264_v55  ;;  %v2310_v0 = vrot.slane %v2264_v55, 6 }
 0x338   : > { %v2443_v21 = vmul.f32 %v2264_v55, %v2264_v55 }
 0x339   : > { %v2367_v45 = vld.sshfl [vmem:[#allocation1 + $0x20] sm:$0xff pattern:$0x73625140]  ;;  %2370 = vst [vmem:[#allocation1 + $0x2] ss:$4 sm:$0xff] %v2308_v8 }
 0x33a   : > { %2409 = vst [vmem:[%s3906_s5 + $0x48] sm:$0x3f] %v2367_v45  ;;  %v2455_v19 = vadd.f32 %v2454_v5, %v2443_v21 }
 0x33b   : > { %2371 = vst [vmem:[#allocation1 + $0x3] ss:$4 sm:$0xff] %v2309_v9 }
 0x33c   : > { %2372 = vst [vmem:[#allocation1 + $0x20] ss:$4 sm:$0xff] %v2310_v0  ;;  %v2246_v24 = vpop.f32.mrf.mxu0 }
 0x33d   : > { %v2265_v1 = vadd.f32 %v2246_v24, %v2034_v63 }
 0x33f   : > { %v2311_v2 = vrot.slane %v2265_v1, 2  ;;  %2373 = vst [vmem:[#allocation1 + $0x21] ss:$4 sm:$0xff] %v2265_v1  ;;  %v2423_v31 = vadd.f32 %v2422_v17, %v2265_v1  ;;  %v2312_v53 = vrot.slane %v2265_v1, 4  ;;  %v2444_v22 = vmul.f32 %v2265_v1, %v2265_v1 }
 0x340   : > { %v2313_v47 = vrot.slane %v2265_v1, 6 }
 0x341   : > { %2374 = vst [vmem:[#allocation1 + $0x22] ss:$4 sm:$0xff] %v2311_v2  ;;  %v2456_v39 = vadd.f32 %v2455_v19, %v2444_v22 }
 0x342   : > { %v2375_v34 = vld.sshfl [vmem:[#allocation1] sm:$0xff pattern:$0x73625140] }
 0x343   : > { %2410 = vst [vmem:[%s3906_s5 + $0x50] sm:$0xff] %v2375_v34 }
 0x344   : > { %2377 = vst [vmem:[#allocation1] ss:$4 sm:$0xff] %v2312_v53  ;;  %v2249_v29 = vpop.f32.mrf.mxu0 }
 0x345   : > { %2378 = vst [vmem:[#allocation1 + $0x1] ss:$4 sm:$0xff] %v2313_v47  ;;  %v2266_v36 = vadd.f32 %v2249_v29, %v2035_v30 }
 0x347   : > { %v2314_v4 = vrot.slane %v2266_v36, 2  ;;  %v2315_v49 = vrot.slane %v2266_v36, 4  ;;  %2379 = vst [vmem:[#allocation1 + $0x2] ss:$4 sm:$0xff] %v2266_v36  ;;  %v2424_v54 = vadd.f32 %v2423_v31, %v2266_v36  ;;  %v2316_v44 = vrot.slane %v2266_v36, 6 }
 0x348   : > { %v2376_v26 = vld.sshfl [vmem:[#allocation1 + $0x20] sm:$0xff pattern:$0x73625140]  ;;  %v2445_v10 = vmul.f32 %v2266_v36, %v2266_v36 }
 0x349   : > { %2411 = vst [vmem:[%s3906_s5 + $0x58] sm:$0x3f] %v2376_v26 }
 0x34a   : > { %2380 = vst [vmem:[#allocation1 + $0x3] ss:$4 sm:$0xff] %v2314_v4  ;;  %v2457_v40 = vadd.f32 %v2456_v39, %v2445_v10 }
 0x34b   : > { %2381 = vst [vmem:[#allocation1 + $0x20] ss:$4 sm:$0xff] %v2315_v49 }
 0x34c   : > { %2382 = vst [vmem:[#allocation1 + $0x21] ss:$4 sm:$0xff] %v2316_v44  ;;  %v2252_v51 = vpop.f32.mrf.mxu0 }
 0x34d   : > { %v2267_v58 = vadd.f32 %v2252_v51, %v2036_v48 }
 0x34f   : > { %2383 = vst [vmem:[#allocation1 + $0x22] ss:$4 sm:$0xff] %v2267_v58  ;;  %v2426_v52 = vsel %vm2425_vm0, %v2267_v58, 0.0  ;;  %v2446_v12 = vmul.f32 %v2267_v58, %v2267_v58 }
 0x350   : > { %v2427_v35 = vadd.f32 %v2426_v52, %v2424_v54 }
 0x351   : > { %v2384_v14 = vld.sshfl [vmem:[#allocation1] sm:$0xff pattern:$0x73625140]  ;;  %v2458_v27 = vsel %vm2425_vm0, %v2446_v12, 0.0 }
 0x352   : > { %2412 = vst [vmem:[%s3906_s5 + $0x60] sm:$0xff] %v2384_v14  ;;  %v2428_v13 = vrot.slane %v2427_v35, 4  ;;  %v2459_v56 = vadd.f32 %v2458_v27, %v2457_v40 }
 0x354   : > { %v2429_v33 = vadd.f32 %v2428_v13, %v2427_v35  ;;  %v2460_v32 = vrot.slane %v2459_v56, 4 }
 0x356   : > { %v2385_v37 = vld.sshfl [vmem:[#allocation1 + $0x20] sm:$0xff pattern:$0x73625140]  ;;  %v2430_v61 = vrot.slane %v2429_v33, 2  ;;  %v2461_v38 = vadd.f32 %v2460_v32, %v2459_v56 }
 0x357   : > { %2413 = vst [vmem:[%s3906_s5 + $0x68] sm:$0x3f] %v2385_v37 }
 0x358   : > { %v2431_v3 = vadd.f32 %v2430_v61, %v2429_v33  ;;  %v2462_v11 = vrot.slane %v2461_v38, 2 }
 0x35a   : > { %v2432_v5 = vrot.slane %v2431_v3, 1  ;;  %v2463_v59 = vadd.f32 %v2462_v11, %v2461_v38 }
 0x35c   : > { %v2464_v57 = vrot.slane %v2463_v59, 1  ;;  %v2433_v15 = vadd.f32 %v2432_v5, %v2431_v3  ;;  %2471 = sbr.rel (%p2832_p7) target bundleno = 867 (0x363), region = 32 }
 0x35e   : > { %v2465_v7 = vadd.f32 %v2464_v57, %v2463_v59 }
 0x360   : > { %v2467_v55 = vsel %vm2466_vm1, %v2433_v15, %v2465_v7 }
 0x361   : > { %v2966_v18 = vmov 0.0  }
 0x362   : > { %2472 = vst [vmem:[%s3042_s8] sm:$0x3] %v2966_v18 }
 0x363 PF:  {}
 0x369   : > { %v2473_v8 = vld [vmem:[%s3042_s8] sm:$0x3] }
 0x36a   : > { %v2474_v9 = vadd.f32 %v2473_v8, %v2467_v55 }
 0x36c   : > { %2475 = vst [vmem:[%s3042_s8] sm:$0x3] %v2474_v9 }
 0x36d PF: > { %s14_s16 = sadd.s32 1, %s2964_s16   ;;  %s3957_s12 = smov %s2956_s14 }
 0x36e   : > { %p11_p8 = scmp.ge.s32.totalorder %s14_s16, 6   ;;  %s3958_s13 = smov %s2960_s15 }
 0x36f   : > { %s3959_s14 = smov %s3962_s17  ;;  %s3960_s15 = smov %s3966_s18 }
 0x370   :  { %13 = sbr.rel (!%p11_p8) target bundleno = 3 (0x3), region = 154 }

</bundles_post_ra>
